<compile_context>
chip_gen: v6e
topology: v6e:2x2x1
jax: 0.10.0
libtpu: 0.0.40
codegen_flags: <defaults>
</compile_context>

<pallas_src>
import functools
import math

import jax
import jax.numpy as jnp
from jax.experimental import pallas as pl
from jax.experimental.pallas import tpu as pltpu

# ----- small DeBERTa-base-like config -----
VOCAB = 128
HIDDEN = 32
HEADS = 4
HEAD_DIM = HIDDEN // HEADS
INTER = 64
LAYERS = 2
MAX_REL = 8                  # att_span (max_relative_positions)
REL_BUCKETS = 2 * MAX_REL    # relative-position buckets
LN_EPS = 1e-7                # deberta-base layer_norm_eps
USE_CLS = False              # TODO(synk): `param.cls` is an undefined global in the reference; mean-pool branch used.

# MXU operand dtype: bf16 operands already in HBM (half the DMA, bf16-native MXU rate on
# v5e/v6e/v7x); accumulation stays f32 via preferred_element_type.
MXU_DTYPE = jnp.bfloat16
ACC_DTYPE = jnp.float32


# ---------------------------------------------------------------------------
# The single fused encoder kernel
# ---------------------------------------------------------------------------
def _encoder_kernel(emb_ref, maskq_ref, maskk_ref, eg_ref, eb_ref, rel_ref,
                    selqk_ref, selkq_ref,
                    wqkv_ref, qb_ref, vb_ref, wpk_ref, wpq_ref, bpq_ref,
                    wo_ref, bo_ref, g1_ref, b1_ref,
                    w1_ref, f1_ref, w2_ref, f2_ref, g2_ref, b2_ref,
                    o_ref, *, batch, seq, heads, head_dim, num_layers,
                    inv_scale, eps, use_cls):
    B, S, NH, D = batch, seq, heads, head_dim
    H = NH * D
    BN = B * NH
    P = rel_ref.shape[0]
    f32 = ACC_DTYPE
    mm = MXU_DTYPE

    def layer_norm(x, g, b):
        mu = jnp.mean(x, axis=-1, keepdims=True)
        var = jnp.mean((x - mu) ** 2, axis=-1, keepdims=True)
        return (x - mu) * jax.lax.rsqrt(var + eps) * g + b

    mask_q = maskq_ref[...].astype(f32)                 # (B, S, 1)
    mask_k = maskk_ref[...].astype(f32)                 # (B, 1, S)
    sel_qk = selqk_ref[...]                             # (S_q, S_k, P) bf16 one-hot
    sel_kq = selkq_ref[...]                             # (S_k, S_q, P) bf16 one-hot (pre-transposed)
    rel = rel_ref[...]                                  # (P, H) bf16

    # ---- embeddings: LayerNorm + embedding mask (DebertaEmbeddings, eval mode) ----
    x3 = layer_norm(emb_ref[...].astype(f32),
                    eg_ref[...].astype(f32), eb_ref[...].astype(f32))    # (B, S, H)
    x3 = x3 * mask_q                                                      # emb * mask.unsqueeze(2)
    h = x3.reshape(B * S, H)                                              # (B*S, H) f32

    # XSoftmax mask built in VMEM from the (B,S) mask; broadcast over heads (outer dim only)
    m2d = mask_q * mask_k                                                 # (B, S, S)
    m2d = jnp.broadcast_to(m2d[:, None], (B, NH, S, S)).reshape(BN, S, S)
    neg = jnp.float32(-1e9)

    for li in range(num_layers):                                          # static unroll
        # ---- disentangled self-attention ----
        qkv = jnp.dot(h.astype(mm), wqkv_ref[li], preferred_element_type=f32)   # (B*S, 3H)
        q = (qkv[:, 0:H] + qb_ref[li].astype(f32)) * inv_scale
        k = qkv[:, H:2 * H]
        v = qkv[:, 2 * H:3 * H] + vb_ref[li].astype(f32)

        # relative-position projections: once per layer (batch-invariant; single grid step)
        pos_k = jnp.dot(rel, wpk_ref[li], preferred_element_type=f32)            # (P, H)
        pos_q = (jnp.dot(rel, wpq_ref[li], preferred_element_type=f32)
                 + bpq_ref[li].astype(f32)) * inv_scale                          # (P, H)

        # head-batched layout: merged (B*NH) leading batch axis (single relayout, no head loop)
        q4 = q.reshape(B, S, NH, D).transpose(0, 2, 1, 3).reshape(BN, S, D).astype(mm)
        k4 = k.reshape(B, S, NH, D).transpose(0, 2, 1, 3).reshape(BN, S, D).astype(mm)
        v4 = v.reshape(B, S, NH, D).transpose(0, 2, 1, 3).reshape(BN, S, D).astype(mm)
        pk = pos_k.reshape(P, NH, D).transpose(1, 0, 2).astype(mm)                # (NH, P, D)
        pq = pos_q.reshape(P, NH, D).transpose(1, 0, 2).astype(mm)
        pk = jnp.broadcast_to(pk[None], (B, NH, P, D)).reshape(BN, P, D)
        pq = jnp.broadcast_to(pq[None], (B, NH, P, D)).reshape(BN, P, D)

        # content->content / content->position / position->content scores (all MXU, f32 acc)
        scores = jnp.einsum('bqd,bkd->bqk', q4, k4, preferred_element_type=f32)   # (BN,S,S)
        c2p = jnp.einsum('bqd,bpd->bqp', q4, pk, preferred_element_type=f32)      # (BN,S,P)
        p2c = jnp.einsum('bkd,bpd->bkp', k4, pq, preferred_element_type=f32)      # (BN,S,P)

        # Toeplitz bucket gather (idx = clip(q-k+span)) as a one-hot contraction on the MXU,
        # batched over the query / key position axis.
        c2p_b = jnp.einsum('qbp,qkp->qbk', c2p.transpose(1, 0, 2).astype(mm), sel_qk,
                           preferred_element_type=f32).transpose(1, 0, 2)          # (BN,S,S)
        p2c_b = jnp.einsum('kbp,kqp->kbq', p2c.transpose(1, 0, 2).astype(mm), sel_kq,
                           preferred_element_type=f32).transpose(1, 2, 0)          # (BN,S,S)
        scores = scores + c2p_b + p2c_b

        # XSoftmax: mask -> softmax -> re-mask (masked rows -> 0 probabilities)
        scores = jnp.where(m2d > 0, scores, neg)
        scores = scores - jnp.max(scores, axis=-1, keepdims=True)
        p = jnp.exp(scores) * m2d
        denom = jnp.sum(p, axis=-1, keepdims=True) + jnp.float32(1e-20)
        p = p * pl.reciprocal(denom, approx=True)                   # EUP slot, ~free

        ctx = jnp.einsum('bqk,bkd->bqd', p.astype(mm), v4,
                         preferred_element_type=f32)                 # (BN, S, D)
        ctx = ctx.reshape(B, NH, S, D).transpose(0, 2, 1, 3).reshape(B * S, H)

        attn = jnp.dot(ctx.astype(mm), wo_ref[li], preferred_element_type=f32) \
            + bo_ref[li].astype(f32)
        h = layer_norm(attn + h, g1_ref[li].astype(f32), b1_ref[li].astype(f32))

        # ---- FFN: dense -> GELU -> dense -> residual -> LayerNorm ----
        h1 = jnp.dot(h.astype(mm), w1_ref[li], preferred_element_type=f32) + f1_ref[li].astype(f32)
        # TODO(synk): HF DeBERTa "gelu" is the exact erf GELU; tanh approximation used.
        h1 = jax.nn.gelu(h1, approximate=True)
        h2 = jnp.dot(h1.astype(mm), w2_ref[li], preferred_element_type=f32) + f2_ref[li].astype(f32)
        h = layer_norm(h2 + h, g2_ref[li].astype(f32), b2_ref[li].astype(f32))

    # ---- pooling epilogue (reference: feat = sum(tokens)/token_len, or CLS token) ----
    if use_cls:
        feat = h.reshape(B, S, H)[:, 0, :]
    else:
        feat = jnp.sum(h.reshape(B, S, H), axis=1) * jnp.float32(1.0 / S)
    o_ref[...] = feat.astype(o_ref.dtype)


def _full_spec(shape):
    zeros = (0,) * len(shape)
    return pl.BlockSpec(shape, lambda i: zeros)


# ---------------------------------------------------------------------------
# Forward pass (== DebertaBaseEncoder.forward, mean-pool branch)
# ---------------------------------------------------------------------------
def deberta_encoder_forward(params, input_ids, attention_mask):
    B, S = input_ids.shape
    H, P, L, I = HIDDEN, REL_BUCKETS, LAYERS, INTER
    NH, D = HEADS, HEAD_DIM
    inv_scale = 1.0 / math.sqrt(D * 3.0)        # scale_factor = 1 + len(["c2p", "p2c"])

    # token-id gather stays plain-JAX glue; activations handed to the kernel in bf16
    emb = params["word_emb"][input_ids].astype(MXU_DTYPE)              # (B, S, H)
    mask_f = attention_mask.astype(jnp.float32)                        # (B, S)
    mask_q = mask_f[:, :, None]                                        # (B, S, 1)
    mask_k = mask_f[:, None, :]                                        # (B, 1, S)

    # Toeplitz relative-position one-hot tables: c2p and p2c both gather with the SAME
    # bucket index clip(q-k+span); the p2c copy is pre-transposed so the kernel never
    # transposes the table.
    ids = jnp.arange(S)
    bucket = jnp.clip(ids[:, None] - ids[None, :] + MAX_REL, 0, P - 1)  # (S_q, S_k)
    onehot = bucket[:, :, None] == jnp.arange(P)[None, None, :]
    sel_qk = onehot.astype(MXU_DTYPE)                                   # (S_q, S_k, P)
    sel_kq = jnp.transpose(sel_qk, (1, 0, 2))                           # (S_k, S_q, P)

    def stack(name, width=None):
        arr = jnp.stack([lp[name] for lp in params["layers"]])
        if width is not None:
            arr = arr.reshape(L, 1, width)
        return arr

    args = [
        emb, mask_q, mask_k,
        params["emb_ln_g"].reshape(1, H), params["emb_ln_b"].reshape(1, H),
        params["rel_emb"], sel_qk, sel_kq,
        stack("in_proj_w"), stack("q_bias", H), stack("v_bias", H),
        stack("pos_proj_w"), stack("pos_q_proj_w"), stack("pos_q_proj_b", H),
        stack("attn_out_w"), stack("attn_out_b", H),
        stack("attn_ln_g", H), stack("attn_ln_b", H),
        stack("ffn_w1"), stack("ffn_b1", I), stack("ffn_w2"), stack("ffn_b2", H),
        stack("ffn_ln_g", H), stack("ffn_ln_b", H),
    ]

    BN = B * NH
    flops = L * int(2 * B * S * H * 3 * H + 4 * P * H * H
                    + 4 * BN * S * S * D + 4 * BN * S * P * D + 4 * BN * S * S * P
                    + 2 * B * S * H * H + 4 * B * S * H * I)
    transcendentals = L * int(BN * S * S + B * S * I)
    bytes_accessed = int(sum(a.size * a.dtype.itemsize for a in args) + B * H * 4)

    kern = functools.partial(
        _encoder_kernel, batch=B, seq=S, heads=NH, head_dim=D,
        num_layers=L, inv_scale=inv_scale, eps=LN_EPS, use_cls=USE_CLS)

    return pl.pallas_call(
        kern,
        out_shape=jax.ShapeDtypeStruct((B, H), jnp.float32),
        grid=(1,),
        in_specs=[_full_spec(a.shape) for a in args],
        out_specs=_full_spec((B, H)),
        compiler_params=pltpu.CompilerParams(
            dimension_semantics=("arbitrary",),          # single step; "parallel" buys nothing on 1-TC chips
            vmem_limit_bytes=32 * 1024 * 1024),
        cost_estimate=pl.CostEstimate(flops=flops, transcendentals=transcendentals,
                                      bytes_accessed=bytes_accessed),
    )(*args)


# ---------------------------------------------------------------------------
# Parameters (deterministic, synthetic; initializer_range=0.02 like DeBERTa)
# ---------------------------------------------------------------------------
def init_params(key):
    def nrm(k, shape):
        return (jax.random.normal(k, shape, jnp.float32) * 0.02).astype(MXU_DTYPE)

    H, I = HIDDEN, INTER
    keys = jax.random.split(key, 2 + LAYERS)
    params = {
        "word_emb": nrm(keys[0], (VOCAB, H)),
        "emb_ln_g": jnp.ones((H,), jnp.float32),
        "emb_ln_b": jnp.zeros((H,), jnp.float32),
        "rel_emb": nrm(keys[1], (REL_BUCKETS, H)),
        "layers": [],
    }
    for li in range(LAYERS):
        lk = jax.random.split(keys[2 + li], 6)
        params["layers"].append({
            "in_proj_w": nrm(lk[0], (H, 3 * H)),       # Linear(H, 3H, bias=False)
            "q_bias": jnp.zeros((H,), jnp.float32),    # HF inits q_bias / v_bias to zeros
            "v_bias": jnp.zeros((H,), jnp.float32),
            "pos_proj_w": nrm(lk[1], (H, H)),          # bias=False
            "pos_q_proj_w": nrm(lk[2], (H, H)),
            "pos_q_proj_b": jnp.zeros((H,), jnp.float32),
            "attn_out_w": nrm(lk[3], (H, H)),
            "attn_out_b": jnp.zeros((H,), jnp.float32),
            "attn_ln_g": jnp.ones((H,), jnp.float32),
            "attn_ln_b": jnp.zeros((H,), jnp.float32),
            "ffn_w1": nrm(lk[4], (H, I)),
            "ffn_b1": jnp.zeros((I,), jnp.float32),
            "ffn_w2": nrm(lk[5], (I, H)),
            "ffn_b2": jnp.zeros((H,), jnp.float32),
            "ffn_ln_g": jnp.ones((H,), jnp.float32),
            "ffn_ln_b": jnp.zeros((H,), jnp.float32),
        })
    return params


if __name__ == "__main__":
    key = jax.random.PRNGKey(0)
    pkey, ikey = jax.random.split(key)
    params = init_params(pkey)

    B, S = 2, 8
    input_ids = jax.random.randint(ikey, (B, S), 0, VOCAB)
    attention_mask = jnp.ones((B, S), dtype=jnp.int32)

    fwd = jax.jit(functools.partial(deberta_encoder_forward, params))
    feat = fwd(input_ids, attention_mask)
    jax.block_until_ready(feat)
    assert feat.shape == (B, HIDDEN)
    assert bool(jnp.all(jnp.isfinite(feat)))
    print("KERNEL_OK")
</pallas_src>

<mosaic_0001>
module attributes {stable_mosaic.version = 11 : i64} {
  func.func @_encoder_kernel(%arg0: i32, %arg1: memref<2x8x32xbf16, #tpu.memory_space<vmem>>, %arg2: memref<2x8x1xf32, #tpu.memory_space<vmem>>, %arg3: memref<2x1x8xf32, #tpu.memory_space<vmem>>, %arg4: memref<1x32xf32, #tpu.memory_space<vmem>>, %arg5: memref<1x32xf32, #tpu.memory_space<vmem>>, %arg6: memref<16x32xbf16, #tpu.memory_space<vmem>>, %arg7: memref<8x8x16xbf16, #tpu.memory_space<vmem>>, %arg8: memref<8x8x16xbf16, #tpu.memory_space<vmem>>, %arg9: memref<2x32x96xbf16, #tpu.memory_space<vmem>>, %arg10: memref<2x1x32xf32, #tpu.memory_space<vmem>>, %arg11: memref<2x1x32xf32, #tpu.memory_space<vmem>>, %arg12: memref<2x32x32xbf16, #tpu.memory_space<vmem>>, %arg13: memref<2x32x32xbf16, #tpu.memory_space<vmem>>, %arg14: memref<2x1x32xf32, #tpu.memory_space<vmem>>, %arg15: memref<2x32x32xbf16, #tpu.memory_space<vmem>>, %arg16: memref<2x1x32xf32, #tpu.memory_space<vmem>>, %arg17: memref<2x1x32xf32, #tpu.memory_space<vmem>>, %arg18: memref<2x1x32xf32, #tpu.memory_space<vmem>>, %arg19: memref<2x32x64xbf16, #tpu.memory_space<vmem>>, %arg20: memref<2x1x64xf32, #tpu.memory_space<vmem>>, %arg21: memref<2x64x32xbf16, #tpu.memory_space<vmem>>, %arg22: memref<2x1x32xf32, #tpu.memory_space<vmem>>, %arg23: memref<2x1x32xf32, #tpu.memory_space<vmem>>, %arg24: memref<2x1x32xf32, #tpu.memory_space<vmem>>, %arg25: memref<2x32xf32, #tpu.memory_space<vmem>>) attributes {dimension_semantics = [#tpu.dimension_semantics<arbitrary>], iteration_bounds = array<i64: 1>, scalar_prefetch = 0 : i64, scratch_operands = 0 : i64, tpu.core_type = #tpu.core_type<tc>, window_params = [{pipeline_mode = #tpu.pipeline_mode<synchronous>, transform_indices = @transform_0, window_bounds = array<i64: 2, 8, 32>}, {pipeline_mode = #tpu.pipeline_mode<synchronous>, transform_indices = @transform_1, window_bounds = array<i64: 2, 8, 1>}, {pipeline_mode = #tpu.pipeline_mode<synchronous>, transform_indices = @transform_2, window_bounds = array<i64: 2, 1, 8>}, {pipeline_mode = #tpu.pipeline_mode<synchronous>, transform_indices = @transform_3, window_bounds = array<i64: 1, 32>}, {pipeline_mode = #tpu.pipeline_mode<synchronous>, transform_indices = @transform_4, window_bounds = array<i64: 1, 32>}, {pipeline_mode = #tpu.pipeline_mode<synchronous>, transform_indices = @transform_5, window_bounds = array<i64: 16, 32>}, {pipeline_mode = #tpu.pipeline_mode<synchronous>, transform_indices = @transform_6, window_bounds = array<i64: 8, 8, 16>}, {pipeline_mode = #tpu.pipeline_mode<synchronous>, transform_indices = @transform_7, window_bounds = array<i64: 8, 8, 16>}, {pipeline_mode = #tpu.pipeline_mode<synchronous>, transform_indices = @transform_8, window_bounds = array<i64: 2, 32, 96>}, {pipeline_mode = #tpu.pipeline_mode<synchronous>, transform_indices = @transform_9, window_bounds = array<i64: 2, 1, 32>}, {pipeline_mode = #tpu.pipeline_mode<synchronous>, transform_indices = @transform_10, window_bounds = array<i64: 2, 1, 32>}, {pipeline_mode = #tpu.pipeline_mode<synchronous>, transform_indices = @transform_11, window_bounds = array<i64: 2, 32, 32>}, {pipeline_mode = #tpu.pipeline_mode<synchronous>, transform_indices = @transform_12, window_bounds = array<i64: 2, 32, 32>}, {pipeline_mode = #tpu.pipeline_mode<synchronous>, transform_indices = @transform_13, window_bounds = array<i64: 2, 1, 32>}, {pipeline_mode = #tpu.pipeline_mode<synchronous>, transform_indices = @transform_14, window_bounds = array<i64: 2, 32, 32>}, {pipeline_mode = #tpu.pipeline_mode<synchronous>, transform_indices = @transform_15, window_bounds = array<i64: 2, 1, 32>}, {pipeline_mode = #tpu.pipeline_mode<synchronous>, transform_indices = @transform_16, window_bounds = array<i64: 2, 1, 32>}, {pipeline_mode = #tpu.pipeline_mode<synchronous>, transform_indices = @transform_17, window_bounds = array<i64: 2, 1, 32>}, {pipeline_mode = #tpu.pipeline_mode<synchronous>, transform_indices = @transform_18, window_bounds = array<i64: 2, 32, 64>}, {pipeline_mode = #tpu.pipeline_mode<synchronous>, transform_indices = @transform_19, window_bounds = array<i64: 2, 1, 64>}, {pipeline_mode = #tpu.pipeline_mode<synchronous>, transform_indices = @transform_20, window_bounds = array<i64: 2, 64, 32>}, {pipeline_mode = #tpu.pipeline_mode<synchronous>, transform_indices = @transform_21, window_bounds = array<i64: 2, 1, 32>}, {pipeline_mode = #tpu.pipeline_mode<synchronous>, transform_indices = @transform_22, window_bounds = array<i64: 2, 1, 32>}, {pipeline_mode = #tpu.pipeline_mode<synchronous>, transform_indices = @transform_23, window_bounds = array<i64: 2, 1, 32>}, {pipeline_mode = #tpu.pipeline_mode<synchronous>, transform_indices = @transform_24, window_bounds = array<i64: 2, 32>}]} {
    %c0 = arith.constant 0 : index
    %c0_0 = arith.constant 0 : index
    %c0_1 = arith.constant 0 : index
    %0 = vector.load %arg2[%c0, %c0_0, %c0_1] : memref<2x8x1xf32, #tpu.memory_space<vmem>>, vector<2x8x1xf32>
    %c0_2 = arith.constant 0 : index
    %c0_3 = arith.constant 0 : index
    %c0_4 = arith.constant 0 : index
    %1 = vector.load %arg3[%c0_2, %c0_3, %c0_4] : memref<2x1x8xf32, #tpu.memory_space<vmem>>, vector<2x1x8xf32>
    %c0_5 = arith.constant 0 : index
    %c0_6 = arith.constant 0 : index
    %c0_7 = arith.constant 0 : index
    %2 = vector.load %arg7[%c0_5, %c0_6, %c0_7] : memref<8x8x16xbf16, #tpu.memory_space<vmem>>, vector<8x8x16xbf16>
    %c0_8 = arith.constant 0 : index
    %c0_9 = arith.constant 0 : index
    %c0_10 = arith.constant 0 : index
    %3 = vector.load %arg8[%c0_8, %c0_9, %c0_10] : memref<8x8x16xbf16, #tpu.memory_space<vmem>>, vector<8x8x16xbf16>
    %c0_11 = arith.constant 0 : index
    %c0_12 = arith.constant 0 : index
    %4 = vector.load %arg6[%c0_11, %c0_12] : memref<16x32xbf16, #tpu.memory_space<vmem>>, vector<16x32xbf16>
    %c0_13 = arith.constant 0 : index
    %c0_14 = arith.constant 0 : index
    %c0_15 = arith.constant 0 : index
    %5 = vector.load %arg1[%c0_13, %c0_14, %c0_15] : memref<2x8x32xbf16, #tpu.memory_space<vmem>>, vector<2x8x32xbf16>
    %6 = arith.extf %5 : vector<2x8x32xbf16> to vector<2x8x32xf32>
    %c0_16 = arith.constant 0 : index
    %c0_17 = arith.constant 0 : index
    %7 = vector.load %arg4[%c0_16, %c0_17] : memref<1x32xf32, #tpu.memory_space<vmem>>, vector<1x32xf32>
    %c0_18 = arith.constant 0 : index
    %c0_19 = arith.constant 0 : index
    %8 = vector.load %arg5[%c0_18, %c0_19] : memref<1x32xf32, #tpu.memory_space<vmem>>, vector<1x32xf32>
    %cst = arith.constant dense<0.000000e+00> : vector<2x8xf32>
    %9 = vector.multi_reduction <add>, %6, %cst [2] : vector<2x8x32xf32> to vector<2x8xf32>
    %10 = vector.shape_cast %9 : vector<2x8xf32> to vector<2x8x1xf32>
    %cst_20 = arith.constant 3.200000e+01 : f32
    %11 = vector.broadcast %cst_20 : f32 to vector<2x8x1xf32>
    %12 = arith.divf %10, %11 : vector<2x8x1xf32>
    %13 = vector.broadcast %12 : vector<2x8x1xf32> to vector<2x8x32xf32>
    %14 = arith.subf %6, %13 : vector<2x8x32xf32>
    %15 = arith.mulf %14, %14 : vector<2x8x32xf32>
    %cst_21 = arith.constant dense<0.000000e+00> : vector<2x8xf32>
    %16 = vector.multi_reduction <add>, %15, %cst_21 [2] : vector<2x8x32xf32> to vector<2x8xf32>
    %17 = vector.shape_cast %16 : vector<2x8xf32> to vector<2x8x1xf32>
    %cst_22 = arith.constant 3.200000e+01 : f32
    %18 = vector.broadcast %cst_22 : f32 to vector<2x8x1xf32>
    %19 = arith.divf %17, %18 : vector<2x8x1xf32>
    %20 = vector.broadcast %12 : vector<2x8x1xf32> to vector<2x8x32xf32>
    %21 = arith.subf %6, %20 : vector<2x8x32xf32>
    %cst_23 = arith.constant 1.000000e-07 : f32
    %22 = vector.broadcast %cst_23 : f32 to vector<2x8x1xf32>
    %23 = arith.addf %19, %22 : vector<2x8x1xf32>
    %24 = math.rsqrt %23 : vector<2x8x1xf32>
    %25 = vector.broadcast %24 : vector<2x8x1xf32> to vector<2x8x32xf32>
    %26 = arith.mulf %21, %25 : vector<2x8x32xf32>
    %27 = vector.shape_cast %7 : vector<1x32xf32> to vector<1x1x32xf32>
    %28 = vector.broadcast %27 : vector<1x1x32xf32> to vector<2x8x32xf32>
    %29 = arith.mulf %26, %28 : vector<2x8x32xf32>
    %30 = vector.shape_cast %8 : vector<1x32xf32> to vector<1x1x32xf32>
    %31 = vector.broadcast %30 : vector<1x1x32xf32> to vector<2x8x32xf32>
    %32 = arith.addf %29, %31 : vector<2x8x32xf32>
    %33 = vector.broadcast %0 : vector<2x8x1xf32> to vector<2x8x32xf32>
    %34 = arith.mulf %32, %33 : vector<2x8x32xf32>
    %35 = vector.shape_cast %34 : vector<2x8x32xf32> to vector<16x32xf32>
    %36 = vector.broadcast %0 : vector<2x8x1xf32> to vector<2x8x8xf32>
    %37 = vector.broadcast %1 : vector<2x1x8xf32> to vector<2x8x8xf32>
    %38 = arith.mulf %36, %37 : vector<2x8x8xf32>
    %39 = vector.shape_cast %38 : vector<2x8x8xf32> to vector<2x1x8x8xf32>
    %40 = vector.shape_cast %39 : vector<2x1x8x8xf32> to vector<2x1x8x8xf32>
    %41 = vector.broadcast %40 : vector<2x1x8x8xf32> to vector<2x4x8x8xf32>
    %42 = vector.shape_cast %41 : vector<2x4x8x8xf32> to vector<8x8x8xf32>
    %43 = arith.truncf %35 : vector<16x32xf32> to vector<16x32xbf16>
    %c0_24 = arith.constant 0 : index
    %c0_25 = arith.constant 0 : index
    %c0_26 = arith.constant 0 : index
    %44 = vector.load %arg9[%c0_24, %c0_25, %c0_26] : memref<2x32x96xbf16, #tpu.memory_space<vmem>>, vector<1x32x96xbf16>
    %45 = vector.shape_cast %44 : vector<1x32x96xbf16> to vector<32x96xbf16>
    %cst_27 = arith.constant dense<0.000000e+00> : vector<16x96xf32>
    %46 = tpu.matmul %43, %45, %cst_27 {dimension_numbers = #tpu.dot_dimension_numbers<[1], [0], [0], [1], [0, 0, 1, 1], [], []>} : vector<16x32xbf16>, vector<32x96xbf16>, vector<16x96xf32> -> vector<16x96xf32>
    %47 = vector.extract_strided_slice %46 {offsets = [0, 0], sizes = [16, 32], strides = [1, 1]} : vector<16x96xf32> to vector<16x32xf32>
    %c0_28 = arith.constant 0 : index
    %c0_29 = arith.constant 0 : index
    %c0_30 = arith.constant 0 : index
    %48 = vector.load %arg10[%c0_28, %c0_29, %c0_30] : memref<2x1x32xf32, #tpu.memory_space<vmem>>, vector<1x1x32xf32>
    %49 = vector.shape_cast %48 : vector<1x1x32xf32> to vector<1x32xf32>
    %50 = vector.broadcast %49 : vector<1x32xf32> to vector<16x32xf32>
    %51 = arith.addf %47, %50 : vector<16x32xf32>
    %cst_31 = arith.constant 0.204124153 : f32
    %52 = vector.broadcast %cst_31 : f32 to vector<16x32xf32>
    %53 = arith.mulf %51, %52 : vector<16x32xf32>
    %54 = vector.extract_strided_slice %46 {offsets = [0, 32], sizes = [16, 32], strides = [1, 1]} : vector<16x96xf32> to vector<16x32xf32>
    %55 = vector.extract_strided_slice %46 {offsets = [0, 64], sizes = [16, 32], strides = [1, 1]} : vector<16x96xf32> to vector<16x32xf32>
    %c0_32 = arith.constant 0 : index
    %c0_33 = arith.constant 0 : index
    %c0_34 = arith.constant 0 : index
    %56 = vector.load %arg11[%c0_32, %c0_33, %c0_34] : memref<2x1x32xf32, #tpu.memory_space<vmem>>, vector<1x1x32xf32>
    %57 = vector.shape_cast %56 : vector<1x1x32xf32> to vector<1x32xf32>
    %58 = vector.broadcast %57 : vector<1x32xf32> to vector<16x32xf32>
    %59 = arith.addf %55, %58 : vector<16x32xf32>
    %c0_35 = arith.constant 0 : index
    %c0_36 = arith.constant 0 : index
    %c0_37 = arith.constant 0 : index
    %60 = vector.load %arg12[%c0_35, %c0_36, %c0_37] : memref<2x32x32xbf16, #tpu.memory_space<vmem>>, vector<1x32x32xbf16>
    %61 = vector.shape_cast %60 : vector<1x32x32xbf16> to vector<32x32xbf16>
    %cst_38 = arith.constant dense<0.000000e+00> : vector<16x32xf32>
    %62 = tpu.matmul %4, %61, %cst_38 {dimension_numbers = #tpu.dot_dimension_numbers<[1], [0], [0], [1], [0, 0, 1, 1], [], []>} : vector<16x32xbf16>, vector<32x32xbf16>, vector<16x32xf32> -> vector<16x32xf32>
    %c0_39 = arith.constant 0 : index
    %c0_40 = arith.constant 0 : index
    %c0_41 = arith.constant 0 : index
    %63 = vector.load %arg13[%c0_39, %c0_40, %c0_41] : memref<2x32x32xbf16, #tpu.memory_space<vmem>>, vector<1x32x32xbf16>
    %64 = vector.shape_cast %63 : vector<1x32x32xbf16> to vector<32x32xbf16>
    %cst_42 = arith.constant dense<0.000000e+00> : vector<16x32xf32>
    %65 = tpu.matmul %4, %64, %cst_42 {dimension_numbers = #tpu.dot_dimension_numbers<[1], [0], [0], [1], [0, 0, 1, 1], [], []>} : vector<16x32xbf16>, vector<32x32xbf16>, vector<16x32xf32> -> vector<16x32xf32>
    %c0_43 = arith.constant 0 : index
    %c0_44 = arith.constant 0 : index
    %c0_45 = arith.constant 0 : index
    %66 = vector.load %arg14[%c0_43, %c0_44, %c0_45] : memref<2x1x32xf32, #tpu.memory_space<vmem>>, vector<1x1x32xf32>
    %67 = vector.shape_cast %66 : vector<1x1x32xf32> to vector<1x32xf32>
    %68 = vector.broadcast %67 : vector<1x32xf32> to vector<16x32xf32>
    %69 = arith.addf %65, %68 : vector<16x32xf32>
    %cst_46 = arith.constant 0.204124153 : f32
    %70 = vector.broadcast %cst_46 : f32 to vector<16x32xf32>
    %71 = arith.mulf %69, %70 : vector<16x32xf32>
    %72 = vector.shape_cast %53 : vector<16x32xf32> to vector<2x8x4x8xf32>
    %73 = tpu.transpose %72, [0, 2, 1, 3] : vector<2x8x4x8xf32> -> vector<2x4x8x8xf32>
    %74 = vector.shape_cast %73 : vector<2x4x8x8xf32> to vector<8x8x8xf32>
    %75 = arith.truncf %74 : vector<8x8x8xf32> to vector<8x8x8xbf16>
    %76 = vector.shape_cast %54 : vector<16x32xf32> to vector<2x8x4x8xf32>
    %77 = tpu.transpose %76, [0, 2, 1, 3] : vector<2x8x4x8xf32> -> vector<2x4x8x8xf32>
    %78 = vector.shape_cast %77 : vector<2x4x8x8xf32> to vector<8x8x8xf32>
    %79 = arith.truncf %78 : vector<8x8x8xf32> to vector<8x8x8xbf16>
    %80 = vector.shape_cast %59 : vector<16x32xf32> to vector<2x8x4x8xf32>
    %81 = tpu.transpose %80, [0, 2, 1, 3] : vector<2x8x4x8xf32> -> vector<2x4x8x8xf32>
    %82 = vector.shape_cast %81 : vector<2x4x8x8xf32> to vector<8x8x8xf32>
    %83 = arith.truncf %82 : vector<8x8x8xf32> to vector<8x8x8xbf16>
    %84 = vector.shape_cast %62 : vector<16x32xf32> to vector<16x4x8xf32>
    %85 = tpu.transpose %84, [1, 0, 2] : vector<16x4x8xf32> -> vector<4x16x8xf32>
    %86 = arith.truncf %85 : vector<4x16x8xf32> to vector<4x16x8xbf16>
    %87 = vector.shape_cast %71 : vector<16x32xf32> to vector<16x4x8xf32>
    %88 = tpu.transpose %87, [1, 0, 2] : vector<16x4x8xf32> -> vector<4x16x8xf32>
    %89 = arith.truncf %88 : vector<4x16x8xf32> to vector<4x16x8xbf16>
    %90 = vector.shape_cast %86 : vector<4x16x8xbf16> to vector<1x4x16x8xbf16>
    %91 = vector.shape_cast %90 : vector<1x4x16x8xbf16> to vector<1x4x16x8xbf16>
    %92 = vector.broadcast %91 : vector<1x4x16x8xbf16> to vector<2x4x16x8xbf16>
    %93 = vector.shape_cast %92 : vector<2x4x16x8xbf16> to vector<8x16x8xbf16>
    %94 = vector.shape_cast %89 : vector<4x16x8xbf16> to vector<1x4x16x8xbf16>
    %95 = vector.shape_cast %94 : vector<1x4x16x8xbf16> to vector<1x4x16x8xbf16>
    %96 = vector.broadcast %95 : vector<1x4x16x8xbf16> to vector<2x4x16x8xbf16>
    %97 = vector.shape_cast %96 : vector<2x4x16x8xbf16> to vector<8x16x8xbf16>
    "tpu.trace_start"() <{level = 10 : i32, message = "bqd,bkd->bqk"}> : () -> ()
    %cst_47 = arith.constant dense<0.000000e+00> : vector<8x8x8xf32>
    %98 = tpu.matmul %75, %79, %cst_47 {dimension_numbers = #tpu.dot_dimension_numbers<[2], [2], [1], [1], [0, 0, 0, 1, 1, 1], [0], [0]>} : vector<8x8x8xbf16>, vector<8x8x8xbf16>, vector<8x8x8xf32> -> vector<8x8x8xf32>
    "tpu.trace_stop"() : () -> ()
    "tpu.trace_start"() <{level = 10 : i32, message = "bqd,bpd->bqp"}> : () -> ()
    %cst_48 = arith.constant dense<0.000000e+00> : vector<8x8x16xf32>
    %99 = tpu.matmul %75, %93, %cst_48 {dimension_numbers = #tpu.dot_dimension_numbers<[2], [2], [1], [1], [0, 0, 0, 1, 1, 1], [0], [0]>} : vector<8x8x8xbf16>, vector<8x16x8xbf16>, vector<8x8x16xf32> -> vector<8x8x16xf32>
    "tpu.trace_stop"() : () -> ()
    "tpu.trace_start"() <{level = 10 : i32, message = "bkd,bpd->bkp"}> : () -> ()
    %cst_49 = arith.constant dense<0.000000e+00> : vector<8x8x16xf32>
    %100 = tpu.matmul %79, %97, %cst_49 {dimension_numbers = #tpu.dot_dimension_numbers<[2], [2], [1], [1], [0, 0, 0, 1, 1, 1], [0], [0]>} : vector<8x8x8xbf16>, vector<8x16x8xbf16>, vector<8x8x16xf32> -> vector<8x8x16xf32>
    "tpu.trace_stop"() : () -> ()
    %101 = tpu.transpose %99, [1, 0, 2] : vector<8x8x16xf32> -> vector<8x8x16xf32>
    %102 = arith.truncf %101 : vector<8x8x16xf32> to vector<8x8x16xbf16>
    "tpu.trace_start"() <{level = 10 : i32, message = "qbp,qkp->qbk"}> : () -> ()
    %cst_50 = arith.constant dense<0.000000e+00> : vector<8x8x8xf32>
    %103 = tpu.matmul %102, %2, %cst_50 {dimension_numbers = #tpu.dot_dimension_numbers<[2], [2], [1], [1], [0, 0, 0, 1, 1, 1], [0], [0]>} : vector<8x8x16xbf16>, vector<8x8x16xbf16>, vector<8x8x8xf32> -> vector<8x8x8xf32>
    "tpu.trace_stop"() : () -> ()
    %104 = tpu.transpose %103, [1, 0, 2] : vector<8x8x8xf32> -> vector<8x8x8xf32>
    %105 = tpu.transpose %100, [1, 0, 2] : vector<8x8x16xf32> -> vector<8x8x16xf32>
    %106 = arith.truncf %105 : vector<8x8x16xf32> to vector<8x8x16xbf16>
    "tpu.trace_start"() <{level = 10 : i32, message = "kbp,kqp->kbq"}> : () -> ()
    %cst_51 = arith.constant dense<0.000000e+00> : vector<8x8x8xf32>
    %107 = tpu.matmul %106, %3, %cst_51 {dimension_numbers = #tpu.dot_dimension_numbers<[2], [2], [1], [1], [0, 0, 0, 1, 1, 1], [0], [0]>} : vector<8x8x16xbf16>, vector<8x8x16xbf16>, vector<8x8x8xf32> -> vector<8x8x8xf32>
    "tpu.trace_stop"() : () -> ()
    %108 = tpu.transpose %107, [1, 2, 0] : vector<8x8x8xf32> -> vector<8x8x8xf32>
    %109 = arith.addf %98, %104 : vector<8x8x8xf32>
    %110 = arith.addf %109, %108 : vector<8x8x8xf32>
    %cst_52 = arith.constant 0.000000e+00 : f32
    %111 = vector.broadcast %cst_52 : f32 to vector<8x8x8xf32>
    %112 = arith.cmpf ogt, %42, %111 : vector<8x8x8xf32>
    %cst_53 = arith.constant -1.000000e+09 : f32
    %113 = vector.broadcast %cst_53 : f32 to vector<8x8x8xf32>
    %114 = arith.select %112, %110, %113 : vector<8x8x8xi1>, vector<8x8x8xf32>
    %cst_54 = arith.constant dense<0xFF800000> : vector<8x8xf32>
    %115 = vector.multi_reduction <maximumf>, %114, %cst_54 [2] : vector<8x8x8xf32> to vector<8x8xf32>
    %116 = vector.shape_cast %115 : vector<8x8xf32> to vector<8x8x1xf32>
    %117 = vector.broadcast %116 : vector<8x8x1xf32> to vector<8x8x8xf32>
    %118 = arith.subf %114, %117 : vector<8x8x8xf32>
    %119 = math.exp %118 : vector<8x8x8xf32>
    %120 = arith.mulf %119, %42 : vector<8x8x8xf32>
    %cst_55 = arith.constant dense<0.000000e+00> : vector<8x8xf32>
    %121 = vector.multi_reduction <add>, %120, %cst_55 [2] : vector<8x8x8xf32> to vector<8x8xf32>
    %122 = vector.shape_cast %121 : vector<8x8xf32> to vector<8x8x1xf32>
    %cst_56 = arith.constant 9.99999968E-21 : f32
    %123 = vector.broadcast %cst_56 : f32 to vector<8x8x1xf32>
    %124 = arith.addf %122, %123 : vector<8x8x1xf32>
    %125 = tpu.reciprocal %124 {approx = true} : vector<8x8x1xf32> -> vector<8x8x1xf32>
    %126 = vector.broadcast %125 : vector<8x8x1xf32> to vector<8x8x8xf32>
    %127 = arith.mulf %120, %126 : vector<8x8x8xf32>
    %128 = arith.truncf %127 : vector<8x8x8xf32> to vector<8x8x8xbf16>
    "tpu.trace_start"() <{level = 10 : i32, message = "bqk,bkd->bqd"}> : () -> ()
    %cst_57 = arith.constant dense<0.000000e+00> : vector<8x8x8xf32>
    %129 = tpu.matmul %128, %83, %cst_57 {dimension_numbers = #tpu.dot_dimension_numbers<[2], [1], [1], [2], [0, 0, 0, 1, 1, 2], [0], [0]>} : vector<8x8x8xbf16>, vector<8x8x8xbf16>, vector<8x8x8xf32> -> vector<8x8x8xf32>
    "tpu.trace_stop"() : () -> ()
    %130 = vector.shape_cast %129 : vector<8x8x8xf32> to vector<2x4x8x8xf32>
    %131 = tpu.transpose %130, [0, 2, 1, 3] : vector<2x4x8x8xf32> -> vector<2x8x4x8xf32>
    %132 = vector.shape_cast %131 : vector<2x8x4x8xf32> to vector<16x32xf32>
    %133 = arith.truncf %132 : vector<16x32xf32> to vector<16x32xbf16>
    %c0_58 = arith.constant 0 : index
    %c0_59 = arith.constant 0 : index
    %c0_60 = arith.constant 0 : index
    %134 = vector.load %arg15[%c0_58, %c0_59, %c0_60] : memref<2x32x32xbf16, #tpu.memory_space<vmem>>, vector<1x32x32xbf16>
    %135 = vector.shape_cast %134 : vector<1x32x32xbf16> to vector<32x32xbf16>
    %cst_61 = arith.constant dense<0.000000e+00> : vector<16x32xf32>
    %136 = tpu.matmul %133, %135, %cst_61 {dimension_numbers = #tpu.dot_dimension_numbers<[1], [0], [0], [1], [0, 0, 1, 1], [], []>} : vector<16x32xbf16>, vector<32x32xbf16>, vector<16x32xf32> -> vector<16x32xf32>
    %c0_62 = arith.constant 0 : index
    %c0_63 = arith.constant 0 : index
    %c0_64 = arith.constant 0 : index
    %137 = vector.load %arg16[%c0_62, %c0_63, %c0_64] : memref<2x1x32xf32, #tpu.memory_space<vmem>>, vector<1x1x32xf32>
    %138 = vector.shape_cast %137 : vector<1x1x32xf32> to vector<1x32xf32>
    %139 = vector.broadcast %138 : vector<1x32xf32> to vector<16x32xf32>
    %140 = arith.addf %136, %139 : vector<16x32xf32>
    %141 = arith.addf %140, %35 : vector<16x32xf32>
    %c0_65 = arith.constant 0 : index
    %c0_66 = arith.constant 0 : index
    %c0_67 = arith.constant 0 : index
    %142 = vector.load %arg17[%c0_65, %c0_66, %c0_67] : memref<2x1x32xf32, #tpu.memory_space<vmem>>, vector<1x1x32xf32>
    %143 = vector.shape_cast %142 : vector<1x1x32xf32> to vector<1x32xf32>
    %c0_68 = arith.constant 0 : index
    %c0_69 = arith.constant 0 : index
    %c0_70 = arith.constant 0 : index
    %144 = vector.load %arg18[%c0_68, %c0_69, %c0_70] : memref<2x1x32xf32, #tpu.memory_space<vmem>>, vector<1x1x32xf32>
    %145 = vector.shape_cast %144 : vector<1x1x32xf32> to vector<1x32xf32>
    %cst_71 = arith.constant dense<0.000000e+00> : vector<16xf32>
    %146 = vector.multi_reduction <add>, %141, %cst_71 [1] : vector<16x32xf32> to vector<16xf32>
    %147 = vector.shape_cast %146 : vector<16xf32> to vector<16x1xf32>
    %cst_72 = arith.constant 3.200000e+01 : f32
    %148 = vector.broadcast %cst_72 : f32 to vector<16x1xf32>
    %149 = arith.divf %147, %148 : vector<16x1xf32>
    %150 = vector.broadcast %149 : vector<16x1xf32> to vector<16x32xf32>
    %151 = arith.subf %141, %150 : vector<16x32xf32>
    %152 = arith.mulf %151, %151 : vector<16x32xf32>
    %cst_73 = arith.constant dense<0.000000e+00> : vector<16xf32>
    %153 = vector.multi_reduction <add>, %152, %cst_73 [1] : vector<16x32xf32> to vector<16xf32>
    %154 = vector.shape_cast %153 : vector<16xf32> to vector<16x1xf32>
    %cst_74 = arith.constant 3.200000e+01 : f32
    %155 = vector.broadcast %cst_74 : f32 to vector<16x1xf32>
    %156 = arith.divf %154, %155 : vector<16x1xf32>
    %157 = vector.broadcast %149 : vector<16x1xf32> to vector<16x32xf32>
    %158 = arith.subf %141, %157 : vector<16x32xf32>
    %cst_75 = arith.constant 1.000000e-07 : f32
    %159 = vector.broadcast %cst_75 : f32 to vector<16x1xf32>
    %160 = arith.addf %156, %159 : vector<16x1xf32>
    %161 = math.rsqrt %160 : vector<16x1xf32>
    %162 = vector.broadcast %161 : vector<16x1xf32> to vector<16x32xf32>
    %163 = arith.mulf %158, %162 : vector<16x32xf32>
    %164 = vector.broadcast %143 : vector<1x32xf32> to vector<16x32xf32>
    %165 = arith.mulf %163, %164 : vector<16x32xf32>
    %166 = vector.broadcast %145 : vector<1x32xf32> to vector<16x32xf32>
    %167 = arith.addf %165, %166 : vector<16x32xf32>
    %168 = arith.truncf %167 : vector<16x32xf32> to vector<16x32xbf16>
    %c0_76 = arith.constant 0 : index
    %c0_77 = arith.constant 0 : index
    %c0_78 = arith.constant 0 : index
    %169 = vector.load %arg19[%c0_76, %c0_77, %c0_78] : memref<2x32x64xbf16, #tpu.memory_space<vmem>>, vector<1x32x64xbf16>
    %170 = vector.shape_cast %169 : vector<1x32x64xbf16> to vector<32x64xbf16>
    %cst_79 = arith.constant dense<0.000000e+00> : vector<16x64xf32>
    %171 = tpu.matmul %168, %170, %cst_79 {dimension_numbers = #tpu.dot_dimension_numbers<[1], [0], [0], [1], [0, 0, 1, 1], [], []>} : vector<16x32xbf16>, vector<32x64xbf16>, vector<16x64xf32> -> vector<16x64xf32>
    %c0_80 = arith.constant 0 : index
    %c0_81 = arith.constant 0 : index
    %c0_82 = arith.constant 0 : index
    %172 = vector.load %arg20[%c0_80, %c0_81, %c0_82] : memref<2x1x64xf32, #tpu.memory_space<vmem>>, vector<1x1x64xf32>
    %173 = vector.shape_cast %172 : vector<1x1x64xf32> to vector<1x64xf32>
    %174 = vector.broadcast %173 : vector<1x64xf32> to vector<16x64xf32>
    %175 = arith.addf %171, %174 : vector<16x64xf32>
    %176 = arith.mulf %175, %175 : vector<16x64xf32>
    %177 = arith.mulf %175, %176 : vector<16x64xf32>
    %cst_83 = arith.constant 4.471500e-02 : f32
    %178 = vector.broadcast %cst_83 : f32 to vector<16x64xf32>
    %179 = arith.mulf %178, %177 : vector<16x64xf32>
    %180 = arith.addf %175, %179 : vector<16x64xf32>
    %cst_84 = arith.constant 0.797884583 : f32
    %181 = vector.broadcast %cst_84 : f32 to vector<16x64xf32>
    %182 = arith.mulf %181, %180 : vector<16x64xf32>
    %183 = math.tanh %182 : vector<16x64xf32>
    %cst_85 = arith.constant 1.000000e+00 : f32
    %184 = vector.broadcast %cst_85 : f32 to vector<16x64xf32>
    %185 = arith.addf %184, %183 : vector<16x64xf32>
    %cst_86 = arith.constant 5.000000e-01 : f32
    %186 = vector.broadcast %cst_86 : f32 to vector<16x64xf32>
    %187 = arith.mulf %186, %185 : vector<16x64xf32>
    %188 = arith.mulf %175, %187 : vector<16x64xf32>
    %189 = arith.truncf %188 : vector<16x64xf32> to vector<16x64xbf16>
    %c0_87 = arith.constant 0 : index
    %c0_88 = arith.constant 0 : index
    %c0_89 = arith.constant 0 : index
    %190 = vector.load %arg21[%c0_87, %c0_88, %c0_89] : memref<2x64x32xbf16, #tpu.memory_space<vmem>>, vector<1x64x32xbf16>
    %191 = vector.shape_cast %190 : vector<1x64x32xbf16> to vector<64x32xbf16>
    %cst_90 = arith.constant dense<0.000000e+00> : vector<16x32xf32>
    %192 = tpu.matmul %189, %191, %cst_90 {dimension_numbers = #tpu.dot_dimension_numbers<[1], [0], [0], [1], [0, 0, 1, 1], [], []>} : vector<16x64xbf16>, vector<64x32xbf16>, vector<16x32xf32> -> vector<16x32xf32>
    %c0_91 = arith.constant 0 : index
    %c0_92 = arith.constant 0 : index
    %c0_93 = arith.constant 0 : index
    %193 = vector.load %arg22[%c0_91, %c0_92, %c0_93] : memref<2x1x32xf32, #tpu.memory_space<vmem>>, vector<1x1x32xf32>
    %194 = vector.shape_cast %193 : vector<1x1x32xf32> to vector<1x32xf32>
    %195 = vector.broadcast %194 : vector<1x32xf32> to vector<16x32xf32>
    %196 = arith.addf %192, %195 : vector<16x32xf32>
    %197 = arith.addf %196, %167 : vector<16x32xf32>
    %c0_94 = arith.constant 0 : index
    %c0_95 = arith.constant 0 : index
    %c0_96 = arith.constant 0 : index
    %198 = vector.load %arg23[%c0_94, %c0_95, %c0_96] : memref<2x1x32xf32, #tpu.memory_space<vmem>>, vector<1x1x32xf32>
    %199 = vector.shape_cast %198 : vector<1x1x32xf32> to vector<1x32xf32>
    %c0_97 = arith.constant 0 : index
    %c0_98 = arith.constant 0 : index
    %c0_99 = arith.constant 0 : index
    %200 = vector.load %arg24[%c0_97, %c0_98, %c0_99] : memref<2x1x32xf32, #tpu.memory_space<vmem>>, vector<1x1x32xf32>
    %201 = vector.shape_cast %200 : vector<1x1x32xf32> to vector<1x32xf32>
    %cst_100 = arith.constant dense<0.000000e+00> : vector<16xf32>
    %202 = vector.multi_reduction <add>, %197, %cst_100 [1] : vector<16x32xf32> to vector<16xf32>
    %203 = vector.shape_cast %202 : vector<16xf32> to vector<16x1xf32>
    %cst_101 = arith.constant 3.200000e+01 : f32
    %204 = vector.broadcast %cst_101 : f32 to vector<16x1xf32>
    %205 = arith.divf %203, %204 : vector<16x1xf32>
    %206 = vector.broadcast %205 : vector<16x1xf32> to vector<16x32xf32>
    %207 = arith.subf %197, %206 : vector<16x32xf32>
    %208 = arith.mulf %207, %207 : vector<16x32xf32>
    %cst_102 = arith.constant dense<0.000000e+00> : vector<16xf32>
    %209 = vector.multi_reduction <add>, %208, %cst_102 [1] : vector<16x32xf32> to vector<16xf32>
    %210 = vector.shape_cast %209 : vector<16xf32> to vector<16x1xf32>
    %cst_103 = arith.constant 3.200000e+01 : f32
    %211 = vector.broadcast %cst_103 : f32 to vector<16x1xf32>
    %212 = arith.divf %210, %211 : vector<16x1xf32>
    %213 = vector.broadcast %205 : vector<16x1xf32> to vector<16x32xf32>
    %214 = arith.subf %197, %213 : vector<16x32xf32>
    %cst_104 = arith.constant 1.000000e-07 : f32
    %215 = vector.broadcast %cst_104 : f32 to vector<16x1xf32>
    %216 = arith.addf %212, %215 : vector<16x1xf32>
    %217 = math.rsqrt %216 : vector<16x1xf32>
    %218 = vector.broadcast %217 : vector<16x1xf32> to vector<16x32xf32>
    %219 = arith.mulf %214, %218 : vector<16x32xf32>
    %220 = vector.broadcast %199 : vector<1x32xf32> to vector<16x32xf32>
    %221 = arith.mulf %219, %220 : vector<16x32xf32>
    %222 = vector.broadcast %201 : vector<1x32xf32> to vector<16x32xf32>
    %223 = arith.addf %221, %222 : vector<16x32xf32>
    %224 = arith.truncf %223 : vector<16x32xf32> to vector<16x32xbf16>
    %c1 = arith.constant 1 : index
    %c0_105 = arith.constant 0 : index
    %c0_106 = arith.constant 0 : index
    %225 = vector.load %arg9[%c1, %c0_105, %c0_106] : memref<2x32x96xbf16, #tpu.memory_space<vmem>>, vector<1x32x96xbf16>
    %226 = vector.shape_cast %225 : vector<1x32x96xbf16> to vector<32x96xbf16>
    %cst_107 = arith.constant dense<0.000000e+00> : vector<16x96xf32>
    %227 = tpu.matmul %224, %226, %cst_107 {dimension_numbers = #tpu.dot_dimension_numbers<[1], [0], [0], [1], [0, 0, 1, 1], [], []>} : vector<16x32xbf16>, vector<32x96xbf16>, vector<16x96xf32> -> vector<16x96xf32>
    %228 = vector.extract_strided_slice %227 {offsets = [0, 0], sizes = [16, 32], strides = [1, 1]} : vector<16x96xf32> to vector<16x32xf32>
    %c1_108 = arith.constant 1 : index
    %c0_109 = arith.constant 0 : index
    %c0_110 = arith.constant 0 : index
    %229 = vector.load %arg10[%c1_108, %c0_109, %c0_110] : memref<2x1x32xf32, #tpu.memory_space<vmem>>, vector<1x1x32xf32>
    %230 = vector.shape_cast %229 : vector<1x1x32xf32> to vector<1x32xf32>
    %231 = vector.broadcast %230 : vector<1x32xf32> to vector<16x32xf32>
    %232 = arith.addf %228, %231 : vector<16x32xf32>
    %cst_111 = arith.constant 0.204124153 : f32
    %233 = vector.broadcast %cst_111 : f32 to vector<16x32xf32>
    %234 = arith.mulf %232, %233 : vector<16x32xf32>
    %235 = vector.extract_strided_slice %227 {offsets = [0, 32], sizes = [16, 32], strides = [1, 1]} : vector<16x96xf32> to vector<16x32xf32>
    %236 = vector.extract_strided_slice %227 {offsets = [0, 64], sizes = [16, 32], strides = [1, 1]} : vector<16x96xf32> to vector<16x32xf32>
    %c1_112 = arith.constant 1 : index
    %c0_113 = arith.constant 0 : index
    %c0_114 = arith.constant 0 : index
    %237 = vector.load %arg11[%c1_112, %c0_113, %c0_114] : memref<2x1x32xf32, #tpu.memory_space<vmem>>, vector<1x1x32xf32>
    %238 = vector.shape_cast %237 : vector<1x1x32xf32> to vector<1x32xf32>
    %239 = vector.broadcast %238 : vector<1x32xf32> to vector<16x32xf32>
    %240 = arith.addf %236, %239 : vector<16x32xf32>
    %c1_115 = arith.constant 1 : index
    %c0_116 = arith.constant 0 : index
    %c0_117 = arith.constant 0 : index
    %241 = vector.load %arg12[%c1_115, %c0_116, %c0_117] : memref<2x32x32xbf16, #tpu.memory_space<vmem>>, vector<1x32x32xbf16>
    %242 = vector.shape_cast %241 : vector<1x32x32xbf16> to vector<32x32xbf16>
    %cst_118 = arith.constant dense<0.000000e+00> : vector<16x32xf32>
    %243 = tpu.matmul %4, %242, %cst_118 {dimension_numbers = #tpu.dot_dimension_numbers<[1], [0], [0], [1], [0, 0, 1, 1], [], []>} : vector<16x32xbf16>, vector<32x32xbf16>, vector<16x32xf32> -> vector<16x32xf32>
    %c1_119 = arith.constant 1 : index
    %c0_120 = arith.constant 0 : index
    %c0_121 = arith.constant 0 : index
    %244 = vector.load %arg13[%c1_119, %c0_120, %c0_121] : memref<2x32x32xbf16, #tpu.memory_space<vmem>>, vector<1x32x32xbf16>
    %245 = vector.shape_cast %244 : vector<1x32x32xbf16> to vector<32x32xbf16>
    %cst_122 = arith.constant dense<0.000000e+00> : vector<16x32xf32>
    %246 = tpu.matmul %4, %245, %cst_122 {dimension_numbers = #tpu.dot_dimension_numbers<[1], [0], [0], [1], [0, 0, 1, 1], [], []>} : vector<16x32xbf16>, vector<32x32xbf16>, vector<16x32xf32> -> vector<16x32xf32>
    %c1_123 = arith.constant 1 : index
    %c0_124 = arith.constant 0 : index
    %c0_125 = arith.constant 0 : index
    %247 = vector.load %arg14[%c1_123, %c0_124, %c0_125] : memref<2x1x32xf32, #tpu.memory_space<vmem>>, vector<1x1x32xf32>
    %248 = vector.shape_cast %247 : vector<1x1x32xf32> to vector<1x32xf32>
    %249 = vector.broadcast %248 : vector<1x32xf32> to vector<16x32xf32>
    %250 = arith.addf %246, %249 : vector<16x32xf32>
    %cst_126 = arith.constant 0.204124153 : f32
    %251 = vector.broadcast %cst_126 : f32 to vector<16x32xf32>
    %252 = arith.mulf %250, %251 : vector<16x32xf32>
    %253 = vector.shape_cast %234 : vector<16x32xf32> to vector<2x8x4x8xf32>
    %254 = tpu.transpose %253, [0, 2, 1, 3] : vector<2x8x4x8xf32> -> vector<2x4x8x8xf32>
    %255 = vector.shape_cast %254 : vector<2x4x8x8xf32> to vector<8x8x8xf32>
    %256 = arith.truncf %255 : vector<8x8x8xf32> to vector<8x8x8xbf16>
    %257 = vector.shape_cast %235 : vector<16x32xf32> to vector<2x8x4x8xf32>
    %258 = tpu.transpose %257, [0, 2, 1, 3] : vector<2x8x4x8xf32> -> vector<2x4x8x8xf32>
    %259 = vector.shape_cast %258 : vector<2x4x8x8xf32> to vector<8x8x8xf32>
    %260 = arith.truncf %259 : vector<8x8x8xf32> to vector<8x8x8xbf16>
    %261 = vector.shape_cast %240 : vector<16x32xf32> to vector<2x8x4x8xf32>
    %262 = tpu.transpose %261, [0, 2, 1, 3] : vector<2x8x4x8xf32> -> vector<2x4x8x8xf32>
    %263 = vector.shape_cast %262 : vector<2x4x8x8xf32> to vector<8x8x8xf32>
    %264 = arith.truncf %263 : vector<8x8x8xf32> to vector<8x8x8xbf16>
    %265 = vector.shape_cast %243 : vector<16x32xf32> to vector<16x4x8xf32>
    %266 = tpu.transpose %265, [1, 0, 2] : vector<16x4x8xf32> -> vector<4x16x8xf32>
    %267 = arith.truncf %266 : vector<4x16x8xf32> to vector<4x16x8xbf16>
    %268 = vector.shape_cast %252 : vector<16x32xf32> to vector<16x4x8xf32>
    %269 = tpu.transpose %268, [1, 0, 2] : vector<16x4x8xf32> -> vector<4x16x8xf32>
    %270 = arith.truncf %269 : vector<4x16x8xf32> to vector<4x16x8xbf16>
    %271 = vector.shape_cast %267 : vector<4x16x8xbf16> to vector<1x4x16x8xbf16>
    %272 = vector.shape_cast %271 : vector<1x4x16x8xbf16> to vector<1x4x16x8xbf16>
    %273 = vector.broadcast %272 : vector<1x4x16x8xbf16> to vector<2x4x16x8xbf16>
    %274 = vector.shape_cast %273 : vector<2x4x16x8xbf16> to vector<8x16x8xbf16>
    %275 = vector.shape_cast %270 : vector<4x16x8xbf16> to vector<1x4x16x8xbf16>
    %276 = vector.shape_cast %275 : vector<1x4x16x8xbf16> to vector<1x4x16x8xbf16>
    %277 = vector.broadcast %276 : vector<1x4x16x8xbf16> to vector<2x4x16x8xbf16>
    %278 = vector.shape_cast %277 : vector<2x4x16x8xbf16> to vector<8x16x8xbf16>
    "tpu.trace_start"() <{level = 10 : i32, message = "bqd,bkd->bqk"}> : () -> ()
    %cst_127 = arith.constant dense<0.000000e+00> : vector<8x8x8xf32>
    %279 = tpu.matmul %256, %260, %cst_127 {dimension_numbers = #tpu.dot_dimension_numbers<[2], [2], [1], [1], [0, 0, 0, 1, 1, 1], [0], [0]>} : vector<8x8x8xbf16>, vector<8x8x8xbf16>, vector<8x8x8xf32> -> vector<8x8x8xf32>
    "tpu.trace_stop"() : () -> ()
    "tpu.trace_start"() <{level = 10 : i32, message = "bqd,bpd->bqp"}> : () -> ()
    %cst_128 = arith.constant dense<0.000000e+00> : vector<8x8x16xf32>
    %280 = tpu.matmul %256, %274, %cst_128 {dimension_numbers = #tpu.dot_dimension_numbers<[2], [2], [1], [1], [0, 0, 0, 1, 1, 1], [0], [0]>} : vector<8x8x8xbf16>, vector<8x16x8xbf16>, vector<8x8x16xf32> -> vector<8x8x16xf32>
    "tpu.trace_stop"() : () -> ()
    "tpu.trace_start"() <{level = 10 : i32, message = "bkd,bpd->bkp"}> : () -> ()
    %cst_129 = arith.constant dense<0.000000e+00> : vector<8x8x16xf32>
    %281 = tpu.matmul %260, %278, %cst_129 {dimension_numbers = #tpu.dot_dimension_numbers<[2], [2], [1], [1], [0, 0, 0, 1, 1, 1], [0], [0]>} : vector<8x8x8xbf16>, vector<8x16x8xbf16>, vector<8x8x16xf32> -> vector<8x8x16xf32>
    "tpu.trace_stop"() : () -> ()
    %282 = tpu.transpose %280, [1, 0, 2] : vector<8x8x16xf32> -> vector<8x8x16xf32>
    %283 = arith.truncf %282 : vector<8x8x16xf32> to vector<8x8x16xbf16>
    "tpu.trace_start"() <{level = 10 : i32, message = "qbp,qkp->qbk"}> : () -> ()
    %cst_130 = arith.constant dense<0.000000e+00> : vector<8x8x8xf32>
    %284 = tpu.matmul %283, %2, %cst_130 {dimension_numbers = #tpu.dot_dimension_numbers<[2], [2], [1], [1], [0, 0, 0, 1, 1, 1], [0], [0]>} : vector<8x8x16xbf16>, vector<8x8x16xbf16>, vector<8x8x8xf32> -> vector<8x8x8xf32>
    "tpu.trace_stop"() : () -> ()
    %285 = tpu.transpose %284, [1, 0, 2] : vector<8x8x8xf32> -> vector<8x8x8xf32>
    %286 = tpu.transpose %281, [1, 0, 2] : vector<8x8x16xf32> -> vector<8x8x16xf32>
    %287 = arith.truncf %286 : vector<8x8x16xf32> to vector<8x8x16xbf16>
    "tpu.trace_start"() <{level = 10 : i32, message = "kbp,kqp->kbq"}> : () -> ()
    %cst_131 = arith.constant dense<0.000000e+00> : vector<8x8x8xf32>
    %288 = tpu.matmul %287, %3, %cst_131 {dimension_numbers = #tpu.dot_dimension_numbers<[2], [2], [1], [1], [0, 0, 0, 1, 1, 1], [0], [0]>} : vector<8x8x16xbf16>, vector<8x8x16xbf16>, vector<8x8x8xf32> -> vector<8x8x8xf32>
    "tpu.trace_stop"() : () -> ()
    %289 = tpu.transpose %288, [1, 2, 0] : vector<8x8x8xf32> -> vector<8x8x8xf32>
    %290 = arith.addf %279, %285 : vector<8x8x8xf32>
    %291 = arith.addf %290, %289 : vector<8x8x8xf32>
    %cst_132 = arith.constant 0.000000e+00 : f32
    %292 = vector.broadcast %cst_132 : f32 to vector<8x8x8xf32>
    %293 = arith.cmpf ogt, %42, %292 : vector<8x8x8xf32>
    %cst_133 = arith.constant -1.000000e+09 : f32
    %294 = vector.broadcast %cst_133 : f32 to vector<8x8x8xf32>
    %295 = arith.select %293, %291, %294 : vector<8x8x8xi1>, vector<8x8x8xf32>
    %cst_134 = arith.constant dense<0xFF800000> : vector<8x8xf32>
    %296 = vector.multi_reduction <maximumf>, %295, %cst_134 [2] : vector<8x8x8xf32> to vector<8x8xf32>
    %297 = vector.shape_cast %296 : vector<8x8xf32> to vector<8x8x1xf32>
    %298 = vector.broadcast %297 : vector<8x8x1xf32> to vector<8x8x8xf32>
    %299 = arith.subf %295, %298 : vector<8x8x8xf32>
    %300 = math.exp %299 : vector<8x8x8xf32>
    %301 = arith.mulf %300, %42 : vector<8x8x8xf32>
    %cst_135 = arith.constant dense<0.000000e+00> : vector<8x8xf32>
    %302 = vector.multi_reduction <add>, %301, %cst_135 [2] : vector<8x8x8xf32> to vector<8x8xf32>
    %303 = vector.shape_cast %302 : vector<8x8xf32> to vector<8x8x1xf32>
    %cst_136 = arith.constant 9.99999968E-21 : f32
    %304 = vector.broadcast %cst_136 : f32 to vector<8x8x1xf32>
    %305 = arith.addf %303, %304 : vector<8x8x1xf32>
    %306 = tpu.reciprocal %305 {approx = true} : vector<8x8x1xf32> -> vector<8x8x1xf32>
    %307 = vector.broadcast %306 : vector<8x8x1xf32> to vector<8x8x8xf32>
    %308 = arith.mulf %301, %307 : vector<8x8x8xf32>
    %309 = arith.truncf %308 : vector<8x8x8xf32> to vector<8x8x8xbf16>
    "tpu.trace_start"() <{level = 10 : i32, message = "bqk,bkd->bqd"}> : () -> ()
    %cst_137 = arith.constant dense<0.000000e+00> : vector<8x8x8xf32>
    %310 = tpu.matmul %309, %264, %cst_137 {dimension_numbers = #tpu.dot_dimension_numbers<[2], [1], [1], [2], [0, 0, 0, 1, 1, 2], [0], [0]>} : vector<8x8x8xbf16>, vector<8x8x8xbf16>, vector<8x8x8xf32> -> vector<8x8x8xf32>
    "tpu.trace_stop"() : () -> ()
    %311 = vector.shape_cast %310 : vector<8x8x8xf32> to vector<2x4x8x8xf32>
    %312 = tpu.transpose %311, [0, 2, 1, 3] : vector<2x4x8x8xf32> -> vector<2x8x4x8xf32>
    %313 = vector.shape_cast %312 : vector<2x8x4x8xf32> to vector<16x32xf32>
    %314 = arith.truncf %313 : vector<16x32xf32> to vector<16x32xbf16>
    %c1_138 = arith.constant 1 : index
    %c0_139 = arith.constant 0 : index
    %c0_140 = arith.constant 0 : index
    %315 = vector.load %arg15[%c1_138, %c0_139, %c0_140] : memref<2x32x32xbf16, #tpu.memory_space<vmem>>, vector<1x32x32xbf16>
    %316 = vector.shape_cast %315 : vector<1x32x32xbf16> to vector<32x32xbf16>
    %cst_141 = arith.constant dense<0.000000e+00> : vector<16x32xf32>
    %317 = tpu.matmul %314, %316, %cst_141 {dimension_numbers = #tpu.dot_dimension_numbers<[1], [0], [0], [1], [0, 0, 1, 1], [], []>} : vector<16x32xbf16>, vector<32x32xbf16>, vector<16x32xf32> -> vector<16x32xf32>
    %c1_142 = arith.constant 1 : index
    %c0_143 = arith.constant 0 : index
    %c0_144 = arith.constant 0 : index
    %318 = vector.load %arg16[%c1_142, %c0_143, %c0_144] : memref<2x1x32xf32, #tpu.memory_space<vmem>>, vector<1x1x32xf32>
    %319 = vector.shape_cast %318 : vector<1x1x32xf32> to vector<1x32xf32>
    %320 = vector.broadcast %319 : vector<1x32xf32> to vector<16x32xf32>
    %321 = arith.addf %317, %320 : vector<16x32xf32>
    %322 = arith.addf %321, %223 : vector<16x32xf32>
    %c1_145 = arith.constant 1 : index
    %c0_146 = arith.constant 0 : index
    %c0_147 = arith.constant 0 : index
    %323 = vector.load %arg17[%c1_145, %c0_146, %c0_147] : memref<2x1x32xf32, #tpu.memory_space<vmem>>, vector<1x1x32xf32>
    %324 = vector.shape_cast %323 : vector<1x1x32xf32> to vector<1x32xf32>
    %c1_148 = arith.constant 1 : index
    %c0_149 = arith.constant 0 : index
    %c0_150 = arith.constant 0 : index
    %325 = vector.load %arg18[%c1_148, %c0_149, %c0_150] : memref<2x1x32xf32, #tpu.memory_space<vmem>>, vector<1x1x32xf32>
    %326 = vector.shape_cast %325 : vector<1x1x32xf32> to vector<1x32xf32>
    %cst_151 = arith.constant dense<0.000000e+00> : vector<16xf32>
    %327 = vector.multi_reduction <add>, %322, %cst_151 [1] : vector<16x32xf32> to vector<16xf32>
    %328 = vector.shape_cast %327 : vector<16xf32> to vector<16x1xf32>
    %cst_152 = arith.constant 3.200000e+01 : f32
    %329 = vector.broadcast %cst_152 : f32 to vector<16x1xf32>
    %330 = arith.divf %328, %329 : vector<16x1xf32>
    %331 = vector.broadcast %330 : vector<16x1xf32> to vector<16x32xf32>
    %332 = arith.subf %322, %331 : vector<16x32xf32>
    %333 = arith.mulf %332, %332 : vector<16x32xf32>
    %cst_153 = arith.constant dense<0.000000e+00> : vector<16xf32>
    %334 = vector.multi_reduction <add>, %333, %cst_153 [1] : vector<16x32xf32> to vector<16xf32>
    %335 = vector.shape_cast %334 : vector<16xf32> to vector<16x1xf32>
    %cst_154 = arith.constant 3.200000e+01 : f32
    %336 = vector.broadcast %cst_154 : f32 to vector<16x1xf32>
    %337 = arith.divf %335, %336 : vector<16x1xf32>
    %338 = vector.broadcast %330 : vector<16x1xf32> to vector<16x32xf32>
    %339 = arith.subf %322, %338 : vector<16x32xf32>
    %cst_155 = arith.constant 1.000000e-07 : f32
    %340 = vector.broadcast %cst_155 : f32 to vector<16x1xf32>
    %341 = arith.addf %337, %340 : vector<16x1xf32>
    %342 = math.rsqrt %341 : vector<16x1xf32>
    %343 = vector.broadcast %342 : vector<16x1xf32> to vector<16x32xf32>
    %344 = arith.mulf %339, %343 : vector<16x32xf32>
    %345 = vector.broadcast %324 : vector<1x32xf32> to vector<16x32xf32>
    %346 = arith.mulf %344, %345 : vector<16x32xf32>
    %347 = vector.broadcast %326 : vector<1x32xf32> to vector<16x32xf32>
    %348 = arith.addf %346, %347 : vector<16x32xf32>
    %349 = arith.truncf %348 : vector<16x32xf32> to vector<16x32xbf16>
    %c1_156 = arith.constant 1 : index
    %c0_157 = arith.constant 0 : index
    %c0_158 = arith.constant 0 : index
    %350 = vector.load %arg19[%c1_156, %c0_157, %c0_158] : memref<2x32x64xbf16, #tpu.memory_space<vmem>>, vector<1x32x64xbf16>
    %351 = vector.shape_cast %350 : vector<1x32x64xbf16> to vector<32x64xbf16>
    %cst_159 = arith.constant dense<0.000000e+00> : vector<16x64xf32>
    %352 = tpu.matmul %349, %351, %cst_159 {dimension_numbers = #tpu.dot_dimension_numbers<[1], [0], [0], [1], [0, 0, 1, 1], [], []>} : vector<16x32xbf16>, vector<32x64xbf16>, vector<16x64xf32> -> vector<16x64xf32>
    %c1_160 = arith.constant 1 : index
    %c0_161 = arith.constant 0 : index
    %c0_162 = arith.constant 0 : index
    %353 = vector.load %arg20[%c1_160, %c0_161, %c0_162] : memref<2x1x64xf32, #tpu.memory_space<vmem>>, vector<1x1x64xf32>
    %354 = vector.shape_cast %353 : vector<1x1x64xf32> to vector<1x64xf32>
    %355 = vector.broadcast %354 : vector<1x64xf32> to vector<16x64xf32>
    %356 = arith.addf %352, %355 : vector<16x64xf32>
    %357 = arith.mulf %356, %356 : vector<16x64xf32>
    %358 = arith.mulf %356, %357 : vector<16x64xf32>
    %cst_163 = arith.constant 4.471500e-02 : f32
    %359 = vector.broadcast %cst_163 : f32 to vector<16x64xf32>
    %360 = arith.mulf %359, %358 : vector<16x64xf32>
    %361 = arith.addf %356, %360 : vector<16x64xf32>
    %cst_164 = arith.constant 0.797884583 : f32
    %362 = vector.broadcast %cst_164 : f32 to vector<16x64xf32>
    %363 = arith.mulf %362, %361 : vector<16x64xf32>
    %364 = math.tanh %363 : vector<16x64xf32>
    %cst_165 = arith.constant 1.000000e+00 : f32
    %365 = vector.broadcast %cst_165 : f32 to vector<16x64xf32>
    %366 = arith.addf %365, %364 : vector<16x64xf32>
    %cst_166 = arith.constant 5.000000e-01 : f32
    %367 = vector.broadcast %cst_166 : f32 to vector<16x64xf32>
    %368 = arith.mulf %367, %366 : vector<16x64xf32>
    %369 = arith.mulf %356, %368 : vector<16x64xf32>
    %370 = arith.truncf %369 : vector<16x64xf32> to vector<16x64xbf16>
    %c1_167 = arith.constant 1 : index
    %c0_168 = arith.constant 0 : index
    %c0_169 = arith.constant 0 : index
    %371 = vector.load %arg21[%c1_167, %c0_168, %c0_169] : memref<2x64x32xbf16, #tpu.memory_space<vmem>>, vector<1x64x32xbf16>
    %372 = vector.shape_cast %371 : vector<1x64x32xbf16> to vector<64x32xbf16>
    %cst_170 = arith.constant dense<0.000000e+00> : vector<16x32xf32>
    %373 = tpu.matmul %370, %372, %cst_170 {dimension_numbers = #tpu.dot_dimension_numbers<[1], [0], [0], [1], [0, 0, 1, 1], [], []>} : vector<16x64xbf16>, vector<64x32xbf16>, vector<16x32xf32> -> vector<16x32xf32>
    %c1_171 = arith.constant 1 : index
    %c0_172 = arith.constant 0 : index
    %c0_173 = arith.constant 0 : index
    %374 = vector.load %arg22[%c1_171, %c0_172, %c0_173] : memref<2x1x32xf32, #tpu.memory_space<vmem>>, vector<1x1x32xf32>
    %375 = vector.shape_cast %374 : vector<1x1x32xf32> to vector<1x32xf32>
    %376 = vector.broadcast %375 : vector<1x32xf32> to vector<16x32xf32>
    %377 = arith.addf %373, %376 : vector<16x32xf32>
    %378 = arith.addf %377, %348 : vector<16x32xf32>
    %c1_174 = arith.constant 1 : index
    %c0_175 = arith.constant 0 : index
    %c0_176 = arith.constant 0 : index
    %379 = vector.load %arg23[%c1_174, %c0_175, %c0_176] : memref<2x1x32xf32, #tpu.memory_space<vmem>>, vector<1x1x32xf32>
    %380 = vector.shape_cast %379 : vector<1x1x32xf32> to vector<1x32xf32>
    %c1_177 = arith.constant 1 : index
    %c0_178 = arith.constant 0 : index
    %c0_179 = arith.constant 0 : index
    %381 = vector.load %arg24[%c1_177, %c0_178, %c0_179] : memref<2x1x32xf32, #tpu.memory_space<vmem>>, vector<1x1x32xf32>
    %382 = vector.shape_cast %381 : vector<1x1x32xf32> to vector<1x32xf32>
    %cst_180 = arith.constant dense<0.000000e+00> : vector<16xf32>
    %383 = vector.multi_reduction <add>, %378, %cst_180 [1] : vector<16x32xf32> to vector<16xf32>
    %384 = vector.shape_cast %383 : vector<16xf32> to vector<16x1xf32>
    %cst_181 = arith.constant 3.200000e+01 : f32
    %385 = vector.broadcast %cst_181 : f32 to vector<16x1xf32>
    %386 = arith.divf %384, %385 : vector<16x1xf32>
    %387 = vector.broadcast %386 : vector<16x1xf32> to vector<16x32xf32>
    %388 = arith.subf %378, %387 : vector<16x32xf32>
    %389 = arith.mulf %388, %388 : vector<16x32xf32>
    %cst_182 = arith.constant dense<0.000000e+00> : vector<16xf32>
    %390 = vector.multi_reduction <add>, %389, %cst_182 [1] : vector<16x32xf32> to vector<16xf32>
    %391 = vector.shape_cast %390 : vector<16xf32> to vector<16x1xf32>
    %cst_183 = arith.constant 3.200000e+01 : f32
    %392 = vector.broadcast %cst_183 : f32 to vector<16x1xf32>
    %393 = arith.divf %391, %392 : vector<16x1xf32>
    %394 = vector.broadcast %386 : vector<16x1xf32> to vector<16x32xf32>
    %395 = arith.subf %378, %394 : vector<16x32xf32>
    %cst_184 = arith.constant 1.000000e-07 : f32
    %396 = vector.broadcast %cst_184 : f32 to vector<16x1xf32>
    %397 = arith.addf %393, %396 : vector<16x1xf32>
    %398 = math.rsqrt %397 : vector<16x1xf32>
    %399 = vector.broadcast %398 : vector<16x1xf32> to vector<16x32xf32>
    %400 = arith.mulf %395, %399 : vector<16x32xf32>
    %401 = vector.broadcast %380 : vector<1x32xf32> to vector<16x32xf32>
    %402 = arith.mulf %400, %401 : vector<16x32xf32>
    %403 = vector.broadcast %382 : vector<1x32xf32> to vector<16x32xf32>
    %404 = arith.addf %402, %403 : vector<16x32xf32>
    %405 = vector.shape_cast %404 : vector<16x32xf32> to vector<2x8x32xf32>
    %cst_185 = arith.constant dense<0.000000e+00> : vector<2x32xf32>
    %406 = vector.multi_reduction <add>, %405, %cst_185 [1] : vector<2x8x32xf32> to vector<2x32xf32>
    %cst_186 = arith.constant 1.250000e-01 : f32
    %407 = vector.broadcast %cst_186 : f32 to vector<2x32xf32>
    %408 = arith.mulf %406, %407 : vector<2x32xf32>
    %c0_187 = arith.constant 0 : index
    %c0_188 = arith.constant 0 : index
    %409 = vector.load %arg25[%c0_187, %c0_188] : memref<2x32xf32, #tpu.memory_space<vmem>>, vector<2x32xf32>
    tpu.vector_store %arg25[%c0_187, %c0_188], %408 {strides = array<i32>} : memref<2x32xf32, #tpu.memory_space<vmem>>, vector<2x32xf32>,
    return
  }
  func.func @transform_0(%arg0: i32) -> (i32, i32, i32) {
    %c0_i32 = arith.constant 0 : i32
    %c0_i32_0 = arith.constant 0 : i32
    %c0_i32_1 = arith.constant 0 : i32
    %c0_i32_2 = arith.constant 0 : i32
    return %c0_i32, %c0_i32_0, %c0_i32_1 : i32, i32, i32
  }
  func.func @transform_1(%arg0: i32) -> (i32, i32, i32) {
    %c0_i32 = arith.constant 0 : i32
    %c0_i32_0 = arith.constant 0 : i32
    %c0_i32_1 = arith.constant 0 : i32
    %c0_i32_2 = arith.constant 0 : i32
    return %c0_i32, %c0_i32_0, %c0_i32_1 : i32, i32, i32
  }
  func.func @transform_2(%arg0: i32) -> (i32, i32, i32) {
    %c0_i32 = arith.constant 0 : i32
    %c0_i32_0 = arith.constant 0 : i32
    %c0_i32_1 = arith.constant 0 : i32
    %c0_i32_2 = arith.constant 0 : i32
    return %c0_i32, %c0_i32_0, %c0_i32_1 : i32, i32, i32
  }
  func.func @transform_3(%arg0: i32) -> (i32, i32) {
    %c0_i32 = arith.constant 0 : i32
    %c0_i32_0 = arith.constant 0 : i32
    %c0_i32_1 = arith.constant 0 : i32
    return %c0_i32, %c0_i32_0 : i32, i32
  }
  func.func @transform_4(%arg0: i32) -> (i32, i32) {
    %c0_i32 = arith.constant 0 : i32
    %c0_i32_0 = arith.constant 0 : i32
    %c0_i32_1 = arith.constant 0 : i32
    return %c0_i32, %c0_i32_0 : i32, i32
  }
  func.func @transform_5(%arg0: i32) -> (i32, i32) {
    %c0_i32 = arith.constant 0 : i32
    %c0_i32_0 = arith.constant 0 : i32
    %c0_i32_1 = arith.constant 0 : i32
    return %c0_i32, %c0_i32_0 : i32, i32
  }
  func.func @transform_6(%arg0: i32) -> (i32, i32, i32) {
    %c0_i32 = arith.constant 0 : i32
    %c0_i32_0 = arith.constant 0 : i32
    %c0_i32_1 = arith.constant 0 : i32
    %c0_i32_2 = arith.constant 0 : i32
    return %c0_i32, %c0_i32_0, %c0_i32_1 : i32, i32, i32
  }
  func.func @transform_7(%arg0: i32) -> (i32, i32, i32) {
    %c0_i32 = arith.constant 0 : i32
    %c0_i32_0 = arith.constant 0 : i32
    %c0_i32_1 = arith.constant 0 : i32
    %c0_i32_2 = arith.constant 0 : i32
    return %c0_i32, %c0_i32_0, %c0_i32_1 : i32, i32, i32
  }
  func.func @transform_8(%arg0: i32) -> (i32, i32, i32) {
    %c0_i32 = arith.constant 0 : i32
    %c0_i32_0 = arith.constant 0 : i32
    %c0_i32_1 = arith.constant 0 : i32
    %c0_i32_2 = arith.constant 0 : i32
    return %c0_i32, %c0_i32_0, %c0_i32_1 : i32, i32, i32
  }
  func.func @transform_9(%arg0: i32) -> (i32, i32, i32) {
    %c0_i32 = arith.constant 0 : i32
    %c0_i32_0 = arith.constant 0 : i32
    %c0_i32_1 = arith.constant 0 : i32
    %c0_i32_2 = arith.constant 0 : i32
    return %c0_i32, %c0_i32_0, %c0_i32_1 : i32, i32, i32
  }
  func.func @transform_10(%arg0: i32) -> (i32, i32, i32) {
    %c0_i32 = arith.constant 0 : i32
    %c0_i32_0 = arith.constant 0 : i32
    %c0_i32_1 = arith.constant 0 : i32
    %c0_i32_2 = arith.constant 0 : i32
    return %c0_i32, %c0_i32_0, %c0_i32_1 : i32, i32, i32
  }
  func.func @transform_11(%arg0: i32) -> (i32, i32, i32) {
    %c0_i32 = arith.constant 0 : i32
    %c0_i32_0 = arith.constant 0 : i32
    %c0_i32_1 = arith.constant 0 : i32
    %c0_i32_2 = arith.constant 0 : i32
    return %c0_i32, %c0_i32_0, %c0_i32_1 : i32, i32, i32
  }
  func.func @transform_12(%arg0: i32) -> (i32, i32, i32) {
    %c0_i32 = arith.constant 0 : i32
    %c0_i32_0 = arith.constant 0 : i32
    %c0_i32_1 = arith.constant 0 : i32
    %c0_i32_2 = arith.constant 0 : i32
    return %c0_i32, %c0_i32_0, %c0_i32_1 : i32, i32, i32
  }
  func.func @transform_13(%arg0: i32) -> (i32, i32, i32) {
    %c0_i32 = arith.constant 0 : i32
    %c0_i32_0 = arith.constant 0 : i32
    %c0_i32_1 = arith.constant 0 : i32
    %c0_i32_2 = arith.constant 0 : i32
    return %c0_i32, %c0_i32_0, %c0_i32_1 : i32, i32, i32
  }
  func.func @transform_14(%arg0: i32) -> (i32, i32, i32) {
    %c0_i32 = arith.constant 0 : i32
    %c0_i32_0 = arith.constant 0 : i32
    %c0_i32_1 = arith.constant 0 : i32
    %c0_i32_2 = arith.constant 0 : i32
    return %c0_i32, %c0_i32_0, %c0_i32_1 : i32, i32, i32
  }
  func.func @transform_15(%arg0: i32) -> (i32, i32, i32) {
    %c0_i32 = arith.constant 0 : i32
    %c0_i32_0 = arith.constant 0 : i32
    %c0_i32_1 = arith.constant 0 : i32
    %c0_i32_2 = arith.constant 0 : i32
    return %c0_i32, %c0_i32_0, %c0_i32_1 : i32, i32, i32
  }
  func.func @transform_16(%arg0: i32) -> (i32, i32, i32) {
    %c0_i32 = arith.constant 0 : i32
    %c0_i32_0 = arith.constant 0 : i32
    %c0_i32_1 = arith.constant 0 : i32
    %c0_i32_2 = arith.constant 0 : i32
    return %c0_i32, %c0_i32_0, %c0_i32_1 : i32, i32, i32
  }
  func.func @transform_17(%arg0: i32) -> (i32, i32, i32) {
    %c0_i32 = arith.constant 0 : i32
    %c0_i32_0 = arith.constant 0 : i32
    %c0_i32_1 = arith.constant 0 : i32
    %c0_i32_2 = arith.constant 0 : i32
    return %c0_i32, %c0_i32_0, %c0_i32_1 : i32, i32, i32
  }
  func.func @transform_18(%arg0: i32) -> (i32, i32, i32) {
    %c0_i32 = arith.constant 0 : i32
    %c0_i32_0 = arith.constant 0 : i32
    %c0_i32_1 = arith.constant 0 : i32
    %c0_i32_2 = arith.constant 0 : i32
    return %c0_i32, %c0_i32_0, %c0_i32_1 : i32, i32, i32
  }
  func.func @transform_19(%arg0: i32) -> (i32, i32, i32) {
    %c0_i32 = arith.constant 0 : i32
    %c0_i32_0 = arith.constant 0 : i32
    %c0_i32_1 = arith.constant 0 : i32
    %c0_i32_2 = arith.constant 0 : i32
    return %c0_i32, %c0_i32_0, %c0_i32_1 : i32, i32, i32
  }
  func.func @transform_20(%arg0: i32) -> (i32, i32, i32) {
    %c0_i32 = arith.constant 0 : i32
    %c0_i32_0 = arith.constant 0 : i32
    %c0_i32_1 = arith.constant 0 : i32
    %c0_i32_2 = arith.constant 0 : i32
    return %c0_i32, %c0_i32_0, %c0_i32_1 : i32, i32, i32
  }
  func.func @transform_21(%arg0: i32) -> (i32, i32, i32) {
    %c0_i32 = arith.constant 0 : i32
    %c0_i32_0 = arith.constant 0 : i32
    %c0_i32_1 = arith.constant 0 : i32
    %c0_i32_2 = arith.constant 0 : i32
    return %c0_i32, %c0_i32_0, %c0_i32_1 : i32, i32, i32
  }
  func.func @transform_22(%arg0: i32) -> (i32, i32, i32) {
    %c0_i32 = arith.constant 0 : i32
    %c0_i32_0 = arith.constant 0 : i32
    %c0_i32_1 = arith.constant 0 : i32
    %c0_i32_2 = arith.constant 0 : i32
    return %c0_i32, %c0_i32_0, %c0_i32_1 : i32, i32, i32
  }
  func.func @transform_23(%arg0: i32) -> (i32, i32, i32) {
    %c0_i32 = arith.constant 0 : i32
    %c0_i32_0 = arith.constant 0 : i32
    %c0_i32_1 = arith.constant 0 : i32
    %c0_i32_2 = arith.constant 0 : i32
    return %c0_i32, %c0_i32_0, %c0_i32_1 : i32, i32, i32
  }
  func.func @transform_24(%arg0: i32) -> (i32, i32) {
    %c0_i32 = arith.constant 0 : i32
    %c0_i32_0 = arith.constant 0 : i32
    %c0_i32_1 = arith.constant 0 : i32
    return %c0_i32, %c0_i32_0 : i32, i32
  }
}

</mosaic_0001>

<bundles_post_ra>
// kernel: deberta_encoder_forward.1
= control target key start
LH: loop header
LB: loop body
LE: loop exit
PB: predicated region body
PF: predicated region fallthrough
CT: control target
= control target key end

     0   :  { %s15847_s0 = inlined_call_operand.vmem [shape: bf16[2,8,32], index: 0, kind: input, shape index: {}]   ;;  %s15848_s1 = inlined_call_operand.vmem [shape: f32[2,8,1], index: 1, kind: input, shape index: {}]   ;;  %s15849_s2 = inlined_call_operand.vmem [shape: f32[2,1,8], index: 2, kind: input, shape index: {}]   ;;  %s15850_s3 = inlined_call_operand.vmem [shape: f32[1,32], index: 3, kind: input, shape index: {}]   ;;  %s15851_s4 = inlined_call_operand.vmem [shape: f32[1,32], index: 4, kind: input, shape index: {}]   ;;  %s15852_s5 = inlined_call_operand.vmem [shape: bf16[16,32], index: 5, kind: input, shape index: {}]   ;;  %s15853_s6 = inlined_call_operand.vmem [shape: bf16[8,8,16], index: 6, kind: input, shape index: {}]   ;;  %s15854_s7 = inlined_call_operand.vmem [shape: bf16[8,8,16], index: 7, kind: input, shape index: {}]   ;;  %s15855_s8 = inlined_call_operand.hbm [shape: bf16[2,32,96], index: 8, kind: input, shape index: {}]   ;;  %s15856_s9 = inlined_call_operand.vmem [shape: f32[2,1,32], index: 9, kind: input, shape index: {}, may-alias: {9,10,13,15,17,21,23}]   ;;  %s15857_s10 = inlined_call_operand.vmem [shape: f32[2,1,32], index: 10, kind: input, shape index: {}, may-alias: {9,10,13,15,17,21,23}]   ;;  %s15858_s11 = inlined_call_operand.hbm [shape: bf16[2,32,32], index: 11, kind: input, shape index: {}]   ;;  %s15859_s12 = inlined_call_operand.vmem [shape: bf16[2,32,32], index: 12, kind: input, shape index: {}]   ;;  %s15860_s13 = inlined_call_operand.vmem [shape: f32[2,1,32], index: 13, kind: input, shape index: {}, may-alias: {9,10,13,15,17,21,23}]   ;;  %s15861_s14 = inlined_call_operand.vmem [shape: bf16[2,32,32], index: 14, kind: input, shape index: {}]   ;;  %s15862_s15 = inlined_call_operand.vmem [shape: f32[2,1,32], index: 15, kind: input, shape index: {}, may-alias: {9,10,13,15,17,21,23}]   ;;  %s15863_s16 = inlined_call_operand.vmem [shape: f32[2,1,32], index: 16, kind: input, shape index: {}, may-alias: {16,22}]   ;;  %s15864_s17 = inlined_call_operand.vmem [shape: f32[2,1,32], index: 17, kind: input, shape index: {}, may-alias: {9,10,13,15,17,21,23}]   ;;  %s15865_s18 = inlined_call_operand.vmem [shape: bf16[2,32,64], index: 18, kind: input, shape index: {}]   ;;  %s15866_s19 = inlined_call_operand.vmem [shape: f32[2,1,64], index: 19, kind: input, shape index: {}]   ;;  %s15867_s20 = inlined_call_operand.vmem [shape: bf16[2,64,32], index: 20, kind: input, shape index: {}]   ;;  %s15868_s21 = inlined_call_operand.vmem [shape: f32[2,1,32], index: 21, kind: input, shape index: {}, may-alias: {9,10,13,15,17,21,23}]   ;;  %s15869_s22 = inlined_call_operand.vmem [shape: f32[2,1,32], index: 22, kind: input, shape index: {}, may-alias: {16,22}]   ;;  %s15870_s23 = inlined_call_operand.vmem [shape: f32[2,1,32], index: 23, kind: input, shape index: {}, may-alias: {9,10,13,15,17,21,23}]   ;;  %s15871_s24 = inlined_call_operand.hbm [shape: f32[2,32], index: 24, kind: output, shape index: {}]  }
   0x1   :  { %15887 = sst [smem:[#allocation16_spill]] %s15847_s0 }
   0x2   :  { %15888 = sst [smem:[#allocation17_spill]] %s15848_s1 }
   0x3   :  { %15889 = sst [smem:[#allocation18_spill]] %s15849_s2 }
   0x4   :  { %15890 = sst [smem:[#allocation19_spill]] %s15850_s3 }
   0x5   :  { %15891 = sst [smem:[#allocation20_spill]] %s15851_s4 }
   0x6   :  { %15892 = sst [smem:[#allocation21_spill]] %s15852_s5 }
   0x7   :  { %15893 = sst [smem:[#allocation22_spill]] %s15853_s6 }
   0x8   :  { %15894 = sst [smem:[#allocation23_spill]] %s15854_s7 }
   0x9   :  { %15895 = sst [smem:[#allocation24_spill]] %s15855_s8 }
   0xa   :  { %29 = vsyncpa [#allocation3], 0 }
   0xb   :  { %30 = vsyncpa [#allocation6], 0 }
   0xc   :  { %31 = vsyncpa [#allocation4], 0  ;;  %s13295_s5 = smov [#allocation2]  }
   0xd   :  { %s53_s26 = sshll.u32 %s13295_s5, 4  ;;  %s54_s26 = int_to_ptr.vmem [resolvable:$true] %s53_s26 }
   0xe   :  { %s13237_s27 = scalar_lea.vmem %s54_s26, 512  ;;  %p13242_p1 = scmp.lt.s32.totalorder %s54_s26, %s54_s26 }
   0xf   :  { %p13238_p0 = scmp.ne.s32.totalorder %s54_s26, %s13237_s27  ;;  %p13243_p2 = scmp.lt.s32.totalorder %s13237_s27, %s13237_s27 }
  0x11   :  { %p13244_p3 = por %p13243_p2, %p13242_p1 }
  0x13   :  { %p13245_p4 = pnand %p13244_p3, %p13238_p0 }
  0x15   :  { %13248 = shalt.err (!%p13245_p4)
}
  0x16   :  { %s13296_s28 = smov 64   ;;  %s13297_s6 = smov 4  }
  0x17   :  { %s15896_s0 = sld [smem:[#allocation24_spill]]  ;;  %s13298_s7 = smov [#allocation5]  }
  0x18   :  { %s69_s30 = sshll.u32 %s13298_s7, 4  ;;  %s70_s30 = int_to_ptr.vmem [resolvable:$true] %s69_s30 }
  0x19   :  { %s13257_s3 = scalar_lea.vmem %s70_s30, 512  ;;  %p13262_p6 = scmp.lt.s32.totalorder %s70_s30, %s70_s30 }
  0x1a   :  { %p13258_p5 = scmp.ne.s32.totalorder %s70_s30, %s13257_s3  ;;  %p13263_p7 = scmp.lt.s32.totalorder %s13257_s3, %s13257_s3 }
  0x1c   :  { %p13264_p8 = por %p13263_p7, %p13262_p6 }
  0x1d   :  { %59 = dma.hbm_to_vmem [thread:$0]  %s15896_s0, 512, %s54_s26, [#allocation3], %s13296_s28, %s13296_s28, %s13297_s6  }
  0x1e   :  { %p13265_p9 = pnand %p13264_p8, %p13258_p5 }
  0x20   :  { %13268 = shalt.err (!%p13265_p9)
}
  0x21   :  { %75 = dma.hbm_to_vmem [thread:$0]  %s15858_s11, 512, %s70_s30, [#allocation6], %s13296_s28, %s13296_s28, %s13297_s6  }
  0x22   :  { %13289 = dma.done.wait [#allocation3], 512  }
  0x23   :  { %13290 = vsyncadd [#allocation3], 4294966784 }
  0x24   :  { %13291 = dma.done.wait [#allocation6], 512  }
  0x25   :  { %13292 = vsyncadd [#allocation6], 4294966784  ;;  %s15897_s5 = sld [smem:[#allocation16_spill]]  ;;  %vm135_vm0 = vcmask 261120   ;;  %v13299_v5 = vmov 0   ;;  %v13107_v18 = vld [vmem:[#allocation2 + $0x8] sm:$0xff]  }
  0x26   :  { %13075 = vset.pattern.permute.xlu0 %v13299_v5  ;;  %13076 = vset.pattern.permute.xlu1 %v13299_v5  ;;  %s15898_s27 = sld [smem:[#allocation17_spill]]  ;;  %v15878_v19 = vmov 0.0   ;;  %v13108_v20 = vld [vmem:[#allocation2] sm:$0xff]   ;;  %vm13301_vm1 = vmmov 0   ;;  %v13112_v21 = vld [vmem:[%s15859_s12 + $0x8] sm:$0xff]   ;;  %s13302_s6 = smov 120  }
  0x27   :  { %12378 = vmatprep.subr.bf16.mxu1 %v15878_v19  ;;  %12394 = vmatprep.subr.bf16.mxu0 %v15878_v19  ;;  %v13113_v22 = vld [vmem:[%s15859_s12] sm:$0xff]   ;;  %s15899_s8 = sld [smem:[#allocation21_spill]]  ;;  %v13109_v44 = vld [vmem:[#allocation5 + $0x8] sm:$0xff]   ;;  %s13303_s2 = smov 112   ;;  %vm1947_vm2 = vcmask 64512   ;;  %vm2804_vm3 = vcmask 130048  }
  0x28   :  { %12379 = vmatpush3.bf16.msra.mxu1 %v13107_v18  ;;  %12382 = vmatprep.mubr.msk.bf16.mxu1 %vm13301_vm1, %v15878_v19  ;;  %v13110_v46 = vld [vmem:[#allocation5] sm:$0xff]   ;;  %s13304_s29 = smov 104   ;;  %s13305_s25 = smov 96   ;;  %vm5058_vm6 = vcmask 1043456   ;;  %vm5724_vm7 = vcmask 195584   ;;  %vm5967_vm8 = vcmask 523264  }
  0x29   :  { %12380 = vmatprep.subr.bf16.mxu1 %v15878_v19  ;;  %12398 = vmatprep.mubr.msk.bf16.mxu0 %vm13301_vm1, %v15878_v19  ;;  %v11910_v59 = vld [vmem:[%s15856_s9] ss:$0 sm:$0xff]  ;;  %s15902_s26 = sld [smem:[#allocation22_spill]]  ;;  %s13308_s7 = smov 16   ;;  %vm11882_vm9 = vcmask 1041409   ;;  %vm11885_vm10 = vcmask 254976  }
  0x2a   :  { %12395 = vmatpush3.bf16.msra.mxu0 %v13112_v21  ;;  %v11916_v63 = vld [vmem:[%s15860_s13] ss:$0 sm:$0xff]  ;;  %s15903_s1 = sld [smem:[#allocation23_spill]]  ;;  %s15877_s30 = smov 24  }
  0x2b   :  { %v12143_v0 = vld [vmem:[%s15897_s5] sm:$0xff]   ;;  %12396 = vmatprep.subr.bf16.mxu0 %v15878_v19  ;;  %s15900_s5 = sld [smem:[#allocation19_spill]] }
  0x2c   :  { %v12144_v1 = vunpack.c.l.bf16 %v12143_v0  ;;  %v12145_v2 = vunpack.c.h.bf16 %v12143_v0  ;;  %v107_v6 = vld [vmem:[%s15898_s27] sm:$0xff]  ;;  %v108_v17 = vld [vmem:[%s15898_s27 + $0x8] sm:$0xff]  ;;  %12381 = vmatpush3.bf16.msra.mxu1 %v13108_v20  ;;  %s15901_s27 = sld [smem:[#allocation20_spill]] }
  0x2d   :  { %12386 = vmatprep.subr.bf16.mxu1 %v15878_v19  ;;  %v13111_v23 = vld [vmem:[%s15899_s8] sm:$0xff]   ;;  %s15905_s3 = sld [smem:[#allocation18_spill]] }
  0x2e   :  { %v136_v3 = vsel %vm135_vm0, %v12144_v1, 0.0  ;;  %v139_v4 = vsel %vm135_vm0, %v12145_v2, 0.0  ;;  %12397 = vmatpush3.bf16.msra.mxu0 %v13113_v22 }
  0x2f   :  { %137 = vadd.xlane.f32.xlu0 %v136_v3  ;;  %12408 = vmatprep.subr.bf16.mxu0 %v15878_v19 }
  0x31   :  { %12399 = vmatmul.mubr.msk.bf16.vlgmr.msra.gmra.mxu0 %vm135_vm0, %v13111_v23  ;;  %v11903_v31 = vld [vmem:[%s15900_s5] ss:$0 sm:$0xff] }
  0x32   :  { %12410 = vmatprep.mubr.msk.bf16.mxu0 %vm13301_vm1, %v15878_v19  ;;  %v11904_v35 = vld [vmem:[%s15901_s27] ss:$0 sm:$0xff] }
  0x33   :  { %140 = vadd.xlane.f32.xlu0 %v139_v4 }
  0x49   :  { %181 = vperm.xlu0 %13075, %v107_v6  }
  0xb8   :  { %v138_v7 = vpop.xlane.xlu0 %137 }
  0xb9   :  { %v143_v8 = vmul.f32 0.03125, %v138_v7 }
  0xbb   :  { %v145_v9 = vsub.f32 %v12144_v1, %v143_v8  ;;  %v13306_v8 = vmov 1983009808  }
  0xbc   :  { %v141_v10 = vpop.xlane.xlu0 %140 }
  0xbd   :  { %v144_v11 = vmul.f32 0.03125, %v141_v10  ;;  %v147_v12 = vmul.f32 %v145_v9, %v145_v9  ;;  %v444_v10 = vlaneseq }
  0xbf   :  { %v146_v13 = vsub.f32 %v12145_v2, %v144_v11  ;;  %v149_v14 = vsel %vm135_vm0, %v147_v12, 0.0 }
  0xc0   :  { %150 = vadd.xlane.f32.xlu1 %v149_v14 }
  0xc1   :  { %v148_v15 = vmul.f32 %v146_v13, %v146_v13 }
  0xc3   :  { %v152_v16 = vsel %vm135_vm0, %v148_v15, 0.0 }
  0xc4   :  { %153 = vadd.xlane.f32.xlu1 %v152_v16  ;;  %v13488_v39 = vpop.permute.xlu0 %181  ;;  %v445_v16 = vshrl.u32 %v444_v10, 7 }
  0xd5   :  { %186 = vperm.xlu1 %13076, %v108_v17  }
  0xf1   :  { %v410_v47 = vpop.f32.mrf.mxu0 }
  0xf2   :  { %v411_v3 = vadd.f32 %v11916_v63, %v410_v47 }
  0xf3   :  { %v12400_v48 = vpop.f32.mrf.mxu0 }
  0xf4   :  { %v13568_v4 = vmul.f32 0.20412415, %v411_v3 }
  0xf5   :  { %v413_v49 = vpop.f32.mrf.mxu0 }
  0xf6   :  { %v414_v1 = vadd.f32 %v11916_v63, %v413_v49 }
  0xf7   :  { %v12401_v50 = vpop.f32.mrf.mxu0 }
  0xf8   :  { %v13554_v2 = vmul.f32 0.20412415, %v414_v1 }
 0x149   :  { %v151_v24 = vpop.xlane.xlu1 %150 }
 0x14a   :  { %v155_v25 = vmul.f32 0.03125, %v151_v24 }
 0x14c   :  { %v157_v26 = vadd.f32 1e-07, %v155_v25 }
 0x14d   :  { %v154_v27 = vpop.xlane.xlu1 %153 }
 0x14e   :  { %13136 = vrsqrt.f32 %v157_v26  ;;  %v156_v28 = vmul.f32 0.03125, %v154_v27 }
 0x150   :  { %v158_v29 = vadd.f32 1e-07, %v156_v28 }
 0x151   :  { %v13490_v40 = vpop.permute.xlu1 %186 }
 0x152   :  { %13138 = vrsqrt.f32 %v158_v29  ;;  %v11911_v29 = vld [vmem:[%s15857_s10] ss:$0 sm:$0xff] }
 0x15b   :  { %v13137_v30 = vpop.eup %13136 }
 0x15c   :  { %v161_v32 = vmul.f32 %v13137_v30, %v145_v9  ;;  %v442_v9 = vunpack.c.l.s4 %v13306_v8 }
 0x15e   :  { %v169_v33 = vmul.f32 %v11903_v31, %v161_v32  ;;  %v443_v15 = vunpack.c.0.s8 %v442_v9 }
 0x15f   :  { %v13139_v34 = vpop.eup %13138 }
 0x160   :  { %v162_v36 = vmul.f32 %v13139_v34, %v146_v13  ;;  %v177_v37 = vadd.f32 %v11904_v35, %v169_v33  ;;  %v13307_v13 = vmov 1934713408   ;;  %v13589_v21 = vsub.s32 %v443_v15, %v445_v16 }
 0x161   :  { %v474_v14 = vunpack.c.l.s4 %v13307_v13 }
 0x162   :  { %v170_v38 = vmul.f32 %v11903_v31, %v162_v36  ;;  %v13493_v42 = vmul.f32 %v13488_v39, %v177_v37 }
 0x163   :  { %v475_v20 = vunpack.c.0.s8 %v474_v14 }
 0x164   :  { %v178_v41 = vadd.f32 %v11904_v35, %v170_v38 }
 0x165   :  { %v13594_v28 = vsub.s32 %v475_v20, %v445_v16 }
 0x166   :  { %v13496_v43 = vmul.f32 %v13490_v40, %v178_v41 }
 0x168   :  { %v205_v45 = vpack.c.bf16 %v13496_v43, %v13493_v42 }
 0x16a   :  { %12383 = vmatmul.mubr.msk.bf16.vlgmr.msra.gmra.mxu1 %vm135_vm0, %v205_v45 }
 0x16b   :  { %12387 = vmatpush3.bf16.msra.mxu1 %v13109_v44  ;;  %12390 = vmatprep.mubr.msk.bf16.mxu1 %vm13301_vm1, %v15878_v19 }
 0x16c   :  { %12388 = vmatprep.subr.bf16.mxu1 %v15878_v19 }
 0x16f   :  { %12389 = vmatpush3.bf16.msra.mxu1 %v13110_v46 }
 0x170   :  { %12402 = vmatprep.subr.bf16.mxu1 %v15878_v19 }
 0x172   :  { %12391 = vmatmul.mubr.msk.bf16.vlgmr.msra.gmra.mxu1 %vm135_vm0, %v13111_v23 }
 0x173   :  { %12404 = vmatprep.mubr.msk.bf16.mxu1 %vm13301_vm1, %v15878_v19 }
 0x22a   :  { %v13508_v51 = vpop.f32.mrf.mxu1 }
 0x22b   :  { %721 = vrot.lane.b32.xlu1 %v13508_v51, %s13302_s6  ;;  %v273_v60 = vadd.f32 %v11910_v59, %v13508_v51 }
 0x22c   :  { %v12384_v52 = vpop.f32.mrf.mxu1 }
 0x22d   :  { %v13539_v62 = vmul.f32 0.20412415, %v273_v60 }
 0x22e   :  { %v13512_v53 = vpop.f32.mrf.mxu1 }
 0x22f   :  { %725 = vrot.lane.b32.xlu1 %v13508_v51, %s13303_s2  ;;  %v274_v61 = vadd.f32 %v11910_v59, %v13512_v53 }
 0x230   :  { %v12385_v54 = vpop.f32.mrf.mxu1 }
 0x231   :  { %v13548_v0 = vmul.f32 0.20412415, %v274_v61 }
 0x232   :  { %v13516_v55 = vpop.f32.mrf.mxu1 }
 0x233   :  { %729 = vrot.lane.b32.xlu1 %v13508_v51, %s13304_s29 }
 0x234   :  { %v12392_v56 = vpop.f32.mrf.mxu1 }
 0x236   :  { %v13520_v57 = vpop.f32.mrf.mxu1 }
 0x237   :  { %723 = vrot.lane.b32.xlu1 %v13512_v53, %s13302_s6  ;;  %1359 = vrot.lane.b32.xlu0 %v13520_v57, %s13302_s6 }
 0x238   :  { %v12393_v58 = vpop.f32.mrf.mxu1 }
 0x23b   :  { %727 = vrot.lane.b32.xlu1 %v13512_v53, %s13303_s2  ;;  %1365 = vrot.lane.b32.xlu0 %v13520_v57, %s13303_s2 }
 0x23f   :  { %731 = vrot.lane.b32.xlu1 %v13512_v53, %s13304_s29  ;;  %1371 = vrot.lane.b32.xlu0 %v13520_v57, %s13304_s29 }
 0x243   :  { %1357 = vrot.lane.b32.xlu1 %v13516_v55, %s13302_s6  ;;  %427 = vrot.lane.b32.xlu0 %v13539_v62, %s13303_s2 }
 0x247   :  { %1363 = vrot.lane.b32.xlu1 %v13516_v55, %s13303_s2  ;;  %423 = vrot.lane.b32.xlu0 %v13548_v0, %s13302_s6 }
 0x24b   :  { %1369 = vrot.lane.b32.xlu1 %v13516_v55, %s13304_s29  ;;  %435 = vrot.lane.b32.xlu0 %v13548_v0, %s13304_s29 }
 0x24f   :  { %421 = vrot.lane.b32.xlu1 %v13539_v62, %s13302_s6  ;;  %1655 = vrot.lane.b32.xlu0 %v13554_v2, %s13302_s6 }
 0x253   :  { %433 = vrot.lane.b32.xlu1 %v13539_v62, %s13304_s29  ;;  %1661 = vrot.lane.b32.xlu0 %v13554_v2, %s13303_s2 }
 0x257   :  { %429 = vrot.lane.b32.xlu1 %v13548_v0, %s13303_s2  ;;  %1667 = vrot.lane.b32.xlu0 %v13554_v2, %s13304_s29 }
 0x25b   :  { %1653 = vrot.lane.b32.xlu1 %v13568_v4, %s13302_s6 }
 0x25f   :  { %1659 = vrot.lane.b32.xlu1 %v13568_v4, %s13303_s2 }
 0x263   :  { %1665 = vrot.lane.b32.xlu1 %v13568_v4, %s13304_s29 }
 0x267   :  { %733 = vrot.lane.b32.xlu1 %v13508_v51, %s13305_s25 }
 0x29d   :  { %v722_v5 = vpop.permute.xlu1 %721 }
 0x29e   :  { %737 = vrot.lane.b32.xlu0 %v722_v5, %s13305_s25 }
 0x2a1   :  { %v726_v6 = vpop.permute.xlu1 %725 }
 0x2a2   :  { %741 = vrot.lane.b32.xlu1 %v726_v6, %s13305_s25 }
 0x2a5   :  { %v730_v7 = vpop.permute.xlu1 %729 }
 0x2a6   :  { %735 = vrot.lane.b32.xlu1 %v13512_v53, %s13305_s25  ;;  %745 = vrot.lane.b32.xlu0 %v730_v7, %s13305_s25 }
 0x2a9   :  { %v724_v11 = vpop.permute.xlu1 %723  ;;  %v1360_v12 = vpop.permute.xlu0 %1359 }
 0x2aa   :  { %739 = vrot.lane.b32.xlu0 %v724_v11, %s13305_s25 }
 0x2ad   :  { %v728_v17 = vpop.permute.xlu1 %727  ;;  %v1366_v18 = vpop.permute.xlu0 %1365 }
 0x2ae   :  { %743 = vrot.lane.b32.xlu1 %v728_v17, %s13305_s25  ;;  %v1443_v22 = vcombine.low %v13520_v57, %v1366_v18  ;;  %v1444_v23 = vcombine.high %v13520_v57, %v1366_v18 }
 0x2b0   :  { %v1451_v30 = vrot.slane %v1443_v22, %v13589_v21  ;;  %v1458_v31 = vrot.slane %v1444_v23, %v13589_v21 }
 0x2b1   :  { %v732_v24 = vpop.permute.xlu1 %731  ;;  %v1372_v25 = vpop.permute.xlu0 %1371 }
 0x2b2   :  { %v1459_v26 = vcombine.low %v1360_v12, %v1372_v25  ;;  %v1460_v27 = vcombine.high %v1360_v12, %v1372_v25  ;;  %747 = vrot.lane.b32.xlu0 %v732_v24, %s13305_s25 }
 0x2b4   :  { %v1467_v32 = vrot.slane %v1459_v26, %v13589_v21  ;;  %v1474_v33 = vrot.slane %v1460_v27, %v13589_v21 }
 0x2b5   :  { %v1358_v34 = vpop.permute.xlu1 %1357  ;;  %v428_v35 = vpop.permute.xlu0 %427 }
 0x2b6   :  { %v1475_v36 = vcombine.low %v1451_v30, %v1467_v32  ;;  %v1476_v37 = vcombine.high %v1451_v30, %v1467_v32  ;;  %v1491_v38 = vcombine.low %v1458_v31, %v1474_v33  ;;  %v1492_v41 = vcombine.high %v1458_v31, %v1474_v33  ;;  %283 = vrot.lane.b32.xlu0 %v11911_v29, %s13296_s28 }
 0x2b7   :  { %v439_v6 = vcombine.low %v13539_v62, %v428_v35  ;;  %v440_v10 = vcombine.high %v13539_v62, %v428_v35 }
 0x2b8   :  { %v1483_v44 = vrot.slane %v1475_v36, %v13594_v28  ;;  %v1490_v45 = vrot.slane %v1476_v37, %v13594_v28  ;;  %v1499_v46 = vrot.slane %v1491_v38, %v13594_v28  ;;  %v1506_v47 = vrot.slane %v1492_v41, %v13594_v28 }
 0x2b9   :  { %v1364_v48 = vpop.permute.xlu1 %1363  ;;  %v424_v49 = vpop.permute.xlu0 %423  ;;  %v447_v22 = vrot.slane %v439_v6, %v13589_v21  ;;  %v454_v62 = vrot.slane %v440_v10, %v13589_v21 }
 0x2ba   :  { %v1579_v50 = vcombine.low %v1483_v44, %v1490_v45  ;;  %v11934_v52 = vcombine.high %v1483_v44, %v1490_v45  ;;  %v1595_v54 = vcombine.low %v1499_v46, %v1506_v47  ;;  %v11935_v56 = vcombine.high %v1499_v46, %v1506_v47 }
 0x2bb   :  { %v1375_v3 = vcombine.low %v13516_v55, %v1364_v48  ;;  %v1376_v11 = vcombine.high %v13516_v55, %v1364_v48 }
 0x2bc   :  { %v1586_v59 = vrot.slane %v1579_v50, %v13589_v21  ;;  %v1594_v60 = vrot.slane %v11934_v52, %v13589_v21  ;;  %v1602_v61 = vrot.slane %v1595_v54, %v13589_v21  ;;  %v1610_v63 = vrot.slane %v11935_v56, %v13589_v21 }
 0x2bd   :  { %v1370_v57 = vpop.permute.xlu1 %1369  ;;  %v436_v58 = vpop.permute.xlu0 %435  ;;  %v1383_v16 = vrot.slane %v1375_v3, %v13589_v21  ;;  %v1390_v25 = vrot.slane %v1376_v11, %v13589_v21 }
 0x2be   :  { %v1391_v1 = vcombine.low %v1358_v34, %v1370_v57  ;;  %v1392_v5 = vcombine.high %v1358_v34, %v1370_v57  ;;  %v1611_v8 = vcombine.low %v1586_v59, %v1594_v60  ;;  %v1627_v9 = vcombine.low %v1602_v61, %v1610_v63 }
 0x2bf   :  { %v523_v13 = vcombine.low %v424_v49, %v436_v58  ;;  %v524_v14 = vcombine.high %v424_v49, %v436_v58  ;;  %v1612_v18 = vcombine.high %v1586_v59, %v1594_v60  ;;  %v1628_v20 = vcombine.high %v1602_v61, %v1610_v63 }
 0x2c0   :  { %v1399_v12 = vrot.slane %v1391_v1, %v13589_v21  ;;  %v1406_v17 = vrot.slane %v1392_v5, %v13589_v21  ;;  %v13623_v24 = vrot.slane %v1611_v8, %v13594_v28  ;;  %v13626_v55 = vrot.slane %v1627_v9, %v13594_v28 }
 0x2c1   :  { %v422_v7 = vpop.permute.xlu1 %421  ;;  %v13617_v15 = vpop.permute.xlu0 %1655  ;;  %v531_v29 = vrot.slane %v523_v13, %v13589_v21  ;;  %v538_v30 = vrot.slane %v524_v14, %v13589_v21  ;;  %v13633_v35 = vrot.slane %v1612_v18, %v13594_v28  ;;  %v13636_v36 = vrot.slane %v1628_v20, %v13594_v28 }
 0x2c2   :  { %v1407_v26 = vcombine.low %v1383_v16, %v1399_v12  ;;  %v1408_v27 = vcombine.high %v1383_v16, %v1399_v12  ;;  %v1423_v33 = vcombine.low %v1390_v25, %v1406_v17  ;;  %v1424_v34 = vcombine.high %v1390_v25, %v1406_v17 }
 0x2c3   :  { %v1643_v45 = vcombine.low %v13623_v24, %v13626_v55  ;;  %v1644_v46 = vcombine.high %v13623_v24, %v13626_v55 }
 0x2c4   :  { %v1415_v47 = vrot.slane %v1407_v26, %v13594_v28  ;;  %v1422_v48 = vrot.slane %v1408_v27, %v13594_v28  ;;  %v1431_v58 = vrot.slane %v1423_v33, %v13594_v28  ;;  %v1438_v59 = vrot.slane %v1424_v34, %v13594_v28 }
 0x2c5   :  { %v434_v23 = vpop.permute.xlu1 %433  ;;  %v1662_v41 = vpop.permute.xlu0 %1661 }
 0x2c6   :  { %v455_v31 = vcombine.low %v422_v7, %v434_v23  ;;  %v456_v32 = vcombine.high %v422_v7, %v434_v23  ;;  %v1511_v16 = vcombine.low %v1415_v47, %v1422_v48  ;;  %v11932_v17 = vcombine.high %v1415_v47, %v1422_v48 }
 0x2c7   :  { %v1527_v18 = vcombine.low %v1431_v58, %v1438_v59  ;;  %v11933_v20 = vcombine.high %v1431_v58, %v1438_v59  ;;  %v1740_v23 = vcombine.high %v13554_v2, %v1662_v41  ;;  %v1645_v48 = vcombine.low %v13633_v35, %v13636_v36 }
 0x2c8   :  { %v463_v37 = vrot.slane %v455_v31, %v13589_v21  ;;  %v470_v38 = vrot.slane %v456_v32, %v13589_v21 }
 0x2c9   :  { %v430_v44 = vpop.permute.xlu1 %429  ;;  %v1668_v14 = vpop.permute.xlu0 %1667 }
 0x2ca   :  { %v507_v49 = vcombine.low %v13548_v0, %v430_v44  ;;  %v508_v50 = vcombine.high %v13548_v0, %v430_v44  ;;  %v471_v52 = vcombine.low %v447_v22, %v463_v37  ;;  %v472_v54 = vcombine.high %v447_v22, %v463_v37 }
 0x2cb   :  { %v487_v56 = vcombine.low %v454_v62, %v470_v38  ;;  %v488_v57 = vcombine.high %v454_v62, %v470_v38  ;;  %v1739_v22 = vcombine.low %v13554_v2, %v1662_v41  ;;  %v1518_v37 = vrot.slane %v1511_v16, %v13589_v21 }
 0x2cc   :  { %v515_v60 = vrot.slane %v507_v49, %v13589_v21  ;;  %v522_v61 = vrot.slane %v508_v50, %v13589_v21  ;;  %v479_v63 = vrot.slane %v471_v52, %v13594_v28  ;;  %v486_v1 = vrot.slane %v472_v54, %v13594_v28 }
 0x2cd   :  { %v495_v3 = vrot.slane %v487_v56, %v13594_v28  ;;  %v502_v0 = vrot.slane %v488_v57, %v13594_v28  ;;  %v13656_v5 = vpop.permute.xlu1 %1653  ;;  %v1526_v38 = vrot.slane %v11932_v17, %v13589_v21  ;;  %v1534_v41 = vrot.slane %v1527_v18, %v13589_v21 }
 0x2ce   :  { %v539_v6 = vcombine.low %v515_v60, %v531_v29  ;;  %v540_v7 = vcombine.high %v515_v60, %v531_v29  ;;  %v555_v8 = vcombine.low %v522_v61, %v538_v30  ;;  %v556_v9 = vcombine.high %v522_v61, %v538_v30 }
 0x2cf   :  { %v575_v10 = vcombine.low %v479_v63, %v486_v1  ;;  %v11920_v11 = vcombine.high %v479_v63, %v486_v1  ;;  %v591_v12 = vcombine.low %v495_v3, %v502_v0  ;;  %v11921_v13 = vcombine.high %v495_v3, %v502_v0 }
 0x2d0   :  { %v547_v62 = vrot.slane %v539_v6, %v13594_v28  ;;  %v554_v25 = vrot.slane %v540_v7, %v13594_v28  ;;  %v563_v26 = vrot.slane %v555_v8, %v13594_v28  ;;  %v570_v27 = vrot.slane %v556_v9, %v13594_v28 }
 0x2d1   :  { %v1755_v29 = vcombine.low %v13617_v15, %v1668_v14  ;;  %v1756_v30 = vcombine.high %v13617_v15, %v1668_v14  ;;  %v1660_v31 = vpop.permute.xlu1 %1659  ;;  %v13667_v32 = vrot.slane %v575_v10, %v13589_v21  ;;  %v13670_v33 = vrot.slane %v11920_v11, %v13589_v21 }
 0x2d2   :  { %v13673_v2 = vrot.slane %v591_v12, %v13589_v21  ;;  %v13676_v34 = vrot.slane %v11921_v13, %v13589_v21  ;;  %v1542_v15 = vrot.slane %v11933_v20, %v13589_v21  ;;  %v643_v44 = vcombine.low %v547_v62, %v554_v25 }
 0x2d3   :  { %v11922_v47 = vcombine.high %v547_v62, %v554_v25  ;;  %v1646_v49 = vcombine.high %v13633_v35, %v13636_v36  ;;  %v13687_v50 = vrot.slane %v1739_v22, %v13589_v21  ;;  %v13690_v52 = vrot.slane %v1740_v23, %v13589_v21 }
 0x2d4   :  { %v659_v54 = vcombine.low %v563_v26, %v570_v27  ;;  %v11923_v56 = vcombine.high %v563_v26, %v570_v27  ;;  %v607_v57 = vcombine.low %v13667_v32, %v13670_v33  ;;  %v623_v58 = vcombine.low %v13673_v2, %v13676_v34 }
 0x2d5   :  { %v1763_v59 = vrot.slane %v1755_v29, %v13589_v21  ;;  %v1770_v60 = vrot.slane %v1756_v30, %v13589_v21  ;;  %v608_v61 = vcombine.high %v13667_v32, %v13670_v33  ;;  %v624_v63 = vcombine.high %v13673_v2, %v13676_v34  ;;  %v1666_v0 = vpop.permute.xlu1 %1665 }
 0x2d6   :  { %v1543_v1 = vcombine.low %v1518_v37, %v1526_v38  ;;  %v1559_v3 = vcombine.low %v1534_v41, %v1542_v15  ;;  %v13703_v6 = vrot.slane %v643_v44, %v13589_v21  ;;  %v13706_v7 = vrot.slane %v11922_v47, %v13589_v21 }
 0x2d7   :  { %v1671_v8 = vcombine.low %v13568_v4, %v1660_v31  ;;  %v1672_v9 = vcombine.high %v13568_v4, %v1660_v31  ;;  %v13711_v10 = vrot.slane %v659_v54, %v13589_v21  ;;  %v13714_v11 = vrot.slane %v11923_v56, %v13589_v21 }
 0x2d8   :  { %v1551_v12 = vrot.slane %v1543_v1, %v13594_v28  ;;  %v1567_v13 = vrot.slane %v1559_v3, %v13594_v28  ;;  %v1687_v14 = vcombine.low %v13656_v5, %v1666_v0  ;;  %v1688_v16 = vcombine.high %v13656_v5, %v1666_v0 }
 0x2d9   :  { %v615_v17 = vrot.slane %v607_v57, %v13594_v28  ;;  %v631_v18 = vrot.slane %v623_v58, %v13594_v28  ;;  %v1544_v22 = vcombine.high %v1518_v37, %v1526_v38  ;;  %v1560_v23 = vcombine.high %v1534_v41, %v1542_v15 }
 0x2da   :  { %v1575_v20 = vcombine.low %v1551_v12, %v1567_v13  ;;  %v1576_v4 = vcombine.high %v1551_v12, %v1567_v13  ;;  %v1679_v62 = vrot.slane %v1671_v8, %v13589_v21  ;;  %v1686_v25 = vrot.slane %v1672_v9, %v13589_v21 }
 0x2db   :  { %v1695_v26 = vrot.slane %v1687_v14, %v13589_v21  ;;  %v1702_v27 = vrot.slane %v1688_v16, %v13589_v21  ;;  %v1558_v30 = vrot.slane %v1544_v22, %v13594_v28  ;;  %v1574_v31 = vrot.slane %v1560_v23, %v13594_v28 }
 0x2dc   :  { %v1647_v5 = vpack.c.bf16 %v1643_v45, %v1575_v20  ;;  %v1648_v29 = vpack.c.bf16 %v1644_v46, %v1576_v4  ;;  %v639_v2 = vcombine.low %v615_v17, %v631_v18  ;;  %v640_v34 = vcombine.high %v615_v17, %v631_v18 }
 0x2dd   :  { %v1703_v32 = vcombine.low %v1679_v62, %v1695_v26  ;;  %v1704_v33 = vcombine.high %v1679_v62, %v1695_v26  ;;  %v1719_v41 = vcombine.low %v1686_v25, %v1702_v27  ;;  %v1720_v45 = vcombine.high %v1686_v25, %v1702_v27 }
 0x2de   :  { %v13735_v37 = vsel %vm1947_vm2, %v1647_v5, 0  ;;  %v13738_v38 = vsel %vm1947_vm2, %v1648_v29, 0  ;;  %v1771_v15 = vcombine.low %v13687_v50, %v1763_v59  ;;  %v1772_v24 = vcombine.high %v13687_v50, %v1763_v59 }
 0x2df   :  { %v1787_v55 = vcombine.low %v13690_v52, %v1770_v60  ;;  %12403 = vmatpush3.bf16.xpose.msra.mxu1 %v13735_v37  ;;  %12409 = vmatpush3.bf16.xpose.msra.mxu0 %v13738_v38  ;;  %v1788_v46 = vcombine.high %v13690_v52, %v1770_v60  ;;  %v1577_v44 = vcombine.low %v1558_v30, %v1574_v31 }
 0x2e0   :  { %12414 = vmatprep.subr.bf16.mxu1 %v15878_v19  ;;  %12420 = vmatprep.subr.bf16.mxu0 %v15878_v19  ;;  %v1578_v47 = vcombine.high %v1558_v30, %v1574_v31  ;;  %v1711_v54 = vrot.slane %v1703_v32, %v13594_v28  ;;  %v1718_v56 = vrot.slane %v1704_v33, %v13594_v28 }
 0x2e1   :  { %v13750_v57 = vpack.c.bf16 %v639_v2, %v639_v2  ;;  %v13752_v50 = vpack.c.bf16 %v640_v34, %v640_v34  ;;  %v1727_v58 = vrot.slane %v1719_v41, %v13594_v28  ;;  %v1734_v59 = vrot.slane %v1720_v45, %v13594_v28 }
 0x2e2   :  { %v1649_v52 = vpack.c.bf16 %v1645_v48, %v1577_v44  ;;  %v1650_v60 = vpack.c.bf16 %v1646_v49, %v1578_v47  ;;  %v1779_v1 = vrot.slane %v1771_v15, %v13594_v28  ;;  %v1786_v3 = vrot.slane %v1772_v24, %v13594_v28 }
 0x2e3   :  { %v622_v0 = vrot.slane %v608_v61, %v13594_v28  ;;  %v638_v8 = vrot.slane %v624_v63, %v13594_v28  ;;  %v1795_v9 = vrot.slane %v1787_v55, %v13594_v28  ;;  %v1802_v12 = vrot.slane %v1788_v46, %v13594_v28 }
 0x2e4   :  { %v675_v13 = vcombine.low %v13703_v6, %v13706_v7  ;;  %v691_v48 = vcombine.low %v13711_v10, %v13714_v11  ;;  %v1807_v35 = vcombine.low %v1711_v54, %v1718_v56  ;;  %v11936_v36 = vcombine.high %v1711_v54, %v1718_v56 }
 0x2e5   :  { %v1823_v49 = vcombine.low %v1727_v58, %v1734_v59  ;;  %v11937_v14 = vcombine.high %v1727_v58, %v1734_v59  ;;  %v2044_v61 = vsel %vm1947_vm2, %v1649_v52, 0  ;;  %v2090_v63 = vsel %vm1947_vm2, %v1650_v60, 0 }
 0x2e6   :  { %12405 = vmatmul.mubr.msk.bf16.vlgmr.msra.gmra.mxu1 %vm1947_vm2, %v13750_v57  ;;  %12411 = vmatmul.mubr.msk.bf16.vlgmr.msra.gmra.mxu0 %vm1947_vm2, %v13752_v50  ;;  %v1875_v16 = vcombine.low %v1779_v1, %v1786_v3  ;;  %v641_v17 = vcombine.low %v622_v0, %v638_v8  ;;  %v642_v18 = vcombine.high %v622_v0, %v638_v8 }
 0x2e7   :  { %12415 = vmatpush3.bf16.xpose.msra.mxu1 %v2044_v61  ;;  %12421 = vmatpush3.bf16.xpose.msra.mxu0 %v2090_v63  ;;  %v11938_v20 = vcombine.high %v1779_v1, %v1786_v3  ;;  %v1891_v4 = vcombine.low %v1795_v9, %v1802_v12  ;;  %v11939_v22 = vcombine.high %v1795_v9, %v1802_v12 }
 0x2e8   :  { %12416 = vmatprep.mubr.msk.bf16.mxu1 %vm13301_vm1, %v15878_v19  ;;  %12422 = vmatprep.mubr.msk.bf16.mxu0 %vm13301_vm1, %v15878_v19  ;;  %v13785_v23 = vrot.slane %v1807_v35, %v13589_v21  ;;  %v13788_v62 = vrot.slane %v11936_v36, %v13589_v21  ;;  %v13791_v25 = vrot.slane %v1823_v49, %v13589_v21 }
 0x2e9   :  { %12426 = vmatprep.subr.bf16.mxu1 %v15878_v19  ;;  %12432 = vmatprep.subr.bf16.mxu0 %v15878_v19  ;;  %v13794_v26 = vrot.slane %v11937_v14, %v13589_v21  ;;  %v13796_v27 = vpack.c.bf16 %v641_v17, %v641_v17  ;;  %v13798_v5 = vpack.c.bf16 %v642_v18, %v642_v18 }
 0x2ea   :  { %v683_v29 = vrot.slane %v675_v13, %v13594_v28  ;;  %v699_v30 = vrot.slane %v691_v48, %v13594_v28  ;;  %v13803_v31 = vrot.slane %v1875_v16, %v13589_v21  ;;  %v13806_v32 = vrot.slane %v11938_v20, %v13589_v21  ;;  %v734_v48 = vpop.permute.xlu1 %733 }
 0x2eb   :  { %v13809_v33 = vrot.slane %v1891_v4, %v13589_v21  ;;  %v13812_v2 = vrot.slane %v11939_v22, %v13589_v21  ;;  %v1839_v34 = vcombine.low %v13785_v23, %v13788_v62  ;;  %v1855_v41 = vcombine.low %v13791_v25, %v13794_v26 }
 0x2ec   :  { %v676_v45 = vcombine.high %v13703_v6, %v13706_v7  ;;  %v692_v15 = vcombine.high %v13711_v10, %v13714_v11  ;;  %v707_v24 = vcombine.low %v683_v29, %v699_v30  ;;  %v708_v55 = vcombine.high %v683_v29, %v699_v30 }
 0x2ed   :  { %v1907_v46 = vcombine.low %v13803_v31, %v13806_v32  ;;  %v1923_v6 = vcombine.low %v13809_v33, %v13812_v2  ;;  %v1847_v7 = vrot.slane %v1839_v34, %v13594_v28  ;;  %v1863_v10 = vrot.slane %v1855_v41, %v13594_v28 }
 0x2ee   :  { %12417 = vmatmul.mubr.msk.bf16.vlgmr.msra.gmra.mxu1 %vm1947_vm2, %v13796_v27  ;;  %12423 = vmatmul.mubr.msk.bf16.vlgmr.msra.gmra.mxu0 %vm1947_vm2, %v13798_v5  ;;  %v690_v11 = vrot.slane %v676_v45, %v13594_v28  ;;  %v13844_v44 = vpack.c.bf16 %v708_v55, %v708_v55  ;;  %v1840_v17 = vcombine.high %v13785_v23, %v13788_v62 }
 0x2ef   :  { %12427 = vmatpush3.bf16.xpose.msra.mxu1 %v13735_v37  ;;  %12433 = vmatpush3.bf16.xpose.msra.mxu0 %v13738_v38  ;;  %v706_v37 = vrot.slane %v692_v15, %v13594_v28  ;;  %v13842_v38 = vpack.c.bf16 %v707_v24, %v707_v24  ;;  %v1915_v47 = vrot.slane %v1907_v46, %v13594_v28 }
 0x2f0   :  { %12428 = vmatprep.mubr.msk.bf16.mxu1 %vm13301_vm1, %v15878_v19  ;;  %12434 = vmatprep.mubr.msk.bf16.mxu0 %vm13301_vm1, %v15878_v19  ;;  %v1931_v54 = vrot.slane %v1923_v6, %v13594_v28  ;;  %v1871_v56 = vcombine.low %v1847_v7, %v1863_v10  ;;  %v1872_v58 = vcombine.high %v1847_v7, %v1863_v10 }
 0x2f1   :  { %12438 = vmatprep.subr.bf16.mxu1 %v15878_v19  ;;  %12444 = vmatprep.subr.bf16.mxu0 %v15878_v19  ;;  %v709_v59 = vcombine.low %v690_v11, %v706_v37  ;;  %v710_v52 = vcombine.high %v690_v11, %v706_v37  ;;  %v1856_v18 = vcombine.high %v13791_v25, %v13794_v26 }
 0x2f2   :  { %v1939_v60 = vcombine.low %v1915_v47, %v1931_v54  ;;  %v1940_v1 = vcombine.high %v1915_v47, %v1931_v54  ;;  %v1908_v30 = vcombine.high %v13803_v31, %v13806_v32  ;;  %v1924_v34 = vcombine.high %v13809_v33, %v13812_v2 }
 0x2f3   :  { %v13858_v8 = vpack.c.bf16 %v709_v59, %v709_v59  ;;  %v13860_v9 = vpack.c.bf16 %v710_v52, %v710_v52  ;;  %v1854_v25 = vrot.slane %v1840_v17, %v13594_v28  ;;  %v1870_v26 = vrot.slane %v1856_v18, %v13594_v28 }
 0x2f4   :  { %v1943_v3 = vpack.c.bf16 %v1939_v60, %v1871_v56  ;;  %v1944_v0 = vpack.c.bf16 %v1940_v1, %v1872_v58  ;;  %v1922_v33 = vrot.slane %v1908_v30, %v13594_v28  ;;  %v1938_v2 = vrot.slane %v1924_v34, %v13594_v28 }
 0x2f5   :  { %v1873_v47 = vcombine.low %v1854_v25, %v1870_v26  ;;  %v1874_v54 = vcombine.high %v1854_v25, %v1870_v26 }
 0x2f6   :  { %12429 = vmatmul.mubr.msk.bf16.vlgmr.msra.gmra.mxu1 %vm1947_vm2, %v13842_v38  ;;  %12435 = vmatmul.mubr.msk.bf16.vlgmr.msra.gmra.mxu0 %vm1947_vm2, %v13844_v44  ;;  %v13867_v12 = vsel %vm1947_vm2, %v1943_v3, 0  ;;  %v13870_v13 = vsel %vm1947_vm2, %v1944_v0, 0  ;;  %v1941_v0 = vcombine.low %v1922_v33, %v1938_v2 }
 0x2f7   :  { %12439 = vmatpush3.bf16.xpose.msra.mxu1 %v2044_v61  ;;  %12445 = vmatpush3.bf16.xpose.msra.mxu0 %v2090_v63 }
 0x2f8   :  { %12440 = vmatprep.mubr.msk.bf16.mxu1 %vm13301_vm1, %v15878_v19  ;;  %12446 = vmatprep.mubr.msk.bf16.mxu0 %vm13301_vm1, %v15878_v19 }
 0x2f9   :  { %12450 = vmatprep.subr.bf16.mxu1 %v15878_v19  ;;  %12456 = vmatprep.subr.bf16.mxu0 %v15878_v19 }
 0x2fe   :  { %12441 = vmatmul.mubr.msk.bf16.vlgmr.msra.gmra.mxu1 %vm1947_vm2, %v13858_v8  ;;  %12447 = vmatmul.mubr.msk.bf16.vlgmr.msra.gmra.mxu0 %vm1947_vm2, %v13860_v9 }
 0x2ff   :  { %12451 = vmatpush3.bf16.xpose.msra.mxu1 %v13867_v12  ;;  %12457 = vmatpush3.bf16.xpose.msra.mxu0 %v13870_v13 }
 0x300   :  { %12452 = vmatprep.mubr.msk.bf16.mxu1 %vm13301_vm1, %v15878_v19  ;;  %12458 = vmatprep.mubr.msk.bf16.mxu0 %vm13301_vm1, %v15878_v19 }
 0x301   :  { %12462 = vmatprep.subr.bf16.mxu1 %v15878_v19  ;;  %12468 = vmatprep.subr.bf16.mxu0 %v15878_v19 }
 0x310   :  { %v738_v35 = vpop.permute.xlu0 %737 }
 0x314   :  { %v742_v36 = vpop.permute.xlu1 %741 }
 0x315   :  { %v757_v49 = vcombine.low %v734_v48, %v742_v36  ;;  %v758_v14 = vcombine.high %v734_v48, %v742_v36 }
 0x317   :  { %v765_v20 = vrot.slane %v757_v49, %v13589_v21  ;;  %v772_v4 = vrot.slane %v758_v14, %v13589_v21  ;;  %v1942_v49 = vcombine.high %v1922_v33, %v1938_v2 }
 0x318   :  { %v746_v61 = vpop.permute.xlu0 %745  ;;  %v736_v41 = vpop.permute.xlu1 %735 }
 0x319   :  { %v773_v63 = vcombine.low %v738_v35, %v746_v61  ;;  %v774_v16 = vcombine.high %v738_v35, %v746_v61 }
 0x31b   :  { %v781_v22 = vrot.slane %v773_v63, %v13589_v21  ;;  %v788_v29 = vrot.slane %v774_v16, %v13589_v21  ;;  %v1945_v63 = vpack.c.bf16 %v1941_v0, %v1873_v47 }
 0x31c   :  { %v740_v32 = vpop.permute.xlu0 %739 }
 0x31d   :  { %v789_v45 = vcombine.low %v765_v20, %v781_v22  ;;  %v790_v23 = vcombine.high %v765_v20, %v781_v22  ;;  %v805_v62 = vcombine.low %v772_v4, %v788_v29  ;;  %v806_v15 = vcombine.high %v772_v4, %v788_v29 }
 0x31e   :  { %v1946_v20 = vpack.c.bf16 %v1942_v49, %v1874_v54 }
 0x31f   :  { %v797_v24 = vrot.slane %v789_v45, %v13594_v28  ;;  %v804_v55 = vrot.slane %v790_v23, %v13594_v28  ;;  %v813_v46 = vrot.slane %v805_v62, %v13594_v28  ;;  %v820_v31 = vrot.slane %v806_v15, %v13594_v28 }
 0x320   :  { %v744_v37 = vpop.permute.xlu1 %743 }
 0x321   :  { %v893_v6 = vcombine.low %v797_v24, %v804_v55  ;;  %v11924_v7 = vcombine.high %v797_v24, %v804_v55  ;;  %v909_v10 = vcombine.low %v813_v46, %v820_v31  ;;  %v11925_v11 = vcombine.high %v813_v46, %v820_v31 }
 0x322   :  { %v825_v60 = vcombine.low %v736_v41, %v744_v37  ;;  %v826_v1 = vcombine.high %v736_v41, %v744_v37 }
 0x323   :  { %v900_v56 = vrot.slane %v893_v6, %v13589_v21  ;;  %v908_v58 = vrot.slane %v11924_v7, %v13589_v21  ;;  %v916_v59 = vrot.slane %v909_v10, %v13589_v21  ;;  %v924_v52 = vrot.slane %v11925_v11, %v13589_v21 }
 0x324   :  { %v748_v3 = vpop.permute.xlu0 %747  ;;  %v833_v4 = vrot.slane %v825_v60, %v13589_v21  ;;  %v840_v22 = vrot.slane %v826_v1, %v13589_v21  ;;  %v2400_v6 = vsel %vm1947_vm2, %v1945_v63, 0  ;;  %v2446_v7 = vsel %vm1947_vm2, %v1946_v20, 0 }
 0x325   :  { %v925_v48 = vcombine.low %v900_v56, %v908_v58  ;;  %v926_v35 = vcombine.high %v900_v56, %v908_v58  ;;  %v941_v36 = vcombine.low %v916_v59, %v924_v52  ;;  %v841_v14 = vcombine.low %v740_v32, %v748_v3 }
 0x326   :  { %v842_v61 = vcombine.high %v740_v32, %v748_v3  ;;  %v942_v16 = vcombine.high %v916_v59, %v924_v52 }
 0x327   :  { %v933_v17 = vrot.slane %v925_v48, %v13594_v28  ;;  %v949_v18 = vrot.slane %v941_v36, %v13594_v28  ;;  %v849_v29 = vrot.slane %v841_v14, %v13589_v21  ;;  %v940_v62 = vrot.slane %v926_v35, %v13594_v28 }
 0x328   :  { %v856_v30 = vrot.slane %v842_v61, %v13589_v21  ;;  %v284_v34 = vpop.permute.xlu0 %283 }
 0x329   :  { %v13911_v41 = vadd.f32 %v284_v34, %v13508_v51  ;;  %v957_v45 = vcombine.low %v933_v17, %v949_v18  ;;  %v958_v23 = vcombine.high %v933_v17, %v949_v18  ;;  %v857_v15 = vcombine.low %v833_v4, %v849_v29 }
 0x32a   :  { %v858_v25 = vcombine.high %v833_v4, %v849_v29  ;;  %v873_v26 = vcombine.low %v840_v22, %v856_v30  ;;  %v874_v24 = vcombine.high %v840_v22, %v856_v30  ;;  %v956_v51 = vrot.slane %v942_v16, %v13594_v28  ;;  %v111_v29 = vld [vmem:[%s15902_s26] sm:$0xf]  ;;  %v112_v30 = vld [vmem:[%s15902_s26 + $0x4] sm:$0xf] }
 0x32b   :  { %1043 = vrot.lane.b32.xlu0 %v13911_v41, %s13303_s2  ;;  %1039 = vrot.lane.b32.xlu1 %v13911_v41, %s13302_s6  ;;  %v13918_v55 = vpack.c.bf16 %v957_v45, %v957_v45  ;;  %v13920_v46 = vpack.c.bf16 %v958_v23, %v958_v23  ;;  %v865_v31 = vrot.slane %v857_v15, %v13594_v28  ;;  %v14010_v45 = vsel %vm2804_vm3, %v112_v30, 0 }
 0x32c   :  { %v872_v32 = vrot.slane %v858_v25, %v13594_v28  ;;  %v881_v33 = vrot.slane %v873_v26, %v13594_v28  ;;  %v888_v2 = vrot.slane %v874_v24, %v13594_v28  ;;  %v959_v54 = vcombine.low %v940_v62, %v956_v51 }
 0x32d   :  { %12453 = vmatmul.mubr.msk.bf16.vlgmr.msra.gmra.mxu1 %vm1947_vm2, %v13918_v55  ;;  %12459 = vmatmul.mubr.msk.bf16.vlgmr.msra.gmra.mxu0 %vm1947_vm2, %v13920_v46  ;;  %v960_v56 = vcombine.high %v940_v62, %v956_v51  ;;  %v13942_v1 = vadd.f32 %v284_v34, %v13512_v53  ;;  %v14007_v34 = vsel %vm2804_vm3, %v111_v29, 0 }
 0x32e   :  { %v961_v10 = vcombine.low %v865_v31, %v872_v32  ;;  %v11926_v11 = vcombine.high %v865_v31, %v872_v32  ;;  %v977_v37 = vcombine.low %v881_v33, %v888_v2  ;;  %v11927_v47 = vcombine.high %v881_v33, %v888_v2  ;;  %12463 = vmatpush3.bf16.xpose.msra.mxu1 %v2400_v6 }
 0x32f   :  { %12469 = vmatpush3.bf16.xpose.msra.mxu0 %v2446_v7  ;;  %1047 = vrot.lane.b32.xlu1 %v13911_v41, %s13304_s29  ;;  %v13950_v48 = vpack.c.bf16 %v959_v54, %v959_v54  ;;  %v13952_v35 = vpack.c.bf16 %v960_v56, %v960_v56 }
 0x330   :  { %v968_v58 = vrot.slane %v961_v10, %v13589_v21  ;;  %v976_v59 = vrot.slane %v11926_v11, %v13589_v21  ;;  %v984_v52 = vrot.slane %v977_v37, %v13589_v21  ;;  %v992_v60 = vrot.slane %v11927_v47, %v13589_v21  ;;  %12464 = vmatprep.mubr.msk.bf16.mxu1 %vm13301_vm1, %v15878_v19 }
 0x331   :  { %12470 = vmatprep.mubr.msk.bf16.mxu0 %vm13301_vm1, %v15878_v19  ;;  %12474 = vmatprep.subr.bf16.mxu1 %v15878_v19 }
 0x332   :  { %v993_v3 = vcombine.low %v968_v58, %v976_v59  ;;  %v1009_v0 = vcombine.low %v984_v52, %v992_v60  ;;  %12480 = vmatprep.subr.bf16.mxu0 %v15878_v19  ;;  %v994_v49 = vcombine.high %v968_v58, %v976_v59  ;;  %v1010_v14 = vcombine.high %v984_v52, %v992_v60 }
 0x333   :  { %1041 = vrot.lane.b32.xlu1 %v13942_v1, %s13302_s6 }
 0x334   :  { %v1001_v36 = vrot.slane %v993_v3, %v13594_v28  ;;  %v1017_v53 = vrot.slane %v1009_v0, %v13594_v28  ;;  %v1024_v16 = vrot.slane %v1010_v14, %v13594_v28 }
 0x335   :  { %12465 = vmatmul.mubr.msk.bf16.vlgmr.msra.gmra.mxu1 %vm1947_vm2, %v13950_v48 }
 0x336   :  { %12471 = vmatmul.mubr.msk.bf16.vlgmr.msra.gmra.mxu0 %vm1947_vm2, %v13952_v35  ;;  %12475 = vmatpush3.bf16.xpose.msra.mxu1 %v13867_v12  ;;  %v1025_v61 = vcombine.low %v1001_v36, %v1017_v53  ;;  %v1026_v63 = vcombine.high %v1001_v36, %v1017_v53 }
 0x337   :  { %12481 = vmatpush3.bf16.xpose.msra.mxu0 %v13870_v13  ;;  %1045 = vrot.lane.b32.xlu1 %v13942_v1, %s13303_s2  ;;  %v1008_v13 = vrot.slane %v994_v49, %v13594_v28 }
 0x338   :  { %12476 = vmatprep.mubr.msk.bf16.mxu1 %vm13301_vm1, %v15878_v19  ;;  %12482 = vmatprep.mubr.msk.bf16.mxu0 %vm13301_vm1, %v15878_v19  ;;  %v13972_v12 = vpack.c.bf16 %v1025_v61, %v1025_v61  ;;  %v13976_v17 = vpack.c.bf16 %v1026_v63, %v1026_v63 }
 0x339   :  { %12486 = vmatprep.subr.bf16.mxu1 %v15878_v19  ;;  %12492 = vmatprep.subr.bf16.mxu0 %v15878_v19  ;;  %v1027_v18 = vcombine.low %v1008_v13, %v1024_v16  ;;  %v1028_v20 = vcombine.high %v1008_v13, %v1024_v16 }
 0x33b   :  { %1049 = vrot.lane.b32.xlu1 %v13942_v1, %s13304_s29  ;;  %v13988_v4 = vpack.c.bf16 %v1027_v18, %v1027_v18  ;;  %v13990_v22 = vpack.c.bf16 %v1028_v20, %v1028_v20 }
 0x33d   :  { %12477 = vmatmul.mubr.msk.bf16.vlgmr.msra.gmra.mxu1 %vm1947_vm2, %v13972_v12 }
 0x33e   :  { %12483 = vmatmul.mubr.msk.bf16.vlgmr.msra.gmra.mxu0 %vm1947_vm2, %v13976_v17  ;;  %12487 = vmatpush3.bf16.xpose.msra.mxu1 %v2400_v6 }
 0x33f   :  { %12493 = vmatpush3.bf16.xpose.msra.mxu0 %v2446_v7  ;;  %12488 = vmatprep.mubr.msk.bf16.mxu1 %vm13301_vm1, %v15878_v19 }
 0x340   :  { %12494 = vmatprep.mubr.msk.bf16.mxu0 %vm13301_vm1, %v15878_v19  ;;  %12498 = vmatprep.subr.bf16.mxu1 %v15878_v19 }
 0x341   :  { %12504 = vmatprep.subr.bf16.mxu0 %v15878_v19 }
 0x345   :  { %12489 = vmatmul.mubr.msk.bf16.vlgmr.msra.gmra.mxu1 %vm1947_vm2, %v13988_v4 }
 0x346   :  { %12495 = vmatmul.mubr.msk.bf16.vlgmr.msra.gmra.mxu0 %vm1947_vm2, %v13990_v22  ;;  %12500 = vmatprep.mubr.msk.bf16.mxu1 %vm13301_vm1, %v15878_v19 }
 0x347   :  { %12506 = vmatprep.mubr.msk.bf16.mxu0 %vm13301_vm1, %v15878_v19  ;;  %12499 = vmatpush3.bf16.xpose.msra.mxu1 %v14007_v34 }
 0x348   :  { %12505 = vmatpush3.bf16.xpose.msra.mxu0 %v14010_v45  ;;  %12510 = vmatprep.subr.bf16.mxu1 %v15878_v19 }
 0x349   :  { %12516 = vmatprep.subr.bf16.mxu0 %v15878_v19 }
 0x39d   :  { %v1040_v23 = vpop.permute.xlu1 %1039 }
 0x39e   :  { %1055 = vrot.lane.b32.xlu1 %v1040_v23, %s13296_s28 }
 0x3a6   :  { %v1988_v62 = vpop.f32.mrf.mxu1  ;;  %v2034_v15 = vpop.f32.mrf.mxu0 }
 0x3a8   :  { %v12406_v25 = vpop.f32.mrf.mxu1  ;;  %v12412_v26 = vpop.f32.mrf.mxu0 }
 0x3aa   :  { %v2037_v24 = vpop.f32.mrf.mxu0  ;;  %v1991_v51 = vpop.f32.mrf.mxu1 }
 0x3ac   :  { %v12407_v31 = vpop.f32.mrf.mxu1  ;;  %v12413_v32 = vpop.f32.mrf.mxu0 }
 0x3ae   :  { %v2080_v33 = vpop.f32.mrf.mxu1  ;;  %v2126_v2 = vpop.f32.mrf.mxu0 }
 0x3af   :  { %v2660_v52 = vcombine.low %v1988_v62, %v2080_v33  ;;  %v2676_v60 = vcombine.low %v2034_v15, %v2126_v2 }
 0x3b0   :  { %v12418_v6 = vpop.f32.mrf.mxu1  ;;  %v12424_v7 = vpop.f32.mrf.mxu0 }
 0x3b1   :  { %v2668_v49 = vrot.slane %v2660_v52, %v13589_v21  ;;  %v2684_v14 = vrot.slane %v2676_v60, %v13589_v21 }
 0x3b2   :  { %v2083_v10 = vpop.f32.mrf.mxu1  ;;  %v2129_v11 = vpop.f32.mrf.mxu0 }
 0x3b3   :  { %v2724_v29 = vcombine.low %v2668_v49, %v2684_v14  ;;  %v2725_v52 = vcombine.high %v2668_v49, %v2684_v14 }
 0x3b4   :  { %v12419_v37 = vpop.f32.mrf.mxu1  ;;  %v12425_v47 = vpop.f32.mrf.mxu0 }
 0x3b5   :  { %v2732_v6 = vrot.slane %v2724_v29, %v13594_v28  ;;  %v113_v37 = vld [vmem:[%s15902_s26 + $0x8] sm:$0xf]  ;;  %v114_v47 = vld [vmem:[%s15902_s26 + $0xc] sm:$0xf] }
 0x3b6   :  { %v2169_v54 = vpop.f32.mrf.mxu1  ;;  %v2212_v56 = vpop.f32.mrf.mxu0 }
 0x3b8   :  { %v12430_v58 = vpop.f32.mrf.mxu1  ;;  %v12436_v59 = vpop.f32.mrf.mxu0 }
 0x3b9   :  { %v2661_v58 = vcombine.high %v1988_v62, %v2080_v33  ;;  %v2677_v59 = vcombine.high %v2034_v15, %v2126_v2  ;;  %v2739_v33 = vrot.slane %v2725_v52, %v13594_v28 }
 0x3ba   :  { %v2172_v3 = vpop.f32.mrf.mxu1  ;;  %v2215_v0 = vpop.f32.mrf.mxu0 }
 0x3bb   :  { %v14034_v0 = vsel %vm2804_vm3, %v114_v47, 0  ;;  %v2675_v62 = vrot.slane %v2661_v58, %v13589_v21  ;;  %v2691_v15 = vrot.slane %v2677_v59, %v13589_v21 }
 0x3bc   :  { %v12431_v36 = vpop.f32.mrf.mxu1  ;;  %v12437_v53 = vpop.f32.mrf.mxu0 }
 0x3be   :  { %v2255_v61 = vpop.f32.mrf.mxu1  ;;  %v2298_v63 = vpop.f32.mrf.mxu0 }
 0x3bf   :  { %v2692_v13 = vcombine.low %v2169_v54, %v2255_v61  ;;  %v2708_v16 = vcombine.low %v2212_v56, %v2298_v63  ;;  %v2693_v51 = vcombine.high %v2169_v54, %v2255_v61  ;;  %v2709_v7 = vcombine.high %v2212_v56, %v2298_v63 }
 0x3c0   :  { %v12442_v18 = vpop.f32.mrf.mxu1  ;;  %v12448_v20 = vpop.f32.mrf.mxu0  ;;  %v14031_v56 = vsel %vm2804_vm3, %v113_v37, 0 }
 0x3c1   :  { %v2700_v30 = vrot.slane %v2692_v13, %v13589_v21  ;;  %v2716_v23 = vrot.slane %v2708_v16, %v13589_v21  ;;  %v2707_v3 = vrot.slane %v2693_v51, %v13589_v21  ;;  %v2723_v36 = vrot.slane %v2709_v7, %v13589_v21  ;;  %v115_v13 = vld [vmem:[%s15902_s26 + $0x10] sm:$0xf]  ;;  %v116_v16 = vld [vmem:[%s15902_s26 + $0x14] sm:$0xf] }
 0x3c2   :  { %v2258_v25 = vpop.f32.mrf.mxu1  ;;  %v2301_v26 = vpop.f32.mrf.mxu0  ;;  %v2740_v18 = vcombine.low %v2675_v62, %v2691_v15  ;;  %v14058_v20 = vsel %vm2804_vm3, %v115_v13, 0  ;;  %v2741_v7 = vcombine.high %v2675_v62, %v2691_v15 }
 0x3c3   :  { %v2756_v24 = vcombine.low %v2700_v30, %v2716_v23  ;;  %v2757_v10 = vcombine.high %v2700_v30, %v2716_v23  ;;  %v2772_v2 = vcombine.low %v2707_v3, %v2723_v36  ;;  %v14062_v25 = vsel %vm2804_vm3, %v116_v16, 0 }
 0x3c4   :  { %v12443_v31 = vpop.f32.mrf.mxu1  ;;  %v12449_v32 = vpop.f32.mrf.mxu0  ;;  %v2748_v26 = vrot.slane %v2740_v18, %v13594_v28  ;;  %v2755_v59 = vrot.slane %v2741_v7, %v13594_v28 }
 0x3c5   :  { %v2764_v11 = vrot.slane %v2756_v24, %v13594_v28  ;;  %v2771_v53 = vrot.slane %v2757_v10, %v13594_v28  ;;  %v2780_v29 = vrot.slane %v2772_v2, %v13594_v28  ;;  %v2773_v24 = vcombine.high %v2707_v3, %v2723_v36  ;;  %v117_v32 = vld [vmem:[%s15902_s26 + $0x18] sm:$0xf]  ;;  %v120_v3 = vld [vmem:[%s15903_s1 + $0x4] sm:$0xf] }
 0x3c6   :  { %v14082_v10 = vsel %vm2804_vm3, %v117_v32, 0 }
 0x3c7   :  { %v2788_v54 = vcombine.low %v2732_v6, %v2764_v11  ;;  %v2789_v60 = vcombine.high %v2732_v6, %v2764_v11  ;;  %v2790_v49 = vcombine.low %v2739_v33, %v2771_v53  ;;  %v2791_v14 = vcombine.high %v2739_v33, %v2771_v53  ;;  %v118_v6 = vld [vmem:[%s15902_s26 + $0x1c] sm:$0xf] }
 0x3c8   :  { %v2792_v51 = vcombine.low %v2748_v26, %v2780_v29  ;;  %v2793_v31 = vcombine.high %v2748_v26, %v2780_v29  ;;  %v2787_v11 = vrot.slane %v2773_v24, %v13594_v28  ;;  %v14086_v58 = vsel %vm2804_vm3, %v118_v6, 0 }
 0x3c9   :  { %v2796_v61 = vpack.c.bf16 %v2788_v54, %v2788_v54  ;;  %v2797_v63 = vpack.c.bf16 %v2789_v60, %v2789_v60  ;;  %v2798_v30 = vpack.c.bf16 %v2790_v49, %v2790_v49  ;;  %v2799_v23 = vpack.c.bf16 %v2791_v14, %v2791_v14  ;;  %v119_v60 = vld [vmem:[%s15903_s1] sm:$0xf] }
 0x3ca   :  { %v2800_v37 = vpack.c.bf16 %v2792_v51, %v2792_v51  ;;  %v2801_v47 = vpack.c.bf16 %v2793_v31, %v2793_v31  ;;  %v2794_v52 = vcombine.low %v2755_v59, %v2787_v11  ;;  %v2795_v54 = vcombine.high %v2755_v59, %v2787_v11 }
 0x3cb   :  { %12501 = vmatmul.mubr.msk.bf16.vlgmr.msra.gmra.mxu1 %vm2804_vm3, %v2796_v61  ;;  %12507 = vmatmul.mubr.msk.bf16.vlgmr.msra.gmra.mxu0 %vm2804_vm3, %v2797_v63  ;;  %v14106_v61 = vsel %vm2804_vm3, %v119_v60, 0  ;;  %v14109_v63 = vsel %vm2804_vm3, %v120_v3, 0 }
 0x3cc   :  { %12511 = vmatpush3.bf16.xpose.msra.mxu1 %v14031_v56  ;;  %12517 = vmatpush3.bf16.xpose.msra.mxu0 %v14034_v0  ;;  %v2802_v36 = vpack.c.bf16 %v2794_v52, %v2794_v52  ;;  %v2803_v53 = vpack.c.bf16 %v2795_v54, %v2795_v54 }
 0x3cd   :  { %12512 = vmatprep.mubr.msk.bf16.mxu1 %vm13301_vm1, %v15878_v19  ;;  %12518 = vmatprep.mubr.msk.bf16.mxu0 %vm13301_vm1, %v15878_v19 }
 0x3ce   :  { %12522 = vmatprep.subr.bf16.mxu1 %v15878_v19  ;;  %12528 = vmatprep.subr.bf16.mxu0 %v15878_v19 }
 0x3d3   :  { %12513 = vmatmul.mubr.msk.bf16.vlgmr.msra.gmra.mxu1 %vm2804_vm3, %v2798_v30  ;;  %12519 = vmatmul.mubr.msk.bf16.vlgmr.msra.gmra.mxu0 %vm2804_vm3, %v2799_v23 }
 0x3d4   :  { %12523 = vmatpush3.bf16.xpose.msra.mxu1 %v14058_v20  ;;  %12529 = vmatpush3.bf16.xpose.msra.mxu0 %v14062_v25 }
 0x3d5   :  { %12524 = vmatprep.mubr.msk.bf16.mxu1 %vm13301_vm1, %v15878_v19  ;;  %12530 = vmatprep.mubr.msk.bf16.mxu0 %vm13301_vm1, %v15878_v19 }
 0x3d6   :  { %12534 = vmatprep.subr.bf16.mxu1 %v15878_v19  ;;  %12540 = vmatprep.subr.bf16.mxu0 %v15878_v19 }
 0x3db   :  { %12525 = vmatmul.mubr.msk.bf16.vlgmr.msra.gmra.mxu1 %vm2804_vm3, %v2800_v37  ;;  %12531 = vmatmul.mubr.msk.bf16.vlgmr.msra.gmra.mxu0 %vm2804_vm3, %v2801_v47 }
 0x3dc   :  { %12535 = vmatpush3.bf16.xpose.msra.mxu1 %v14082_v10  ;;  %12541 = vmatpush3.bf16.xpose.msra.mxu0 %v14086_v58 }
 0x3dd   :  { %12536 = vmatprep.mubr.msk.bf16.mxu1 %vm13301_vm1, %v15878_v19  ;;  %12542 = vmatprep.mubr.msk.bf16.mxu0 %vm13301_vm1, %v15878_v19 }
 0x3de   :  { %12546 = vmatprep.subr.bf16.mxu1 %v15878_v19  ;;  %12552 = vmatprep.subr.bf16.mxu0 %v15878_v19 }
 0x3e3   :  { %12537 = vmatmul.mubr.msk.bf16.vlgmr.msra.gmra.mxu1 %vm2804_vm3, %v2802_v36  ;;  %12543 = vmatmul.mubr.msk.bf16.vlgmr.msra.gmra.mxu0 %vm2804_vm3, %v2803_v53 }
 0x3e4   :  { %12547 = vmatpush3.bf16.xpose.msra.mxu1 %v14106_v61  ;;  %12553 = vmatpush3.bf16.xpose.msra.mxu0 %v14109_v63 }
 0x3e5   :  { %12548 = vmatprep.mubr.msk.bf16.mxu1 %vm13301_vm1, %v15878_v19  ;;  %12554 = vmatprep.mubr.msk.bf16.mxu0 %vm13301_vm1, %v15878_v19 }
 0x3e6   :  { %12558 = vmatprep.subr.bf16.mxu1 %v15878_v19  ;;  %12564 = vmatprep.subr.bf16.mxu0 %v15878_v19 }
 0x3ed   :  { %v2344_v62 = vpop.f32.mrf.mxu1  ;;  %v2390_v15 = vpop.f32.mrf.mxu0 }
 0x3ef   :  { %v12454_v33 = vpop.f32.mrf.mxu1  ;;  %v12460_v2 = vpop.f32.mrf.mxu0 }
 0x3f1   :  { %v2347_v49 = vpop.f32.mrf.mxu1  ;;  %v2393_v14 = vpop.f32.mrf.mxu0 }
 0x3f3   :  { %v12455_v13 = vpop.f32.mrf.mxu1  ;;  %v12461_v16 = vpop.f32.mrf.mxu0 }
 0x3f5   :  { %v2436_v18 = vpop.f32.mrf.mxu1 }
 0x3f6   :  { %v2482_v29 = vpop.f32.mrf.mxu0  ;;  %v3309_v37 = vcombine.low %v2344_v62, %v2436_v18 }
 0x3f7   :  { %v12466_v30 = vpop.f32.mrf.mxu1  ;;  %v3325_v47 = vcombine.low %v2390_v15, %v2482_v29 }
 0x3f8   :  { %v12472_v23 = vpop.f32.mrf.mxu0  ;;  %v3317_v3 = vrot.slane %v3309_v37, %v13589_v21 }
 0x3f9   :  { %v2439_v26 = vpop.f32.mrf.mxu1  ;;  %v3333_v36 = vrot.slane %v3325_v47, %v13589_v21 }
 0x3fa   :  { %v2485_v24 = vpop.f32.mrf.mxu0 }
 0x3fb   :  { %v12467_v51 = vpop.f32.mrf.mxu1  ;;  %v3373_v30 = vcombine.low %v3317_v3, %v3333_v36 }
 0x3fc   :  { %v12473_v31 = vpop.f32.mrf.mxu0 }
 0x3fd   :  { %v2525_v32 = vpop.f32.mrf.mxu1  ;;  %v3381_v37 = vrot.slane %v3373_v30, %v13594_v28 }
 0x3fe   :  { %v2568_v6 = vpop.f32.mrf.mxu0 }
 0x3ff   :  { %v12478_v7 = vpop.f32.mrf.mxu1 }
 0x400   :  { %v12484_v11 = vpop.f32.mrf.mxu0 }
 0x401   :  { %v2528_v59 = vpop.f32.mrf.mxu1 }
 0x402   :  { %v2571_v52 = vpop.f32.mrf.mxu0 }
 0x403   :  { %v12479_v54 = vpop.f32.mrf.mxu1 }
 0x404   :  { %v12485_v60 = vpop.f32.mrf.mxu0  ;;  %v121_v54 = vld [vmem:[%s15903_s1 + $0x8] sm:$0xf] }
 0x405   :  { %v2611_v53 = vpop.f32.mrf.mxu1  ;;  %v122_v60 = vld [vmem:[%s15903_s1 + $0xc] sm:$0xf] }
 0x406   :  { %v3341_v33 = vcombine.low %v2525_v32, %v2611_v53  ;;  %v2654_v2 = vpop.f32.mrf.mxu0  ;;  %v3342_v7 = vcombine.high %v2525_v32, %v2611_v53 }
 0x407   :  { %v3357_v49 = vcombine.low %v2568_v6, %v2654_v2  ;;  %v12490_v14 = vpop.f32.mrf.mxu1  ;;  %v3358_v47 = vcombine.high %v2568_v6, %v2654_v2  ;;  %v14135_v6 = vsel %vm2804_vm3, %v121_v54, 0  ;;  %v14138_v2 = vsel %vm2804_vm3, %v122_v60, 0 }
 0x408   :  { %v3349_v13 = vrot.slane %v3341_v33, %v13589_v21  ;;  %v12496_v16 = vpop.f32.mrf.mxu0  ;;  %v3310_v33 = vcombine.high %v2344_v62, %v2436_v18  ;;  %v3374_v14 = vcombine.high %v3317_v3, %v3333_v36  ;;  %v3356_v53 = vrot.slane %v3342_v7, %v13589_v21 }
 0x409   :  { %v3365_v23 = vrot.slane %v3357_v49, %v13589_v21  ;;  %v2614_v26 = vpop.f32.mrf.mxu1  ;;  %v3326_v49 = vcombine.high %v2390_v15, %v2482_v29 }
 0x40a   :  { %v2657_v24 = vpop.f32.mrf.mxu0  ;;  %v3324_v62 = vrot.slane %v3310_v33, %v13589_v21  ;;  %v3388_v18 = vrot.slane %v3374_v14, %v13594_v28  ;;  %v126_v14 = vld [vmem:[%s15903_s1 + $0x1c] sm:$0xf] }
 0x40b   :  { %v3405_v51 = vcombine.low %v3349_v13, %v3365_v23  ;;  %v12491_v31 = vpop.f32.mrf.mxu1  ;;  %v3406_v59 = vcombine.high %v3349_v13, %v3365_v23  ;;  %v3372_v13 = vrot.slane %v3358_v47, %v13589_v21  ;;  %v3340_v15 = vrot.slane %v3326_v49, %v13589_v21  ;;  %v123_v24 = vld [vmem:[%s15903_s1 + $0x10] sm:$0xf]  ;;  %v125_v49 = vld [vmem:[%s15903_s1 + $0x18] sm:$0xf] }
 0x40c   :  { %v12497_v11 = vpop.f32.mrf.mxu0  ;;  %v14162_v7 = vsel %vm2804_vm3, %v123_v24, 0 }
 0x40d   :  { %v3413_v52 = vrot.slane %v3405_v51, %v13594_v28  ;;  %v3420_v30 = vrot.slane %v3406_v59, %v13594_v28  ;;  %v3421_v29 = vcombine.low %v3356_v53, %v3372_v13  ;;  %v124_v51 = vld [vmem:[%s15903_s1 + $0x14] sm:$0xf]  ;;  %v3389_v31 = vcombine.low %v3324_v62, %v3340_v15  ;;  %s13309_s1 = smov 8  }
 0x40e   :  { %v14166_v59 = vsel %vm2804_vm3, %v124_v51, 0  ;;  %v3422_v54 = vcombine.high %v3356_v53, %v3372_v13 }
 0x40f   :  { %v3437_v16 = vcombine.low %v3381_v37, %v3413_v52  ;;  %v3438_v32 = vcombine.high %v3381_v37, %v3413_v52  ;;  %v3439_v3 = vcombine.low %v3388_v18, %v3420_v30  ;;  %v3440_v36 = vcombine.high %v3388_v18, %v3420_v30 }
 0x410   :  { %v3429_v11 = vrot.slane %v3421_v29, %v13594_v28  ;;  %v3397_v52 = vrot.slane %v3389_v31, %v13594_v28  ;;  %v3436_v53 = vrot.slane %v3422_v54, %v13594_v28 }
 0x411   :  { %v3445_v23 = vpack.c.bf16 %v3437_v16, %v3437_v16  ;;  %v3446_v26 = vpack.c.bf16 %v3438_v32, %v3438_v32  ;;  %v3447_v37 = vpack.c.bf16 %v3439_v3, %v3439_v3  ;;  %v3448_v47 = vpack.c.bf16 %v3440_v36, %v3440_v36 }
 0x412   :  { %v3441_v60 = vcombine.low %v3397_v52, %v3429_v11  ;;  %v3442_v33 = vcombine.high %v3397_v52, %v3429_v11  ;;  %v3390_v16 = vcombine.high %v3324_v62, %v3340_v15  ;;  %v14186_v32 = vsel %vm2804_vm3, %v125_v49, 0 }
 0x413   :  { %12549 = vmatmul.mubr.msk.bf16.vlgmr.msra.gmra.mxu1 %vm2804_vm3, %v3445_v23  ;;  %12555 = vmatmul.mubr.msk.bf16.vlgmr.msra.gmra.mxu0 %vm2804_vm3, %v3446_v26  ;;  %v14190_v23 = vsel %vm2804_vm3, %v126_v14, 0  ;;  %v2305_v3 = vsel %vm1947_vm2, %v13918_v55, 0  ;;  %v2351_v36 = vsel %vm1947_vm2, %v13920_v46, 0  ;;  %v2397_v55 = vsel %vm1947_vm2, %v13950_v48, 0 }
 0x414   :  { %12559 = vmatpush3.bf16.xpose.msra.mxu1 %v14135_v6  ;;  %12565 = vmatpush3.bf16.xpose.msra.mxu0 %v14138_v2  ;;  %v3449_v13 = vpack.c.bf16 %v3441_v60, %v3441_v60  ;;  %v3450_v30 = vpack.c.bf16 %v3442_v33, %v3442_v33  ;;  %15904 = vst [vmem:[#allocation11_spill] sm:$0xff] %v14190_v23  ;;  %v2443_v46 = vsel %vm1947_vm2, %v13952_v35, 0 }
 0x415   :  { %12560 = vmatprep.mubr.msk.bf16.mxu1 %vm13301_vm1, %v15878_v19  ;;  %12566 = vmatprep.mubr.msk.bf16.mxu0 %vm13301_vm1, %v15878_v19  ;;  %v3404_v26 = vrot.slane %v3390_v16, %v13594_v28 }
 0x416   :  { %12570 = vmatprep.subr.bf16.mxu1 %v15878_v19  ;;  %12576 = vmatprep.subr.bf16.mxu0 %v15878_v19 }
 0x417   :  { %v3443_v62 = vcombine.low %v3404_v26, %v3436_v53  ;;  %v3444_v15 = vcombine.high %v3404_v26, %v3436_v53 }
 0x419   :  { %v3451_v18 = vpack.c.bf16 %v3443_v62, %v3443_v62  ;;  %v3452_v29 = vpack.c.bf16 %v3444_v15, %v3444_v15 }
 0x41b   :  { %12561 = vmatmul.mubr.msk.bf16.vlgmr.msra.gmra.mxu1 %vm2804_vm3, %v3447_v37  ;;  %12567 = vmatmul.mubr.msk.bf16.vlgmr.msra.gmra.mxu0 %vm2804_vm3, %v3448_v47 }
 0x41c   :  { %12571 = vmatpush3.bf16.xpose.msra.mxu1 %v14162_v7  ;;  %12577 = vmatpush3.bf16.xpose.msra.mxu0 %v14166_v59 }
 0x41d   :  { %12572 = vmatprep.mubr.msk.bf16.mxu1 %vm13301_vm1, %v15878_v19  ;;  %12578 = vmatprep.mubr.msk.bf16.mxu0 %vm13301_vm1, %v15878_v19 }
 0x41e   :  { %12582 = vmatprep.subr.bf16.mxu1 %v15878_v19  ;;  %12588 = vmatprep.subr.bf16.mxu0 %v15878_v19 }
 0x423   :  { %12573 = vmatmul.mubr.msk.bf16.vlgmr.msra.gmra.mxu1 %vm2804_vm3, %v3449_v13  ;;  %12579 = vmatmul.mubr.msk.bf16.vlgmr.msra.gmra.mxu0 %vm2804_vm3, %v3450_v30 }
 0x424   :  { %12583 = vmatpush3.bf16.xpose.msra.mxu1 %v14186_v32  ;;  %12589 = vmatpush3.bf16.xpose.msra.mxu0 %v14190_v23 }
 0x425   :  { %12584 = vmatprep.mubr.msk.bf16.mxu1 %vm13301_vm1, %v15878_v19  ;;  %12590 = vmatprep.mubr.msk.bf16.mxu0 %vm13301_vm1, %v15878_v19 }
 0x426   :  { %12594 = vmatprep.subr.bf16.mxu1 %v15878_v19  ;;  %12600 = vmatprep.subr.bf16.mxu0 %v15878_v19 }
 0x42b   :  { %12585 = vmatmul.mubr.msk.bf16.vlgmr.msra.gmra.mxu1 %vm2804_vm3, %v3451_v18  ;;  %12591 = vmatmul.mubr.msk.bf16.vlgmr.msra.gmra.mxu0 %vm2804_vm3, %v3452_v29 }
 0x42c   :  { %12595 = vmatpush3.bf16.xpose.msra.mxu1 %v2305_v3  ;;  %12601 = vmatpush3.bf16.xpose.msra.mxu0 %v2351_v36 }
 0x42d   :  { %12596 = vmatprep.mubr.msk.bf16.mxu1 %vm13301_vm1, %v15878_v19  ;;  %12602 = vmatprep.mubr.msk.bf16.mxu0 %vm13301_vm1, %v15878_v19 }
 0x42e   :  { %12606 = vmatprep.subr.bf16.mxu1 %v15878_v19  ;;  %12612 = vmatprep.subr.bf16.mxu0 %v15878_v19 }
 0x433   :  { %12597 = vmatmul.mubr.msk.bf16.vlgmr.msra.gmra.mxu1 %vm1947_vm2, %v13750_v57  ;;  %12603 = vmatmul.mubr.msk.bf16.vlgmr.msra.gmra.mxu0 %vm1947_vm2, %v13752_v50  ;;  %v2489_v57 = vsel %vm1947_vm2, %v13972_v12, 0  ;;  %v2532_v50 = vsel %vm1947_vm2, %v13976_v17, 0 }
 0x434   :  { %12607 = vmatpush3.bf16.xpose.msra.mxu1 %v2397_v55  ;;  %12613 = vmatpush3.bf16.xpose.msra.mxu0 %v2443_v46 }
 0x435   :  { %12608 = vmatprep.mubr.msk.bf16.mxu1 %vm13301_vm1, %v15878_v19  ;;  %12614 = vmatprep.mubr.msk.bf16.mxu0 %vm13301_vm1, %v15878_v19 }
 0x436   :  { %12618 = vmatprep.subr.bf16.mxu1 %v15878_v19  ;;  %12624 = vmatprep.subr.bf16.mxu0 %v15878_v19 }
 0x43b   :  { %12609 = vmatmul.mubr.msk.bf16.vlgmr.msra.gmra.mxu1 %vm1947_vm2, %v13796_v27  ;;  %12615 = vmatmul.mubr.msk.bf16.vlgmr.msra.gmra.mxu0 %vm1947_vm2, %v13798_v5  ;;  %v2575_v27 = vsel %vm1947_vm2, %v13988_v4, 0  ;;  %v2618_v5 = vsel %vm1947_vm2, %v13990_v22, 0 }
 0x43c   :  { %12619 = vmatpush3.bf16.xpose.msra.mxu1 %v2489_v57  ;;  %12625 = vmatpush3.bf16.xpose.msra.mxu0 %v2532_v50 }
 0x43d   :  { %12620 = vmatprep.mubr.msk.bf16.mxu1 %vm13301_vm1, %v15878_v19  ;;  %12626 = vmatprep.mubr.msk.bf16.mxu0 %vm13301_vm1, %v15878_v19 }
 0x43e   :  { %12630 = vmatprep.subr.bf16.mxu1 %v15878_v19  ;;  %12636 = vmatprep.subr.bf16.mxu0 %v15878_v19 }
 0x443   :  { %12621 = vmatmul.mubr.msk.bf16.vlgmr.msra.gmra.mxu1 %vm1947_vm2, %v13842_v38  ;;  %12627 = vmatmul.mubr.msk.bf16.vlgmr.msra.gmra.mxu0 %vm1947_vm2, %v13844_v44 }
 0x444   :  { %12631 = vmatpush3.bf16.xpose.msra.mxu1 %v2575_v27  ;;  %12637 = vmatpush3.bf16.xpose.msra.mxu0 %v2618_v5 }
 0x445   :  { %12632 = vmatprep.mubr.msk.bf16.mxu1 %vm13301_vm1, %v15878_v19  ;;  %12638 = vmatprep.mubr.msk.bf16.mxu0 %vm13301_vm1, %v15878_v19 }
 0x446   :  { %12642 = vmatprep.subr.bf16.mxu1 %v15878_v19  ;;  %12648 = vmatprep.subr.bf16.mxu0 %v15878_v19 }
 0x44b   :  { %12633 = vmatmul.mubr.msk.bf16.vlgmr.msra.gmra.mxu1 %vm1947_vm2, %v13858_v8  ;;  %12639 = vmatmul.mubr.msk.bf16.vlgmr.msra.gmra.mxu0 %vm1947_vm2, %v13860_v9 }
 0x44c   :  { %12644 = vmatprep.mubr.msk.bf16.mxu1 %vm13301_vm1, %v15878_v19  ;;  %12650 = vmatprep.mubr.msk.bf16.mxu0 %vm13301_vm1, %v15878_v19 }
 0x48b   :  { %v2845_v38 = vpop.f32.mrf.mxu1  ;;  %v2891_v44 = vpop.f32.mrf.mxu0 }
 0x48d   :  { %v12502_v48 = vpop.f32.mrf.mxu1  ;;  %v12508_v35 = vpop.f32.mrf.mxu0 }
 0x48f   :  { %v2848_v12 = vpop.f32.mrf.mxu1  ;;  %v2894_v17 = vpop.f32.mrf.mxu0 }
 0x491   :  { %v12503_v4 = vpop.f32.mrf.mxu1  ;;  %v12509_v22 = vpop.f32.mrf.mxu0 }
 0x493   :  { %v2937_v24 = vpop.f32.mrf.mxu1  ;;  %v2983_v51 = vpop.f32.mrf.mxu0 }
 0x494   :  { %v3173_v8 = vcombine.low %v2845_v38, %v2937_v24  ;;  %v3174_v31 = vcombine.high %v2845_v38, %v2937_v24  ;;  %v3189_v11 = vcombine.low %v2891_v44, %v2983_v51  ;;  %v3190_v9 = vcombine.high %v2891_v44, %v2983_v51 }
 0x495   :  { %v12514_v37 = vpop.f32.mrf.mxu1  ;;  %v12520_v47 = vpop.f32.mrf.mxu0 }
 0x496   :  { %v3181_v52 = vrot.slane %v3173_v8, %v13589_v21  ;;  %v3188_v54 = vrot.slane %v3174_v31, %v13589_v21  ;;  %v3197_v60 = vrot.slane %v3189_v11, %v13589_v21  ;;  %v3204_v33 = vrot.slane %v3190_v9, %v13589_v21 }
 0x497   :  { %v2940_v49 = vpop.f32.mrf.mxu1  ;;  %v2986_v14 = vpop.f32.mrf.mxu0 }
 0x498   :  { %v3237_v16 = vcombine.low %v3181_v52, %v3197_v60  ;;  %v3238_v53 = vcombine.high %v3181_v52, %v3197_v60  ;;  %v3253_v13 = vcombine.low %v3188_v54, %v3204_v33  ;;  %v3254_v30 = vcombine.high %v3188_v54, %v3204_v33 }
 0x499   :  { %v12515_v26 = vpop.f32.mrf.mxu1  ;;  %v12521_v62 = vpop.f32.mrf.mxu0 }
 0x49a   :  { %v3245_v54 = vrot.slane %v3237_v16, %v13594_v28  ;;  %v14275_v60 = vrot.slane %v3238_v53, %v13594_v28  ;;  %v14288_v62 = vrot.slane %v3253_v13, %v13594_v28 }
 0x49b   :  { %v3029_v15 = vpop.f32.mrf.mxu1  ;;  %v3075_v18 = vpop.f32.mrf.mxu0 }
 0x49d   :  { %v12526_v29 = vpop.f32.mrf.mxu1  ;;  %v12532_v3 = vpop.f32.mrf.mxu0 }
 0x49f   :  { %v3032_v36 = vpop.f32.mrf.mxu1  ;;  %v3078_v55 = vpop.f32.mrf.mxu0 }
 0x4a1   :  { %v12527_v46 = vpop.f32.mrf.mxu1  ;;  %v12533_v57 = vpop.f32.mrf.mxu0 }
 0x4a3   :  { %v3121_v50 = vpop.f32.mrf.mxu1  ;;  %v3167_v27 = vpop.f32.mrf.mxu0 }
 0x4a4   :  { %v3205_v5 = vcombine.low %v3029_v15, %v3121_v50  ;;  %v3206_v38 = vcombine.high %v3029_v15, %v3121_v50  ;;  %v3221_v44 = vcombine.low %v3075_v18, %v3167_v27  ;;  %v3222_v48 = vcombine.high %v3075_v18, %v3167_v27 }
 0x4a5   :  { %v12538_v35 = vpop.f32.mrf.mxu1  ;;  %v12544_v12 = vpop.f32.mrf.mxu0  ;;  %v14291_v15 = vrot.slane %v3254_v30, %v13594_v28 }
 0x4a6   :  { %v3213_v17 = vrot.slane %v3205_v5, %v13589_v21  ;;  %v3220_v4 = vrot.slane %v3206_v38, %v13589_v21  ;;  %v3229_v22 = vrot.slane %v3221_v44, %v13589_v21  ;;  %v3236_v24 = vrot.slane %v3222_v48, %v13589_v21 }
 0x4a7   :  { %v3124_v51 = vpop.f32.mrf.mxu1  ;;  %v3170_v8 = vpop.f32.mrf.mxu0 }
 0x4a8   :  { %v3269_v31 = vcombine.low %v3213_v17, %v3229_v22  ;;  %v3270_v11 = vcombine.high %v3213_v17, %v3229_v22  ;;  %v3285_v9 = vcombine.low %v3220_v4, %v3236_v24  ;;  %v3286_v37 = vcombine.high %v3220_v4, %v3236_v24 }
 0x4a9   :  { %v12539_v47 = vpop.f32.mrf.mxu1  ;;  %v12545_v52 = vpop.f32.mrf.mxu0 }
 0x4aa   :  { %v3277_v33 = vrot.slane %v3269_v31, %v13594_v28  ;;  %v14279_v49 = vrot.slane %v3270_v11, %v13594_v28  ;;  %v14282_v14 = vrot.slane %v3285_v9, %v13594_v28  ;;  %v14285_v26 = vrot.slane %v3286_v37, %v13594_v28 }
 0x4ac   :  { %v3301_v16 = vcombine.low %v3245_v54, %v3277_v33  ;;  %v3302_v53 = vcombine.high %v3245_v54, %v3277_v33  ;;  %v3303_v18 = vcombine.low %v14275_v60, %v14279_v49  ;;  %v3304_v29 = vcombine.high %v14275_v60, %v14279_v49 }
 0x4ad   :  { %v3305_v3 = vcombine.low %v14288_v62, %v14282_v14  ;;  %v3306_v36 = vcombine.high %v14288_v62, %v14282_v14  ;;  %v3307_v13 = vcombine.low %v14291_v15, %v14285_v26  ;;  %v3308_v30 = vcombine.high %v14291_v15, %v14285_v26 }
 0x4d3   :  { %v3493_v55 = vpop.f32.mrf.mxu1  ;;  %v3539_v46 = vpop.f32.mrf.mxu0 }
 0x4d4   :  { %3853 = vxpose.xlu0.b32.start.end [1/1] (short) (narrow) %v3539_v46, 8  ;;  %3821 = vxpose.xlu1.b32.start.end [1/1] (short) (narrow) %v3493_v55, 8 }
 0x4d5   :  { %v12550_v57 = vpop.f32.mrf.mxu1  ;;  %v12556_v50 = vpop.f32.mrf.mxu0 }
 0x4d7   :  { %v3496_v27 = vpop.f32.mrf.mxu1  ;;  %v3542_v5 = vpop.f32.mrf.mxu0 }
 0x4d9   :  { %v12551_v38 = vpop.f32.mrf.mxu1  ;;  %v12557_v44 = vpop.f32.mrf.mxu0 }
 0x4db   :  { %v3585_v48 = vpop.f32.mrf.mxu1  ;;  %v3631_v35 = vpop.f32.mrf.mxu0 }
 0x4dc   :  { %3885 = vxpose.xlu0.b32.start.end [1/1] (short) (narrow) %v3585_v48, 8 }
 0x4dd   :  { %v12562_v12 = vpop.f32.mrf.mxu1  ;;  %v12568_v17 = vpop.f32.mrf.mxu0 }
 0x4df   :  { %v3588_v4 = vpop.f32.mrf.mxu1  ;;  %v3634_v22 = vpop.f32.mrf.mxu0 }
 0x4e0   :  { %3917 = vxpose.xlu0.b32.start.end [1/1] (short) (narrow) %v3631_v35, 8 }
 0x4e1   :  { %v12563_v24 = vpop.f32.mrf.mxu1  ;;  %v12569_v51 = vpop.f32.mrf.mxu0 }
 0x4e3   :  { %v3677_v8 = vpop.f32.mrf.mxu1  ;;  %v3723_v31 = vpop.f32.mrf.mxu0 }
 0x4e4   :  { %3981 = vxpose.xlu1.b32.start.end [1/1] (short) (narrow) %v3723_v31, 8  ;;  %3949 = vxpose.xlu0.b32.start.end [1/1] (short) (narrow) %v3677_v8, 8 }
 0x4e5   :  { %v12574_v11 = vpop.f32.mrf.mxu1  ;;  %v12580_v9 = vpop.f32.mrf.mxu0 }
 0x4e7   :  { %v3680_v37 = vpop.f32.mrf.mxu1  ;;  %v3726_v47 = vpop.f32.mrf.mxu0 }
 0x4e9   :  { %v12575_v52 = vpop.f32.mrf.mxu1  ;;  %v12581_v54 = vpop.f32.mrf.mxu0 }
 0x4eb   :  { %v3769_v60 = vpop.f32.mrf.mxu1  ;;  %v3815_v33 = vpop.f32.mrf.mxu0 }
 0x4ec   :  { %4045 = vxpose.xlu1.b32.start.end [1/1] (short) (narrow) %v3815_v33, 8  ;;  %4013 = vxpose.xlu0.b32.start.end [1/1] (short) (narrow) %v3769_v60, 8 }
 0x4ed   :  { %v12586_v49 = vpop.f32.mrf.mxu1  ;;  %v12592_v55 = vpop.f32.mrf.mxu0 }
 0x4ef   :  { %v3772_v46 = vpop.f32.mrf.mxu1  ;;  %v3818_v57 = vpop.f32.mrf.mxu0 }
 0x4f1   :  { %v12587_v50 = vpop.f32.mrf.mxu1  ;;  %v12593_v27 = vpop.f32.mrf.mxu0 }
 0x4f3   :  { %v4639_v5 = vpop.f32.mrf.mxu1  ;;  %v4679_v38 = vpop.f32.mrf.mxu0 }
 0x4f4   :  { %v14305_v44 = vadd.f32 %v4639_v5, %v3301_v16  ;;  %v14307_v48 = vadd.f32 %v4679_v38, %v3302_v53 }
 0x4f5   :  { %v12598_v35 = vpop.f32.mrf.mxu1  ;;  %v12604_v12 = vpop.f32.mrf.mxu0 }
 0x4f7   :  { %v4642_v17 = vpop.f32.mrf.mxu1  ;;  %v4682_v4 = vpop.f32.mrf.mxu0 }
 0x4f8   :  { %v14335_v4 = vpop.permute.xlu1 %1047 }
 0x4f9   :  { %v12599_v22 = vpop.f32.mrf.mxu1  ;;  %v12605_v24 = vpop.f32.mrf.mxu0 }
 0x4fb   :  { %v4719_v51 = vpop.f32.mrf.mxu1  ;;  %v4759_v8 = vpop.f32.mrf.mxu0 }
 0x4fc   :  { %v14309_v31 = vadd.f32 %v4719_v51, %v3303_v18  ;;  %v14311_v11 = vadd.f32 %v4759_v8, %v3304_v29  ;;  %v14337_v22 = vpop.permute.xlu1 %1041 }
 0x4fd   :  { %v12610_v9 = vpop.f32.mrf.mxu1  ;;  %v12616_v37 = vpop.f32.mrf.mxu0 }
 0x4ff   :  { %v4722_v47 = vpop.f32.mrf.mxu1  ;;  %v4762_v52 = vpop.f32.mrf.mxu0 }
 0x500   :  { %v14341_v24 = vpop.permute.xlu1 %1045 }
 0x501   :  { %v12611_v16 = vpop.f32.mrf.mxu1  ;;  %v12617_v54 = vpop.f32.mrf.mxu0 }
 0x503   :  { %v4799_v53 = vpop.f32.mrf.mxu1  ;;  %v4839_v60 = vpop.f32.mrf.mxu0 }
 0x504   :  { %v14316_v33 = vadd.f32 %v4799_v53, %v3305_v3  ;;  %v14321_v18 = vadd.f32 %v4839_v60, %v3306_v36  ;;  %v14343_v15 = vpop.permute.xlu1 %1049 }
 0x505   :  { %v12622_v29 = vpop.f32.mrf.mxu1  ;;  %v12628_v49 = vpop.f32.mrf.mxu0 }
 0x507   :  { %v4802_v55 = vpop.f32.mrf.mxu1  ;;  %v4842_v46 = vpop.f32.mrf.mxu0 }
 0x508   :  { %v14345_v51 = vpop.permute.xlu1 %1055 }
 0x509   :  { %v12623_v57 = vpop.f32.mrf.mxu1  ;;  %v12629_v50 = vpop.f32.mrf.mxu0 }
 0x50b   :  { %v4879_v27 = vpop.f32.mrf.mxu1  ;;  %v4919_v5 = vpop.f32.mrf.mxu0 }
 0x50c   :  { %v14326_v38 = vadd.f32 %v4879_v27, %v3307_v13  ;;  %v14331_v3 = vadd.f32 %v4919_v5, %v3308_v30  ;;  %v14339_v13 = vpop.permute.xlu0 %1043 }
 0x50d   :  { %v12634_v14 = vpop.f32.mrf.mxu1  ;;  %v12640_v62 = vpop.f32.mrf.mxu0 }
 0x50f   :  { %v4882_v36 = vpop.f32.mrf.mxu1  ;;  %v4922_v35 = vpop.f32.mrf.mxu0 }
 0x511   :  { %v12635_v12 = vpop.f32.mrf.mxu1  ;;  %v12641_v17 = vpop.f32.mrf.mxu0 }
 0x515   :  { %1051 = vrot.lane.b32.xlu0 %v13911_v41, %s13296_s28 }
 0x550   :  { %v3869_v26 = vpop.trf.xlu0  ;;  %v3837_v8 = vpop.trf.xlu1 }
 0x558   :  { %v3901_v30 = vpop.trf.xlu0 }
 0x559   :  { %v4077_v52 = vcombine.low %v3837_v8, %v3901_v30  ;;  %v4078_v57 = vcombine.high %v3837_v8, %v3901_v30 }
 0x55b   :  { %v4085_v16 = vrot.slane %v4077_v52, %v13589_v21  ;;  %v4092_v17 = vrot.slane %v4078_v57, %v13589_v21 }
 0x55c   :  { %v3933_v9 = vpop.trf.xlu0 }
 0x55d   :  { %v4093_v41 = vcombine.low %v3869_v26, %v3933_v9  ;;  %v4094_v50 = vcombine.high %v3869_v26, %v3933_v9 }
 0x55f   :  { %v4101_v54 = vrot.slane %v4093_v41, %v13589_v21  ;;  %v4108_v52 = vrot.slane %v4094_v50, %v13589_v21 }
 0x560   :  { %v3997_v37 = vpop.trf.xlu1  ;;  %v3965_v47 = vpop.trf.xlu0 }
 0x561   :  { %v4141_v27 = vcombine.low %v4085_v16, %v4101_v54 }
 0x568   :  { %v4061_v53 = vpop.trf.xlu1  ;;  %v4029_v60 = vpop.trf.xlu0 }
 0x569   :  { %v4125_v29 = vcombine.low %v3997_v37, %v4061_v53  ;;  %v4126_v49 = vcombine.high %v3997_v37, %v4061_v53  ;;  %v4109_v55 = vcombine.low %v3965_v47, %v4029_v60  ;;  %v4110_v46 = vcombine.high %v3965_v47, %v4029_v60 }
 0x56a   :  { %v4142_v37 = vcombine.high %v4085_v16, %v4101_v54  ;;  %v4149_v47 = vrot.slane %v4141_v27, %v13594_v28  ;;  %v4157_v53 = vcombine.low %v4092_v17, %v4108_v52  ;;  %v4158_v16 = vcombine.high %v4092_v17, %v4108_v52 }
 0x56b   :  { %v4133_v5 = vrot.slane %v4125_v29, %v13589_v21  ;;  %v4117_v14 = vrot.slane %v4109_v55, %v13589_v21  ;;  %v4140_v62 = vrot.slane %v4126_v49, %v13589_v21  ;;  %v4124_v36 = vrot.slane %v4110_v46, %v13589_v21 }
 0x56c   :  { %v4156_v60 = vrot.slane %v4142_v37, %v13594_v28  ;;  %v4165_v54 = vrot.slane %v4157_v53, %v13594_v28 }
 0x56d   :  { %v4173_v35 = vcombine.low %v4117_v14, %v4133_v5  ;;  %v4174_v12 = vcombine.high %v4117_v14, %v4133_v5  ;;  %v4189_v30 = vcombine.low %v4124_v36, %v4140_v62  ;;  %v4190_v29 = vcombine.high %v4124_v36, %v4140_v62 }
 0x56e   :  { %v4172_v5 = vrot.slane %v4158_v16, %v13594_v28 }
 0x56f   :  { %v4181_v26 = vrot.slane %v4173_v35, %v13594_v28  ;;  %v4188_v41 = vrot.slane %v4174_v12, %v13594_v28  ;;  %v4197_v46 = vrot.slane %v4189_v30, %v13594_v28  ;;  %v4204_v27 = vrot.slane %v4190_v29, %v13594_v28 }
 0x571   :  { %v4206_v8 = vcombine.high %v4149_v47, %v4181_v26  ;;  %v4205_v9 = vcombine.low %v4149_v47, %v4181_v26  ;;  %v4208_v49 = vcombine.high %v4156_v60, %v4188_v41  ;;  %v4207_v55 = vcombine.low %v4156_v60, %v4188_v41 }
 0x572   :  { %v4210_v57 = vcombine.high %v4165_v54, %v4197_v46  ;;  %v4209_v50 = vcombine.low %v4165_v54, %v4197_v46  ;;  %v4212_v14 = vcombine.high %v4172_v5, %v4204_v27  ;;  %v4211_v35 = vcombine.low %v4172_v5, %v4204_v27  ;;  %v11905_v54 = vld [vmem:[%s15905_s3] ss:$0 sm:$0xff] }
 0x573   :  { %4245 = vxpose.xlu1.b32.start.end [1/1] (short) (narrow) %v4206_v8, 8  ;;  %4213 = vxpose.xlu0.b32.start.end [1/1] (short) (narrow) %v4205_v9, 8 }
 0x577   :  { %4309 = vxpose.xlu1.b32.start.end [1/1] (short) (narrow) %v4208_v49, 8  ;;  %4277 = vxpose.xlu0.b32.start.end [1/1] (short) (narrow) %v4207_v55, 8 }
 0x57b   :  { %4373 = vxpose.xlu1.b32.start.end [1/1] (short) (narrow) %v4210_v57, 8  ;;  %4341 = vxpose.xlu0.b32.start.end [1/1] (short) (narrow) %v4209_v50, 8 }
 0x57f   :  { %4437 = vxpose.xlu1.b32.start.end [1/1] (short) (narrow) %v4212_v14, 8  ;;  %4405 = vxpose.xlu0.b32.start.end [1/1] (short) (narrow) %v4211_v35, 8 }
 0x587   :  { %v14363_v62 = vpop.permute.xlu0 %1051 }
 0x5ef   :  { %v4261_v36 = vpop.trf.xlu1  ;;  %v4229_v12 = vpop.trf.xlu0 }
 0x5f3   :  { %v4325_v17 = vpop.trf.xlu1  ;;  %v4293_v52 = vpop.trf.xlu0 }
 0x5f4   :  { %v4485_v37 = vcombine.low %v4261_v36, %v4325_v17  ;;  %v4469_v47 = vcombine.low %v4229_v12, %v4293_v52 }
 0x5f6   :  { %v4493_v8 = vrot.slane %v4485_v37, %v13589_v21  ;;  %v4477_v9 = vrot.slane %v4469_v47, %v13589_v21  ;;  %v14377_v37 = vmul.f32 %v11905_v54, %v13488_v39 }
 0x5f7   :  { %v4389_v26 = vpop.trf.xlu1  ;;  %v4357_v30 = vpop.trf.xlu0 }
 0x5f8   :  { %v4533_v49 = vcombine.low %v4477_v9, %v4493_v8  ;;  %v4534_v55 = vcombine.high %v4477_v9, %v4493_v8  ;;  %15906 = vst [vmem:[#allocation12_spill] sm:$0xff] %v14377_v37  ;;  %vm4933_vm4 = vcmp.gt.f32.partialorder %v14377_v37, 0.0 }
 0x5fa   :  { %v4541_v27 = vrot.slane %v4533_v49, %v13594_v28  ;;  %v4548_v14 = vrot.slane %v4534_v55, %v13594_v28 }
 0x5fb   :  { %v4453_v41 = vpop.trf.xlu1  ;;  %v4421_v53 = vpop.trf.xlu0 }
 0x5fc   :  { %v4517_v60 = vcombine.low %v4389_v26, %v4453_v41  ;;  %v4501_v29 = vcombine.low %v4357_v30, %v4421_v53  ;;  %v4502_v54 = vcombine.high %v4357_v30, %v4421_v53 }
 0x5fe   :  { %v4525_v46 = vrot.slane %v4517_v60, %v13589_v21  ;;  %v4509_v16 = vrot.slane %v4501_v29, %v13589_v21 }
 0x600   :  { %v4565_v57 = vcombine.low %v4509_v16, %v4525_v46  ;;  %v4566_v50 = vcombine.high %v4509_v16, %v4525_v46 }
 0x602   :  { %v4573_v5 = vrot.slane %v4565_v57, %v13594_v28  ;;  %v4580_v35 = vrot.slane %v4566_v50, %v13594_v28  ;;  %v4486_v57 = vcombine.high %v4261_v36, %v4325_v17  ;;  %v4470_v50 = vcombine.high %v4229_v12, %v4293_v52 }
 0x604   :  { %v4597_v47 = vcombine.low %v4541_v27, %v4573_v5  ;;  %v4599_v8 = vcombine.low %v4548_v14, %v4580_v35  ;;  %v4598_v9 = vcombine.high %v4541_v27, %v4573_v5  ;;  %v4516_v5 = vrot.slane %v4502_v54, %v13589_v21 }
 0x606   :  { %v4925_v60 = vadd.f32 %v14305_v44, %v4597_v47  ;;  %v4927_v29 = vadd.f32 %v14309_v31, %v4599_v8  ;;  %v4926_v46 = vadd.f32 %v14307_v48, %v4598_v9  ;;  %v4518_v48 = vcombine.high %v4389_v26, %v4453_v41 }
 0x607   :  { %v4500_v47 = vrot.slane %v4486_v57, %v13589_v21  ;;  %v4484_v8 = vrot.slane %v4470_v50, %v13589_v21 }
 0x608   :  { %v4935_v49 = vsel %vm4933_vm4, %v4925_v60, -1e+09  ;;  %v4937_v55 = vsel %vm4933_vm4, %v4927_v29, -1e+09  ;;  %v4936_v44 = vsel %vm4933_vm4, %v4926_v46, -1e+09  ;;  %v4532_v27 = vrot.slane %v4518_v48, %v13589_v21 }
 0x609   :  { %v4943_v39 = vsel %vm1947_vm2, %v4935_v49, -inf  ;;  %v4949_v16 = vsel %vm1947_vm2, %v4937_v55, -inf  ;;  %v4946_v31 = vsel %vm1947_vm2, %v4936_v44, -inf  ;;  %v4549_v60 = vcombine.low %v4484_v8, %v4500_v47 }
 0x60a   :  { %4944 = vmax.xlane.f32.xlu1 %v4943_v39  ;;  %4950 = vmax.xlane.f32.xlu0 %v4949_v16  ;;  %v4581_v9 = vcombine.low %v4516_v5, %v4532_v27  ;;  %v4600_v29 = vcombine.high %v4548_v14, %v4580_v35  ;;  %v4582_v36 = vcombine.high %v4516_v5, %v4532_v27 }
 0x60b   :  { %v4557_v46 = vrot.slane %v4549_v60, %v13594_v28  ;;  %v4550_v52 = vcombine.high %v4484_v8, %v4500_v47 }
 0x60c   :  { %v4928_v12 = vadd.f32 %v14311_v11, %v4600_v29  ;;  %v4596_v14 = vrot.slane %v4582_v36, %v13594_v28 }
 0x60d   :  { %v4564_v35 = vrot.slane %v4550_v52, %v13594_v28 }
 0x60e   :  { %4947 = vmax.xlane.f32.xlu1 %v4946_v31  ;;  %v14411_v30 = vsel %vm4933_vm4, %v4928_v12, -1e+09 }
 0x60f   :  { %v4952_v39 = vsel %vm1947_vm2, %v14411_v30, -inf  ;;  %v4603_v16 = vcombine.low %v4564_v35, %v4596_v14  ;;  %v4604_v54 = vcombine.high %v4564_v35, %v4596_v14 }
 0x611   :  { %v4931_v48 = vadd.f32 %v14326_v38, %v4603_v16 }
 0x61f   :  { %1063 = vrot.lane.b32.xlu1 %v14335_v4, %s13296_s28  ;;  %v4589_v4 = vrot.slane %v4581_v9, %v13594_v28 }
 0x620   :  { %1059 = vrot.lane.b32.xlu0 %v14339_v13, %s13296_s28  ;;  %v11906_v13 = vld [vmem:[%s15905_s3 + $0x1] ss:$0 sm:$0xff] }
 0x621   :  { %v4601_v17 = vcombine.low %v4557_v46, %v4589_v4  ;;  %v14407_v26 = vmul.f32 %v11906_v13, %v13490_v40  ;;  %v4602_v53 = vcombine.high %v4557_v46, %v4589_v4 }
 0x623   :  { %15907 = vst [vmem:[#allocation13_spill] sm:$0xff] %v14407_v26  ;;  %v4929_v41 = vadd.f32 %v14316_v33, %v4601_v17  ;;  %vm4934_vm5 = vcmp.gt.f32.partialorder %v14407_v26, 0.0  ;;  %v4930_v11 = vadd.f32 %v14321_v18, %v4602_v53  ;;  %v4932_v18 = vadd.f32 %v14331_v3, %v4604_v54 }
 0x624   :  { %v14435_v50 = vsel %vm4934_vm5, %v4931_v48, -1e+09 }
 0x625   :  { %v14421_v40 = vsel %vm4934_vm5, %v4929_v41, -1e+09  ;;  %v14428_v31 = vsel %vm4934_vm5, %v4930_v11, -1e+09  ;;  %v4961_v27 = vsel %vm1947_vm2, %v14435_v50, -inf }
 0x626   :  { %v4955_v33 = vsel %vm1947_vm2, %v14421_v40, -inf  ;;  %v4958_v57 = vsel %vm1947_vm2, %v14428_v31, -inf  ;;  %v14442_v5 = vsel %vm4934_vm5, %v4932_v18, -1e+09 }
 0x627   :  { %v4964_v38 = vsel %vm1947_vm2, %v14442_v5, -inf }
 0x643   :  { %4953 = vmax.xlane.f32.xlu1 %v4952_v39 }
 0x647   :  { %4956 = vmax.xlane.f32.xlu1 %v4955_v33 }
 0x64b   :  { %4959 = vmax.xlane.f32.xlu1 %v4958_v57 }
 0x64f   :  { %4962 = vmax.xlane.f32.xlu1 %v4961_v27 }
 0x653   :  { %4965 = vmax.xlane.f32.xlu1 %v4964_v38 }
 0x664   :  { %1053 = vrot.lane.b32.xlu1 %v13942_v1, %s13296_s28 }
 0x693   :  { %v4945_v47 = vpop.xlane.xlu1 %4944  ;;  %v4951_v8 = vpop.xlane.xlu0 %4950 }
 0x694   :  { %v4967_v9 = vsub.f32 %v4935_v49, %v4945_v47  ;;  %v4969_v60 = vsub.f32 %v4937_v55, %v4951_v8 }
 0x696   :  { %v4975_v3 = vmul.f32 1.442695, %v4967_v9  ;;  %v4979_v29 = vmul.f32 1.442695, %v4969_v60 }
 0x697   :  { %v4948_v4 = vpop.xlane.xlu1 %4947  ;;  %v1060_v46 = vpop.permute.xlu0 %1059 }
 0x698   :  { %13140 = vpow2.f32 %v4975_v3  ;;  %v4968_v13 = vsub.f32 %v4936_v44, %v4948_v4  ;;  %v1075_v12 = vcombine.low %v14363_v62, %v1060_v46  ;;  %v1076_v17 = vcombine.high %v14363_v62, %v1060_v46 }
 0x699   :  { %13142 = vpow2.f32 %v4979_v29 }
 0x69a   :  { %v4977_v36 = vmul.f32 1.442695, %v4968_v13  ;;  %v1083_v49 = vrot.slane %v1075_v12, %v13589_v21  ;;  %v1090_v55 = vrot.slane %v1076_v17, %v13589_v21 }
 0x69b   :  { %v1064_v52 = vpop.permute.xlu1 %1063 }
 0x69c   :  { %13144 = vpow2.f32 %v4977_v36  ;;  %v1091_v1 = vcombine.low %v14345_v51, %v1064_v52  ;;  %v1092_v41 = vcombine.high %v14345_v51, %v1064_v52 }
 0x69e   :  { %v1099_v53 = vrot.slane %v1091_v1, %v13589_v21  ;;  %v1106_v44 = vrot.slane %v1092_v41, %v13589_v21 }
 0x6a0   :  { %v1107_v14 = vcombine.low %v1083_v49, %v1099_v53  ;;  %v1108_v35 = vcombine.high %v1083_v49, %v1099_v53  ;;  %v1123_v39 = vcombine.low %v1090_v55, %v1106_v44  ;;  %v1124_v11 = vcombine.high %v1090_v55, %v1106_v44 }
 0x6a2   :  { %v1115_v62 = vrot.slane %v1107_v14, %v13594_v28  ;;  %v1122_v16 = vrot.slane %v1108_v35, %v13594_v28  ;;  %v1131_v33 = vrot.slane %v1123_v39, %v13594_v28  ;;  %v1138_v51 = vrot.slane %v1124_v11, %v13594_v28 }
 0x6a4   :  { %v1211_v48 = vcombine.low %v1115_v62, %v1122_v16  ;;  %v11928_v54 = vcombine.high %v1115_v62, %v1122_v16  ;;  %v1227_v57 = vcombine.low %v1131_v33, %v1138_v51  ;;  %v11929_v18 = vcombine.high %v1131_v33, %v1138_v51 }
 0x6a5   :  { %v13141_v27 = vpop.eup %13140 }
 0x6a6   :  { %v13143_v38 = vpop.eup %13142  ;;  %v14461_v47 = vmul.f32 %v13141_v27, %v14377_v37  ;;  %v1218_v8 = vrot.slane %v1211_v48, %v13589_v21  ;;  %v1226_v9 = vrot.slane %v11928_v54, %v13589_v21  ;;  %v1234_v60 = vrot.slane %v1227_v57, %v13589_v21 }
 0x6a7   :  { %v1242_v3 = vrot.slane %v11929_v18, %v13589_v21  ;;  %v14470_v4 = vmul.f32 %v13143_v38, %v14377_v37 }
 0x6a8   :  { %v4999_v29 = vsel %vm1947_vm2, %v14461_v47, 0.0  ;;  %v1243_v46 = vcombine.low %v1218_v8, %v1226_v9  ;;  %v1244_v13 = vcombine.high %v1218_v8, %v1226_v9 }
 0x6a9   :  { %v13145_v36 = vpop.eup %13144  ;;  %5000 = vadd.xlane.f32.xlu0 %v4999_v29  ;;  %v1259_v12 = vcombine.low %v1234_v60, %v1242_v3  ;;  %v1260_v17 = vcombine.high %v1234_v60, %v1242_v3  ;;  %v5005_v53 = vsel %vm1947_vm2, %v14470_v4, 0.0 }
 0x6aa   :  { %v14473_v52 = vmul.f32 %v13145_v36, %v14377_v37  ;;  %v1251_v1 = vrot.slane %v1243_v46, %v13594_v28  ;;  %v1258_v41 = vrot.slane %v1244_v13, %v13594_v28 }
 0x6ab   :  { %v1267_v49 = vrot.slane %v1259_v12, %v13594_v28  ;;  %v1274_v55 = vrot.slane %v1260_v17, %v13594_v28 }
 0x6ac   :  { %v5002_v44 = vsel %vm1947_vm2, %v14473_v52, 0.0 }
 0x6ad   :  { %5006 = vadd.xlane.f32.xlu0 %v5005_v53  ;;  %5003 = vadd.xlane.f32.xlu1 %v5002_v44  ;;  %v1275_v14 = vcombine.low %v1251_v1, %v1267_v49  ;;  %v1276_v35 = vcombine.high %v1251_v1, %v1267_v49  ;;  %v14483_v39 = vcombine.low %v1258_v41, %v1274_v55 }
 0x6ae   :  { %v14485_v11 = vcombine.high %v1258_v41, %v1274_v55 }
 0x6af   :  { %v1347_v62 = vpack.c.bf16 %v1275_v14, %v1275_v14  ;;  %v1348_v16 = vpack.c.bf16 %v1276_v35, %v1276_v35 }
 0x6b1   :  { %v5060_v33 = vsel %vm5058_vm6, %v1347_v62, 0  ;;  %v5106_v51 = vsel %vm5058_vm6, %v1348_v16, 0 }
 0x6b2   :  { %12643 = vmatpush3.bf16.msra.mxu1 %v5060_v33  ;;  %12649 = vmatpush3.bf16.msra.mxu0 %v5106_v51 }
 0x6b3   :  { %12654 = vmatprep.subr.bf16.mxu1 %v15878_v19  ;;  %12660 = vmatprep.subr.bf16.mxu0 %v15878_v19 }
 0x6cc   :  { %v4954_v48 = vpop.xlane.xlu1 %4953 }
 0x6cd   :  { %v4970_v54 = vsub.f32 %v14411_v30, %v4954_v48 }
 0x6cf   :  { %v4981_v57 = vmul.f32 1.442695, %v4970_v54 }
 0x6d0   :  { %v4957_v18 = vpop.xlane.xlu1 %4956 }
 0x6d1   :  { %13146 = vpow2.f32 %v4981_v57  ;;  %v4971_v27 = vsub.f32 %v14421_v40, %v4957_v18  ;;  %v1349_v18 = vpack.c.bf16 %v14483_v39, %v14483_v39 }
 0x6d3   :  { %v4983_v38 = vmul.f32 1.442695, %v4971_v27 }
 0x6d4   :  { %v4960_v8 = vpop.xlane.xlu1 %4959 }
 0x6d5   :  { %13148 = vpow2.f32 %v4983_v38  ;;  %v4972_v9 = vsub.f32 %v14428_v31, %v4960_v8 }
 0x6d7   :  { %v4985_v60 = vmul.f32 1.442695, %v4972_v9  ;;  %v5152_v9 = vsel %vm5058_vm6, %v1349_v18, 0 }
 0x6d8   :  { %v4963_v17 = vpop.xlane.xlu1 %4962 }
 0x6d9   :  { %13150 = vpow2.f32 %v4985_v60  ;;  %v4973_v49 = vsub.f32 %v14435_v50, %v4963_v17 }
 0x6db   :  { %v4987_v53 = vmul.f32 1.442695, %v4973_v49 }
 0x6dc   :  { %v4966_v1 = vpop.xlane.xlu1 %4965 }
 0x6dd   :  { %v4974_v41 = vsub.f32 %v14442_v5, %v4966_v1 }
 0x6de   :  { %v13147_v3 = vpop.eup %13146 }
 0x6df   :  { %v14495_v29 = vmul.f32 %v13147_v3, %v14377_v37  ;;  %v4989_v55 = vmul.f32 1.442695, %v4974_v41  ;;  %v1350_v3 = vpack.c.bf16 %v14485_v11, %v14485_v11 }
 0x6e0   :  { %v1054_v50 = vpop.permute.xlu1 %1053 }
 0x6e1   :  { %v5008_v46 = vsel %vm1947_vm2, %v14495_v29, 0.0  ;;  %13152 = vpow2.f32 %v4989_v55 }
 0x6e2   :  { %v13149_v30 = vpop.eup %13148  ;;  %5009 = vadd.xlane.f32.xlu1 %v5008_v46  ;;  %13154 = vpow2.f32 %v4987_v53  ;;  %v5198_v46 = vsel %vm5058_vm6, %v1350_v3, 0 }
 0x6e3   :  { %v14500_v13 = vmul.f32 %v13149_v30, %v14407_v26 }
 0x6e5   :  { %v5011_v40 = vsel %vm1947_vm2, %v14500_v13, 0.0 }
 0x6e6   :  { %v13151_v36 = vpop.eup %13150  ;;  %5012 = vadd.xlane.f32.xlu0 %v5011_v40 }
 0x6e7   :  { %v14505_v31 = vmul.f32 %v13151_v36, %v14407_v26 }
 0x6e9   :  { %v5014_v12 = vsel %vm1947_vm2, %v14505_v31, 0.0 }
 0x6ea   :  { %5015 = vadd.xlane.f32.xlu0 %v5014_v12 }
 0x6ee   :  { %v13153_v44 = vpop.eup %13152 }
 0x6ef   :  { %v14518_v14 = vmul.f32 %v13153_v44, %v14407_v26 }
 0x6f3   :  { %1061 = vrot.lane.b32.xlu1 %v14341_v24, %s13296_s28  ;;  %v13155_v24 = vpop.eup %13154 }
 0x6f4   :  { %v14523_v35 = vmul.f32 %v13155_v24, %v14407_v26 }
 0x6f7   :  { %1065 = vrot.lane.b32.xlu1 %v14343_v15, %s13296_s28  ;;  %v5020_v15 = vsel %vm1947_vm2, %v14518_v14, 0.0 }
 0x700   :  { %1057 = vrot.lane.b32.xlu0 %v14337_v22, %s13296_s28  ;;  %v5017_v22 = vsel %vm1947_vm2, %v14523_v35, 0.0 }
 0x71b   :  { %5021 = vadd.xlane.f32.xlu1 %v5020_v15 }
 0x71f   :  { %5018 = vadd.xlane.f32.xlu0 %v5017_v22 }
 0x732   :  { %v5001_v5 = vpop.xlane.xlu0 %5000 }
 0x733   :  { %v5023_v62 = vadd.f32 1e-20, %v5001_v5 }
 0x735   :  { %13156 = vrcp.f32 %v5023_v62 }
 0x736   :  { %v5007_v16 = vpop.xlane.xlu0 %5006  ;;  %v5004_v33 = vpop.xlane.xlu1 %5003 }
 0x737   :  { %v5025_v51 = vadd.f32 1e-20, %v5007_v16  ;;  %v5024_v48 = vadd.f32 1e-20, %v5004_v33 }
 0x739   :  { %13158 = vrcp.f32 %v5025_v51 }
 0x73a   :  { %13160 = vrcp.f32 %v5024_v48 }
 0x742   :  { %v13157_v54 = vpop.eup %13156 }
 0x743   :  { %v5039_v57 = vmul.f32 %v13157_v54, %v14461_v47 }
 0x745   :  { %v5047_v27 = vpack.c.bf16 %v5039_v57, %v5039_v57 }
 0x746   :  { %v13159_v38 = vpop.eup %13158 }
 0x747   :  { %v13161_v8 = vpop.eup %13160  ;;  %12645 = vmatmul.mubr.msk.bf16.vlgmr.msra.gmra.mxu1 %vm1947_vm2, %v5047_v27  ;;  %v5041_v47 = vmul.f32 %v13159_v38, %v14470_v4 }
 0x748   :  { %12655 = vmatpush3.bf16.msra.mxu1 %v5152_v9  ;;  %v5040_v60 = vmul.f32 %v13161_v8, %v14473_v52  ;;  %12656 = vmatprep.mubr.msk.bf16.mxu1 %vm13301_vm1, %v15878_v19 }
 0x749   :  { %12666 = vmatprep.subr.bf16.mxu1 %v15878_v19  ;;  %v5049_v30 = vpack.c.bf16 %v5041_v47, %v5041_v47 }
 0x74a   :  { %v5048_v39 = vpack.c.bf16 %v5040_v60, %v5040_v60 }
 0x74c   :  { %12651 = vmatmul.mubr.msk.bf16.vlgmr.msra.gmra.mxu0 %vm1947_vm2, %v5048_v39 }
 0x74d   :  { %12661 = vmatpush3.bf16.msra.mxu0 %v5198_v46  ;;  %12662 = vmatprep.mubr.msk.bf16.mxu0 %vm13301_vm1, %v15878_v19 }
 0x74e   :  { %12672 = vmatprep.subr.bf16.mxu0 %v15878_v19 }
 0x74f   :  { %12657 = vmatmul.mubr.msk.bf16.vlgmr.msra.gmra.mxu1 %vm1947_vm2, %v5049_v30 }
 0x750   :  { %12668 = vmatprep.mubr.msk.bf16.mxu1 %vm13301_vm1, %v15878_v19 }
 0x76b   :  { %v5010_v4 = vpop.xlane.xlu1 %5009 }
 0x76c   :  { %v5026_v52 = vadd.f32 1e-20, %v5010_v4 }
 0x76e   :  { %13162 = vrcp.f32 %v5026_v52 }
 0x76f   :  { %v5013_v11 = vpop.xlane.xlu0 %5012  ;;  %v1062_v40 = vpop.permute.xlu1 %1061 }
 0x770   :  { %v5027_v12 = vadd.f32 1e-20, %v5013_v11  ;;  %v1143_v17 = vcombine.low %v1054_v50, %v1062_v40  ;;  %v1144_v1 = vcombine.high %v1054_v50, %v1062_v40 }
 0x772   :  { %13164 = vrcp.f32 %v5027_v12  ;;  %v1151_v24 = vrot.slane %v1143_v17, %v13589_v21  ;;  %v1158_v15 = vrot.slane %v1144_v1, %v13589_v21 }
 0x773   :  { %v5016_v36 = vpop.xlane.xlu0 %5015  ;;  %v1066_v49 = vpop.permute.xlu1 %1065 }
 0x774   :  { %v5028_v41 = vadd.f32 1e-20, %v5016_v36 }
 0x776   :  { %13166 = vrcp.f32 %v5028_v41 }
 0x777   :  { %v1058_v55 = vpop.permute.xlu0 %1057 }
 0x778   :  { %v1159_v53 = vcombine.low %v1058_v55, %v1066_v49  ;;  %v1160_v44 = vcombine.high %v1058_v55, %v1066_v49 }
 0x77a   :  { %v1167_v22 = vrot.slane %v1159_v53, %v13589_v21  ;;  %v1174_v5 = vrot.slane %v1160_v44, %v13589_v21 }
 0x77b   :  { %v13163_v62 = vpop.eup %13162 }
 0x77c   :  { %v1175_v16 = vcombine.low %v1151_v24, %v1167_v22  ;;  %v1176_v33 = vcombine.high %v1151_v24, %v1167_v22  ;;  %v1191_v51 = vcombine.low %v1158_v15, %v1174_v5  ;;  %v1192_v50 = vcombine.high %v1158_v15, %v1174_v5 }
 0x77d   :  { %v5042_v48 = vmul.f32 %v13163_v62, %v14495_v29 }
 0x77e   :  { %v1183_v54 = vrot.slane %v1175_v16, %v13594_v28  ;;  %v1190_v57 = vrot.slane %v1176_v33, %v13594_v28  ;;  %v1199_v18 = vrot.slane %v1191_v51, %v13594_v28  ;;  %v1206_v27 = vrot.slane %v1192_v50, %v13594_v28 }
 0x77f   :  { %v5050_v38 = vpack.c.bf16 %v5042_v48, %v5042_v48  ;;  %v13165_v40 = vpop.eup %13164 }
 0x780   :  { %v1279_v8 = vcombine.low %v1183_v54, %v1190_v57  ;;  %v11930_v9 = vcombine.high %v1183_v54, %v1190_v57  ;;  %v1295_v60 = vcombine.low %v1199_v18, %v1206_v27  ;;  %v11931_v3 = vcombine.high %v1199_v18, %v1206_v27 }
 0x781   :  { %12663 = vmatmul.mubr.msk.bf16.vlgmr.msra.gmra.mxu0 %vm1947_vm2, %v5050_v38  ;;  %v5043_v22 = vmul.f32 %v13165_v40, %v14500_v13 }
 0x782   :  { %v1286_v47 = vrot.slane %v1279_v8, %v13589_v21  ;;  %v1294_v39 = vrot.slane %v11930_v9, %v13589_v21  ;;  %v1302_v29 = vrot.slane %v1295_v60, %v13589_v21  ;;  %v1310_v46 = vrot.slane %v11931_v3, %v13589_v21  ;;  %12674 = vmatprep.mubr.msk.bf16.mxu0 %vm13301_vm1, %v15878_v19 }
 0x783   :  { %v13167_v1 = vpop.eup %13166  ;;  %v5051_v50 = vpack.c.bf16 %v5043_v22, %v5043_v22 }
 0x784   :  { %v1311_v30 = vcombine.low %v1286_v47, %v1294_v39  ;;  %v1327_v4 = vcombine.low %v1302_v29, %v1310_v46  ;;  %v1312_v52 = vcombine.high %v1286_v47, %v1294_v39  ;;  %v1328_v11 = vcombine.high %v1302_v29, %v1310_v46 }
 0x785   :  { %v5044_v5 = vmul.f32 %v13167_v1, %v14505_v31 }
 0x786   :  { %v1319_v36 = vrot.slane %v1311_v30, %v13594_v28  ;;  %v1335_v12 = vrot.slane %v1327_v4, %v13594_v28  ;;  %v1326_v17 = vrot.slane %v1312_v52, %v13594_v28  ;;  %v1342_v41 = vrot.slane %v1328_v11, %v13594_v28 }
 0x787   :  { %v5052_v48 = vpack.c.bf16 %v5044_v5, %v5044_v5 }
 0x788   :  { %v1343_v49 = vcombine.low %v1319_v36, %v1335_v12  ;;  %v1344_v55 = vcombine.high %v1319_v36, %v1335_v12  ;;  %v1345_v53 = vcombine.low %v1326_v17, %v1342_v41  ;;  %v1346_v44 = vcombine.high %v1326_v17, %v1342_v41 }
 0x78a   :  { %v1351_v24 = vpack.c.bf16 %v1343_v49, %v1343_v49  ;;  %v1352_v15 = vpack.c.bf16 %v1344_v55, %v1344_v55  ;;  %v1353_v33 = vpack.c.bf16 %v1345_v53, %v1345_v53  ;;  %v1354_v51 = vpack.c.bf16 %v1346_v44, %v1346_v44 }
 0x78c   :  { %v5244_v62 = vsel %vm5058_vm6, %v1351_v24, 0  ;;  %v5290_v16 = vsel %vm5058_vm6, %v1352_v15, 0  ;;  %v5336_v13 = vsel %vm5058_vm6, %v1353_v33, 0  ;;  %v5382_v31 = vsel %vm5058_vm6, %v1354_v51, 0 }
 0x78d   :  { %12667 = vmatpush3.bf16.msra.mxu1 %v5244_v62  ;;  %12673 = vmatpush3.bf16.msra.mxu0 %v5290_v16 }
 0x78e   :  { %12678 = vmatprep.subr.bf16.mxu1 %v15878_v19  ;;  %12684 = vmatprep.subr.bf16.mxu0 %v15878_v19 }
 0x790   :  { %12669 = vmatmul.mubr.msk.bf16.vlgmr.msra.gmra.mxu1 %vm1947_vm2, %v5051_v50  ;;  %12675 = vmatmul.mubr.msk.bf16.vlgmr.msra.gmra.mxu0 %vm1947_vm2, %v5052_v48 }
 0x791   :  { %12679 = vmatpush3.bf16.msra.mxu1 %v5336_v13  ;;  %12685 = vmatpush3.bf16.msra.mxu0 %v5382_v31 }
 0x792   :  { %12686 = vmatprep.mubr.msk.bf16.mxu0 %vm13301_vm1, %v15878_v19  ;;  %12680 = vmatprep.mubr.msk.bf16.mxu1 %vm13301_vm1, %v15878_v19 }
 0x793   :  { %12690 = vmatprep.subr.bf16.mxu1 %v15878_v19  ;;  %12698 = vmatprep.subr.bf16.mxu0 %v15878_v19 }
 0x7a4   :  { %v5022_v54 = vpop.xlane.xlu1 %5021 }
 0x7a5   :  { %v5030_v57 = vadd.f32 1e-20, %v5022_v54 }
 0x7a7   :  { %13168 = vrcp.f32 %v5030_v57 }
 0x7a8   :  { %v5019_v18 = vpop.xlane.xlu0 %5018 }
 0x7a9   :  { %v5029_v27 = vadd.f32 1e-20, %v5019_v18 }
 0x7ab   :  { %13170 = vrcp.f32 %v5029_v27 }
 0x7b4   :  { %v13169_v38 = vpop.eup %13168 }
 0x7b5   :  { %v5046_v8 = vmul.f32 %v13169_v38, %v14518_v14 }
 0x7b7   :  { %v5054_v9 = vpack.c.bf16 %v5046_v8, %v5046_v8 }
 0x7b8   :  { %v13171_v60 = vpop.eup %13170 }
 0x7b9   :  { %12687 = vmatmul.mubr.msk.bf16.vlgmr.msra.gmra.mxu0 %vm1947_vm2, %v5054_v9  ;;  %v5045_v3 = vmul.f32 %v13171_v60, %v14523_v35 }
 0x7ba   :  { %12702 = vmatprep.mubr.msk.bf16.mxu0 %vm13301_vm1, %v15878_v19 }
 0x7bb   :  { %v5053_v47 = vpack.c.bf16 %v5045_v3, %v5045_v3 }
 0x7bd   :  { %12681 = vmatmul.mubr.msk.bf16.vlgmr.msra.gmra.mxu1 %vm1947_vm2, %v5053_v47 }
 0x7be   :  { %12694 = vmatprep.mubr.msk.bf16.mxu1 %vm13301_vm1, %v15878_v19 }
 0x807   :  { %v5096_v39 = vpop.f32.mrf.mxu1 }
 0x809   :  { %v12646_v29 = vpop.f32.mrf.mxu1 }
 0x80b   :  { %v5099_v46 = vpop.f32.mrf.mxu1 }
 0x80c   :  { %v5142_v30 = vpop.f32.mrf.mxu0 }
 0x80d   :  { %v12647_v14 = vpop.f32.mrf.mxu1 }
 0x80e   :  { %v12652_v4 = vpop.f32.mrf.mxu0 }
 0x80f   :  { %v5188_v52 = vpop.f32.mrf.mxu1 }
 0x810   :  { %v5145_v11 = vpop.f32.mrf.mxu0  ;;  %v5424_v40 = vcombine.low %v5096_v39, %v5188_v52  ;;  %v5425_v36 = vcombine.high %v5096_v39, %v5188_v52 }
 0x811   :  { %v12658_v35 = vpop.f32.mrf.mxu1 }
 0x812   :  { %v12653_v12 = vpop.f32.mrf.mxu0  ;;  %v5432_v44 = vrot.slane %v5424_v40, %v13589_v21  ;;  %v5439_v24 = vrot.slane %v5425_v36, %v13589_v21 }
 0x813   :  { %v5191_v17 = vpop.f32.mrf.mxu1 }
 0x815   :  { %v12659_v1 = vpop.f32.mrf.mxu1 }
 0x841   :  { %v5234_v41 = vpop.f32.mrf.mxu0 }
 0x842   :  { %v5440_v49 = vcombine.low %v5142_v30, %v5234_v41  ;;  %v5441_v55 = vcombine.high %v5142_v30, %v5234_v41 }
 0x843   :  { %v12664_v53 = vpop.f32.mrf.mxu0 }
 0x844   :  { %v5448_v15 = vrot.slane %v5440_v49, %v13589_v21  ;;  %v5455_v22 = vrot.slane %v5441_v55, %v13589_v21 }
 0x845   :  { %v5237_v5 = vpop.f32.mrf.mxu0 }
 0x846   :  { %v5456_v62 = vcombine.low %v5432_v44, %v5448_v15  ;;  %v5457_v16 = vcombine.high %v5432_v44, %v5448_v15  ;;  %v5472_v33 = vcombine.low %v5439_v24, %v5455_v22  ;;  %v5473_v51 = vcombine.high %v5439_v24, %v5455_v22 }
 0x847   :  { %v12665_v50 = vpop.f32.mrf.mxu0 }
 0x848   :  { %v5464_v48 = vrot.slane %v5456_v62, %v13594_v28  ;;  %v5471_v13 = vrot.slane %v5457_v16, %v13594_v28  ;;  %v5480_v31 = vrot.slane %v5472_v33, %v13594_v28  ;;  %v5487_v54 = vrot.slane %v5473_v51, %v13594_v28 }
 0x84a   :  { %v5560_v57 = vcombine.low %v5464_v48, %v5471_v13  ;;  %v11988_v18 = vcombine.high %v5464_v48, %v5471_v13  ;;  %v5576_v27 = vcombine.low %v5480_v31, %v5487_v54  ;;  %v11989_v38 = vcombine.high %v5480_v31, %v5487_v54 }
 0x84c   :  { %v5567_v8 = vrot.slane %v5560_v57, %v13589_v21  ;;  %v5575_v9 = vrot.slane %v11988_v18, %v13589_v21  ;;  %v5583_v60 = vrot.slane %v5576_v27, %v13589_v21  ;;  %v5591_v3 = vrot.slane %v11989_v38, %v13589_v21 }
 0x84e   :  { %v5593_v47 = vcombine.high %v5567_v8, %v5575_v9  ;;  %v5609_v39 = vcombine.high %v5583_v60, %v5591_v3  ;;  %v5592_v29 = vcombine.low %v5567_v8, %v5575_v9  ;;  %v5608_v46 = vcombine.low %v5583_v60, %v5591_v3 }
 0x850   :  { %v5280_v30 = vpop.f32.mrf.mxu1  ;;  %v5326_v14 = vpop.f32.mrf.mxu0  ;;  %v14604_v4 = vrot.slane %v5593_v47, %v13594_v28  ;;  %v14607_v52 = vrot.slane %v5609_v39, %v13594_v28  ;;  %v14610_v11 = vrot.slane %v5592_v29, %v13594_v28  ;;  %v14613_v40 = vrot.slane %v5608_v46, %v13594_v28 }
 0x852   :  { %v12670_v36 = vpop.f32.mrf.mxu1  ;;  %v12676_v35 = vpop.f32.mrf.mxu0  ;;  %v5626_v12 = vcombine.low %v14604_v4, %v14607_v52  ;;  %v5624_v17 = vcombine.low %v14610_v11, %v14613_v40  ;;  %v5625_v1 = vcombine.high %v14610_v11, %v14613_v40  ;;  %v5627_v41 = vcombine.high %v14604_v4, %v14607_v52  ;;  %v13114_v52 = vld [vmem:[%s15861_s14 + $0x8] sm:$0xff]   ;;  %v11992_v11 = vld [vmem:[%s15862_s15] ss:$0 sm:$0xff] }
 0x853   :  { %12691 = vmatpush3.bf16.msra.mxu1 %v13114_v52 }
 0x854   :  { %v5283_v49 = vpop.f32.mrf.mxu1  ;;  %v5329_v55 = vpop.f32.mrf.mxu0  ;;  %12692 = vmatprep.subr.bf16.mxu1 %v15878_v19 }
 0x856   :  { %v12671_v53 = vpop.f32.mrf.mxu1  ;;  %v12677_v44 = vpop.f32.mrf.mxu0 }
 0x879   :  { %v5418_v24 = vpop.f32.mrf.mxu0 }
 0x87a   :  { %v5508_v22 = vcombine.low %v5326_v14, %v5418_v24  ;;  %v5509_v5 = vcombine.high %v5326_v14, %v5418_v24 }
 0x87b   :  { %v12688_v15 = vpop.f32.mrf.mxu0 }
 0x87c   :  { %v5516_v13 = vrot.slane %v5508_v22, %v13589_v21  ;;  %v5523_v31 = vrot.slane %v5509_v5, %v13589_v21 }
 0x87d   :  { %v5372_v62 = vpop.f32.mrf.mxu1  ;;  %v5421_v16 = vpop.f32.mrf.mxu0 }
 0x87e   :  { %v5492_v33 = vcombine.low %v5280_v30, %v5372_v62  ;;  %v5493_v51 = vcombine.high %v5280_v30, %v5372_v62 }
 0x87f   :  { %v12682_v50 = vpop.f32.mrf.mxu1  ;;  %v12689_v48 = vpop.f32.mrf.mxu0 }
 0x880   :  { %v5500_v54 = vrot.slane %v5492_v33, %v13589_v21  ;;  %v5507_v57 = vrot.slane %v5493_v51, %v13589_v21  ;;  %v13115_v33 = vld [vmem:[%s15861_s14] sm:$0xff]  }
 0x881   :  { %v5375_v18 = vpop.f32.mrf.mxu1  ;;  %12693 = vmatpush3.bf16.msra.mxu1 %v13115_v33 }
 0x882   :  { %v5524_v27 = vcombine.low %v5500_v54, %v5516_v13  ;;  %v5525_v38 = vcombine.high %v5500_v54, %v5516_v13  ;;  %v5540_v8 = vcombine.low %v5507_v57, %v5523_v31  ;;  %v5541_v9 = vcombine.high %v5507_v57, %v5523_v31  ;;  %12706 = vmatprep.subr.bf16.mxu1 %v15878_v19 }
 0x883   :  { %v12683_v60 = vpop.f32.mrf.mxu1 }
 0x884   :  { %v5532_v3 = vrot.slane %v5524_v27, %v13594_v28  ;;  %v5539_v47 = vrot.slane %v5525_v38, %v13594_v28  ;;  %v5548_v39 = vrot.slane %v5540_v8, %v13594_v28  ;;  %v5555_v29 = vrot.slane %v5541_v9, %v13594_v28 }
 0x886   :  { %v5628_v46 = vcombine.low %v5532_v3, %v5539_v47  ;;  %v11990_v30 = vcombine.high %v5532_v3, %v5539_v47  ;;  %v5644_v14 = vcombine.low %v5548_v39, %v5555_v29  ;;  %v11991_v4 = vcombine.high %v5548_v39, %v5555_v29 }
 0x888   :  { %v5635_v36 = vrot.slane %v5628_v46, %v13589_v21  ;;  %v5643_v35 = vrot.slane %v11990_v30, %v13589_v21  ;;  %v5651_v49 = vrot.slane %v5644_v14, %v13589_v21  ;;  %v5659_v55 = vrot.slane %v11991_v4, %v13589_v21 }
 0x88a   :  { %v5661_v53 = vcombine.high %v5635_v36, %v5643_v35  ;;  %v5677_v44 = vcombine.high %v5651_v49, %v5659_v55  ;;  %v5660_v24 = vcombine.low %v5635_v36, %v5643_v35  ;;  %v5676_v15 = vcombine.low %v5651_v49, %v5659_v55 }
 0x88c   :  { %v5675_v22 = vrot.slane %v5661_v53, %v13594_v28  ;;  %v5691_v5 = vrot.slane %v5677_v44, %v13594_v28  ;;  %v5668_v62 = vrot.slane %v5660_v24, %v13594_v28  ;;  %v5684_v16 = vrot.slane %v5676_v15, %v13594_v28 }
 0x88e   :  { %v5694_v51 = vcombine.low %v5675_v22, %v5691_v5  ;;  %v5693_v50 = vcombine.high %v5668_v62, %v5684_v16  ;;  %v5692_v48 = vcombine.low %v5668_v62, %v5684_v16  ;;  %v5695_v54 = vcombine.high %v5675_v22, %v5691_v5 }
 0x890   :  { %v13082_v13 = vpack.i.bf16 %v5694_v51, %v5626_v12  ;;  %v13077_v31 = vpack.i.bf16 %v5693_v50, %v5625_v1  ;;  %v13087_v57 = vpack.i.bf16 %v5695_v54, %v5627_v41 }
 0x892   :  { %13083 = vrot.lane.b32.xlu1 %v13082_v13, %s13308_s7  ;;  %13078 = vrot.lane.b32.xlu0 %v13077_v31, %s13309_s1 }
 0x896   :  { %13088 = vrot.lane.b32.xlu0 %v13087_v57, %s15877_s30 }
 0x904   :  { %v13084_v18 = vpop.permute.xlu1 %13083  ;;  %v13079_v27 = vpop.permute.xlu0 %13078 }
 0x905   :  { %v13081_v38 = vunpack.i.h.bf16 %v13079_v27  ;;  %v13080_v8 = vunpack.i.l.bf16 %v13079_v27  ;;  %v13086_v9 = vunpack.i.h.bf16 %v13084_v18  ;;  %v13085_v60 = vunpack.i.l.bf16 %v13084_v18 }
 0x907   :  { %v5720_v12 = vsel %vm1947_vm2, %v5624_v17, %v13080_v8  ;;  %v5721_v1 = vsel %vm1947_vm2, %v5692_v48, %v13081_v38  ;;  %v13117_v48 = vld [vmem:[%s15865_s18] sm:$0xff]  }
 0x908   :  { %v13089_v3 = vpop.permute.xlu0 %13088  ;;  %v5722_v39 = vsel %vm2804_vm3, %v5720_v12, %v13085_v60  ;;  %v5723_v29 = vsel %vm2804_vm3, %v5721_v1, %v13086_v9  ;;  %v11996_v9 = vld [vmem:[%s15863_s16] ss:$0 sm:$0xff] }
 0x909   :  { %v13091_v47 = vunpack.i.h.bf16 %v13089_v3  ;;  %v13090_v41 = vunpack.i.l.bf16 %v13089_v3  ;;  %v11997_v3 = vld [vmem:[%s15864_s17] ss:$0 sm:$0xff] }
 0x90b   :  { %v5725_v46 = vsel %vm5724_vm7, %v5722_v39, %v13090_v41  ;;  %v5726_v30 = vsel %vm5724_vm7, %v5723_v29, %v13091_v47 }
 0x90c   :  { %v5727_v14 = vpack.c.bf16 %v5726_v30, %v5725_v46  ;;  %v13118_v46 = vld [vmem:[%s15867_s20 + $0x18] sm:$0xff]   ;;  %v13119_v30 = vld [vmem:[%s15867_s20 + $0x10] sm:$0xff]  }
 0x90e   :  { %12695 = vmatmul.mubr.msk.bf16.vlgmr.msra.gmra.mxu1 %vm135_vm0, %v5727_v14  ;;  %v13120_v14 = vld [vmem:[%s15867_s20 + $0x8] sm:$0xff]  }
 0x90f   :  { %12714 = vmatprep.mubr.msk.bf16.mxu1 %vm13301_vm1, %v15878_v19  ;;  %12707 = vmatpush3.bf16.msra.mxu1 %v13118_v46 }
 0x910   :  { %12708 = vmatprep.subr.bf16.mxu1 %v15878_v19 }
 0x913   :  { %12709 = vmatpush3.bf16.msra.mxu1 %v13119_v30 }
 0x914   :  { %12710 = vmatprep.subr.bf16.mxu1 %v15878_v19 }
 0x917   :  { %12711 = vmatpush3.bf16.msra.mxu1 %v13120_v14 }
 0x918   :  { %12712 = vmatprep.subr.bf16.mxu1 %v15878_v19 }
 0x9ce   :  { %v5788_v40 = vpop.f32.mrf.mxu1 }
 0x9cf   :  { %v5789_v17 = vadd.f32 %v11992_v11, %v5788_v40  ;;  %v11998_v40 = vld [vmem:[%s15866_s19] ss:$0 sm:$0xff] }
 0x9d0   :  { %v12696_v4 = vpop.f32.mrf.mxu1 }
 0x9d1   :  { %v5795_v52 = vadd.f32 %v5789_v17, %v13493_v42 }
 0x9d2   :  { %v5791_v36 = vpop.f32.mrf.mxu1 }
 0x9d3   :  { %v5792_v35 = vadd.f32 %v11992_v11, %v5791_v36  ;;  %v5799_v49 = vsel %vm135_vm0, %v5795_v52, 0.0  ;;  %v13121_v11 = vld [vmem:[%s15867_s20] sm:$0xff]  }
 0x9d4   :  { %5800 = vadd.xlane.f32.xlu1 %v5799_v49  ;;  %v12697_v55 = vpop.f32.mrf.mxu1  ;;  %12713 = vmatpush3.bf16.msra.mxu1 %v13121_v11 }
 0x9d5   :  { %v5796_v53 = vadd.f32 %v5792_v35, %v13496_v43  ;;  %v13116_v43 = vld [vmem:[%s15865_s18 + $0x8] sm:$0xff]   ;;  %12734 = vmatprep.subr.bf16.mxu1 %v15878_v19 }
 0x9d6   :  { %12699 = vmatpush3.bf16.msra.mxu0 %v13116_v43 }
 0x9d7   :  { %v5802_v44 = vsel %vm135_vm0, %v5796_v53, 0.0  ;;  %12700 = vmatprep.subr.bf16.mxu0 %v15878_v19 }
 0x9d8   :  { %5803 = vadd.xlane.f32.xlu0 %v5802_v44 }
 0x9da   :  { %12701 = vmatpush3.bf16.msra.mxu0 %v13117_v48 }
 0x9db   :  { %12718 = vmatprep.subr.bf16.mxu0 %v15878_v19 }
 0xa5d   :  { %v5801_v24 = vpop.xlane.xlu1 %5800 }
 0xa5e   :  { %v5805_v15 = vmul.f32 0.03125, %v5801_v24 }
 0xa60   :  { %v5807_v22 = vsub.f32 %v5795_v52, %v5805_v15 }
 0xa61   :  { %v5804_v5 = vpop.xlane.xlu0 %5803 }
 0xa62   :  { %v5806_v62 = vmul.f32 0.03125, %v5804_v5  ;;  %v5809_v16 = vmul.f32 %v5807_v22, %v5807_v22 }
 0xa64   :  { %v5808_v33 = vsub.f32 %v5796_v53, %v5806_v62  ;;  %v5811_v42 = vsel %vm135_vm0, %v5809_v16, 0.0 }
 0xa65   :  { %5812 = vadd.xlane.f32.xlu0 %v5811_v42 }
 0xa66   :  { %v5810_v51 = vmul.f32 %v5808_v33, %v5808_v33 }
 0xa68   :  { %v5814_v50 = vsel %vm135_vm0, %v5810_v51, 0.0 }
 0xa69   :  { %5815 = vadd.xlane.f32.xlu1 %v5814_v50 }
 0xaee   :  { %v5813_v13 = vpop.xlane.xlu0 %5812 }
 0xaef   :  { %v5817_v31 = vmul.f32 0.03125, %v5813_v13 }
 0xaf1   :  { %v5819_v54 = vadd.f32 1e-07, %v5817_v31 }
 0xaf2   :  { %v5816_v57 = vpop.xlane.xlu1 %5815 }
 0xaf3   :  { %13172 = vrsqrt.f32 %v5819_v54  ;;  %v5818_v18 = vmul.f32 0.03125, %v5816_v57 }
 0xaf5   :  { %v5820_v27 = vadd.f32 1e-07, %v5818_v18  ;;  %v12002_v18 = vld [vmem:[%s15868_s21] ss:$0 sm:$0xff] }
 0xaf7   :  { %13174 = vrsqrt.f32 %v5820_v27 }
 0xb00   :  { %v13173_v38 = vpop.eup %13172 }
 0xb01   :  { %v5823_v8 = vmul.f32 %v13173_v38, %v5807_v22 }
 0xb03   :  { %v5831_v1 = vmul.f32 %v11996_v9, %v5823_v8 }
 0xb04   :  { %v13175_v60 = vpop.eup %13174 }
 0xb05   :  { %v5824_v12 = vmul.f32 %v13175_v60, %v5808_v33  ;;  %v5839_v41 = vadd.f32 %v11997_v3, %v5831_v1 }
 0xb07   :  { %v5832_v47 = vmul.f32 %v11996_v9, %v5824_v12 }
 0xb09   :  { %v5840_v39 = vadd.f32 %v11997_v3, %v5832_v47 }
 0xb0b   :  { %v5841_v29 = vpack.c.bf16 %v5840_v39, %v5839_v41 }
 0xb0d   :  { %12703 = vmatmul.mubr.msk.bf16.vlgmr.msra.gmra.mxu0 %vm135_vm0, %v5841_v29 }
 0xb0e   :  { %12722 = vmatprep.mubr.msk.bf16.mxu0 %vm13301_vm1, %v15878_v19 }
 0xbcd   :  { %v5902_v17 = vpop.f32.mrf.mxu0 }
 0xbce   :  { %v5903_v4 = vadd.f32 %v11998_v40, %v5902_v17 }
 0xbcf   :  { %v12704_v52 = vpop.f32.mrf.mxu0 }
 0xbd0   :  { %v5909_v36 = vmul.f32 %v5903_v4, %v5903_v4 }
 0xbd1   :  { %v5905_v35 = vpop.f32.mrf.mxu0 }
 0xbd2   :  { %v5911_v49 = vmul.f32 %v5909_v36, %v5903_v4  ;;  %v5906_v55 = vadd.f32 %v11998_v40, %v5905_v35  ;;  %v13122_v35 = vld [vmem:[#allocation2 + $0x18] sm:$0xff]  }
 0xbd3   :  { %v12705_v53 = vpop.f32.mrf.mxu0  ;;  %12719 = vmatpush3.bf16.msra.mxu0 %v13122_v35 }
 0xbd4   :  { %v5913_v44 = vmul.f32 0.044715, %v5911_v49  ;;  %v5910_v24 = vmul.f32 %v5906_v55, %v5906_v55  ;;  %12720 = vmatprep.subr.bf16.mxu0 %v15878_v19  ;;  %v13126_v49 = vld [vmem:[%s15859_s12 + $0x18] sm:$0xff]   ;;  %v13228_v53 = vld [vmem:[%s15899_s8] sm:$0xff]  }
 0xbd6   :  { %v5915_v15 = vadd.f32 %v5913_v44, %v5903_v4  ;;  %v5912_v22 = vmul.f32 %v5910_v24, %v5906_v55 }
 0xbd8   :  { %v5917_v5 = vmul.f32 0.7978846, %v5915_v15  ;;  %v5914_v62 = vmul.f32 0.044715, %v5912_v22 }
 0xbda   :  { %13176 = vtanh.f32 %v5917_v5  ;;  %v5916_v16 = vadd.f32 %v5914_v62, %v5906_v55 }
 0xbdc   :  { %v5918_v33 = vmul.f32 0.7978846, %v5916_v16 }
 0xbde   :  { %13178 = vtanh.f32 %v5918_v33 }
 0xbe7   :  { %v13177_v42 = vpop.eup %13176 }
 0xbe8   :  { %v5921_v51 = vadd.f32 1.0, %v13177_v42  ;;  %v12008_v42 = vld [vmem:[%s15869_s22] ss:$0 sm:$0xff] }
 0xbea   :  { %v5923_v43 = vmul.f32 0.5, %v5921_v51 }
 0xbeb   :  { %v13179_v50 = vpop.eup %13178 }
 0xbec   :  { %v5922_v48 = vadd.f32 1.0, %v13179_v50  ;;  %v5925_v31 = vmul.f32 %v5923_v43, %v5903_v4 }
 0xbee   :  { %v5924_v13 = vmul.f32 0.5, %v5922_v48  ;;  %v12009_v48 = vld [vmem:[%s15870_s23] ss:$0 sm:$0xff] }
 0xbf0   :  { %v5926_v54 = vmul.f32 %v5924_v13, %v5906_v55  ;;  %v13127_v55 = vld [vmem:[%s15859_s12 + $0x10] sm:$0xff]  }
 0xbf2   :  { %v5927_v57 = vpack.c.bf16 %v5926_v54, %v5925_v31 }
 0xbf4   :  { %12715 = vmatmul.mubr.msk.bf16.vlgmr.msra.gmra.mxu1 %vm5967_vm8, %v5927_v57  ;;  %v13124_v57 = vld [vmem:[#allocation5 + $0x18] sm:$0xff]  }
 0xbf5   :  { %12738 = vmatprep.mubr.msk.bf16.mxu1 %vm13301_vm1, %v15878_v19  ;;  %12735 = vmatpush3.bf16.msra.mxu1 %v13126_v49 }
 0xbf6   :  { %12736 = vmatprep.subr.bf16.mxu1 %v15878_v19 }
 0xbf9   :  { %12737 = vmatpush3.bf16.msra.mxu1 %v13127_v55 }
 0xbfa   :  { %12748 = vmatprep.subr.bf16.mxu1 %v15878_v19 }
 0xbfc   :  { %12739 = vmatmul.mubr.msk.bf16.vlgmr.msra.gmra.mxu1 %vm135_vm0, %v13228_v53 }
 0xbfd   :  { %12750 = vmatprep.mubr.msk.bf16.mxu1 %vm13301_vm1, %v15878_v19 }
 0xcb4   :  { %v6005_v27 = vpop.f32.mrf.mxu1 }
 0xcb5   :  { %v6006_v38 = vadd.f32 %v12002_v18, %v6005_v27  ;;  %v13125_v27 = vld [vmem:[#allocation5 + $0x10] sm:$0xff]  }
 0xcb6   :  { %v12716_v8 = vpop.f32.mrf.mxu1 }
 0xcb7   :  { %v6012_v9 = vadd.f32 %v6006_v38, %v5839_v41 }
 0xcb8   :  { %v6008_v60 = vpop.f32.mrf.mxu1 }
 0xcb9   :  { %v6009_v12 = vadd.f32 %v12002_v18, %v6008_v60  ;;  %v6016_v1 = vsel %vm135_vm0, %v6012_v9, 0.0 }
 0xcba   :  { %6017 = vadd.xlane.f32.xlu0 %v6016_v1  ;;  %v12717_v3 = vpop.f32.mrf.mxu1 }
 0xcbb   :  { %v6013_v47 = vadd.f32 %v6009_v12, %v5840_v39  ;;  %v13123_v39 = vld [vmem:[#allocation2 + $0x10] sm:$0xff]  }
 0xcbc   :  { %12721 = vmatpush3.bf16.msra.mxu0 %v13123_v39  ;;  %v6261_v38 = vpop.f32.mrf.mxu1 }
 0xcbd   :  { %v6019_v29 = vsel %vm135_vm0, %v6013_v47, 0.0  ;;  %12726 = vmatprep.subr.bf16.mxu0 %v15878_v19 }
 0xcbe   :  { %6020 = vadd.xlane.f32.xlu1 %v6019_v29  ;;  %v12740_v8 = vpop.f32.mrf.mxu1 }
 0xd43   :  { %v6018_v46 = vpop.xlane.xlu0 %6017 }
 0xd44   :  { %v6022_v30 = vmul.f32 0.03125, %v6018_v46 }
 0xd46   :  { %v6024_v14 = vsub.f32 %v6012_v9, %v6022_v30  ;;  %v6264_v9 = vpop.f32.mrf.mxu1 }
 0xd47   :  { %v6021_v11 = vpop.xlane.xlu1 %6020 }
 0xd48   :  { %v6023_v40 = vmul.f32 0.03125, %v6021_v11  ;;  %v6026_v17 = vmul.f32 %v6024_v14, %v6024_v14  ;;  %v12741_v60 = vpop.f32.mrf.mxu1  ;;  %v12014_v11 = vld [vmem:[%s15856_s9 + $0x1] ss:$0 sm:$0xff] }
 0xd4a   :  { %v6025_v4 = vsub.f32 %v6013_v47, %v6023_v40  ;;  %v6028_v52 = vsel %vm135_vm0, %v6026_v17, 0.0 }
 0xd4b   :  { %6029 = vadd.xlane.f32.xlu0 %v6028_v52  ;;  %v12025_v52 = vld [vmem:[%s15860_s13 + $0x1] ss:$0 sm:$0xff] }
 0xd4c   :  { %v6027_v41 = vmul.f32 %v6025_v4, %v6025_v4  ;;  %v6265_v35 = vadd.f32 %v12025_v52, %v6264_v9 }
 0xd4e   :  { %v6031_v36 = vsel %vm135_vm0, %v6027_v41, 0.0  ;;  %v14807_v49 = vmul.f32 0.20412415, %v6265_v35 }
 0xd4f   :  { %6032 = vadd.xlane.f32.xlu1 %v6031_v36  ;;  %v6262_v36 = vadd.f32 %v12025_v52, %v6261_v38 }
 0xd51   :  { %v14805_v39 = vmul.f32 0.20412415, %v6262_v36 }
 0xdd4   :  { %v6030_v44 = vpop.xlane.xlu0 %6029 }
 0xdd5   :  { %v6034_v24 = vmul.f32 0.03125, %v6030_v44 }
 0xdd7   :  { %v6036_v15 = vadd.f32 1e-07, %v6034_v24 }
 0xdd8   :  { %v6033_v22 = vpop.xlane.xlu1 %6032 }
 0xdd9   :  { %13180 = vrsqrt.f32 %v6036_v15  ;;  %v6035_v5 = vmul.f32 0.03125, %v6033_v22 }
 0xddb   :  { %v6037_v62 = vadd.f32 1e-07, %v6035_v5 }
 0xddd   :  { %13182 = vrsqrt.f32 %v6037_v62 }
 0xde6   :  { %v13181_v16 = vpop.eup %13180 }
 0xde7   :  { %v6040_v33 = vmul.f32 %v13181_v16, %v6024_v14  ;;  %v12016_v16 = vld [vmem:[%s15857_s10 + $0x1] ss:$0 sm:$0xff] }
 0xde9   :  { %v6048_v43 = vmul.f32 %v12008_v42, %v6040_v33 }
 0xdea   :  { %v13183_v51 = vpop.eup %13182 }
 0xdeb   :  { %v6041_v50 = vmul.f32 %v13183_v51, %v6025_v4  ;;  %v14739_v31 = vadd.f32 %v12009_v48, %v6048_v43 }
 0xded   :  { %v6049_v13 = vmul.f32 %v12008_v42, %v6041_v50  ;;  %15908 = vst [vmem:[#allocation14_spill] sm:$0xff] %v14739_v31 }
 0xdef   :  { %v14741_v54 = vadd.f32 %v12009_v48, %v6049_v13 }
 0xdf1   :  { %15909 = vst [vmem:[#allocation15_spill] sm:$0xff] %v14741_v54  ;;  %v6058_v18 = vpack.c.bf16 %v14741_v54, %v14739_v31 }
 0xdf3   :  { %12723 = vmatmul.mubr.msk.bf16.vlgmr.msra.gmra.mxu0 %vm135_vm0, %v6058_v18 }
 0xdf4   :  { %12727 = vmatpush3.bf16.msra.mxu0 %v13124_v57  ;;  %12730 = vmatprep.mubr.msk.bf16.mxu0 %vm13301_vm1, %v15878_v19 }
 0xdf5   :  { %12728 = vmatprep.subr.bf16.mxu0 %v15878_v19 }
 0xdf8   :  { %12729 = vmatpush3.bf16.msra.mxu0 %v13125_v27 }
 0xdf9   :  { %12742 = vmatprep.subr.bf16.mxu0 %v15878_v19 }
 0xdfb   :  { %12731 = vmatmul.mubr.msk.bf16.vlgmr.msra.gmra.mxu0 %vm135_vm0, %v13228_v53 }
 0xdfc   :  { %12744 = vmatprep.mubr.msk.bf16.mxu0 %vm13301_vm1, %v15878_v19 }
 0xeb3   :  { %v14753_v12 = vpop.f32.mrf.mxu0 }
 0xeb4   :  { %6576 = vrot.lane.b32.xlu1 %v14753_v12, %s13303_s2  ;;  %6572 = vrot.lane.b32.xlu0 %v14753_v12, %s13302_s6  ;;  %v6128_v40 = vadd.f32 %v12014_v11, %v14753_v12 }
 0xeb5   :  { %v12724_v1 = vpop.f32.mrf.mxu0 }
 0xeb6   :  { %v14790_v4 = vmul.f32 0.20412415, %v6128_v40 }
 0xeb7   :  { %v14759_v3 = vpop.f32.mrf.mxu0 }
 0xeb8   :  { %6580 = vrot.lane.b32.xlu1 %v14753_v12, %s13304_s29  ;;  %6574 = vrot.lane.b32.xlu0 %v14759_v3, %s13302_s6  ;;  %v6129_v17 = vadd.f32 %v12014_v11, %v14759_v3 }
 0xeb9   :  { %v12725_v47 = vpop.f32.mrf.mxu0 }
 0xeba   :  { %v14799_v41 = vmul.f32 0.20412415, %v6129_v17 }
 0xebb   :  { %v14765_v29 = vpop.f32.mrf.mxu0 }
 0xebc   :  { %6578 = vrot.lane.b32.xlu1 %v14759_v3, %s13303_s2  ;;  %6582 = vrot.lane.b32.xlu0 %v14759_v3, %s13304_s29 }
 0xebd   :  { %v12732_v46 = vpop.f32.mrf.mxu0 }
 0xebf   :  { %v14771_v30 = vpop.f32.mrf.mxu0 }
 0xec0   :  { %7208 = vrot.lane.b32.xlu1 %v14765_v29, %s13302_s6  ;;  %7210 = vrot.lane.b32.xlu0 %v14771_v30, %s13302_s6 }
 0xec1   :  { %v12733_v14 = vpop.f32.mrf.mxu0 }
 0xec4   :  { %7214 = vrot.lane.b32.xlu1 %v14765_v29, %s13303_s2  ;;  %7216 = vrot.lane.b32.xlu0 %v14771_v30, %s13303_s2 }
 0xec8   :  { %7220 = vrot.lane.b32.xlu1 %v14765_v29, %s13304_s29  ;;  %7222 = vrot.lane.b32.xlu0 %v14771_v30, %s13304_s29 }
 0xecc   :  { %6272 = vrot.lane.b32.xlu1 %v14790_v4, %s13302_s6  ;;  %6278 = vrot.lane.b32.xlu0 %v14790_v4, %s13303_s2 }
 0xed0   :  { %6284 = vrot.lane.b32.xlu1 %v14790_v4, %s13304_s29  ;;  %6274 = vrot.lane.b32.xlu0 %v14799_v41, %s13302_s6 }
 0xed4   :  { %6280 = vrot.lane.b32.xlu1 %v14799_v41, %s13303_s2  ;;  %6286 = vrot.lane.b32.xlu0 %v14799_v41, %s13304_s29 }
 0xed8   :  { %7504 = vrot.lane.b32.xlu1 %v14805_v39, %s13302_s6  ;;  %7506 = vrot.lane.b32.xlu0 %v14807_v49, %s13302_s6 }
 0xedc   :  { %7510 = vrot.lane.b32.xlu1 %v14805_v39, %s13303_s2  ;;  %7512 = vrot.lane.b32.xlu0 %v14807_v49, %s13303_s2 }
 0xee0   :  { %7516 = vrot.lane.b32.xlu1 %v14805_v39, %s13304_s29  ;;  %7518 = vrot.lane.b32.xlu0 %v14807_v49, %s13304_s29 }
 0xee4   :  { %6584 = vrot.lane.b32.xlu1 %v14753_v12, %s13305_s25 }
 0xf26   :  { %v6577_v55 = vpop.permute.xlu1 %6576  ;;  %v6573_v53 = vpop.permute.xlu0 %6572 }
 0xf27   :  { %6592 = vrot.lane.b32.xlu1 %v6577_v55, %s13305_s25  ;;  %6588 = vrot.lane.b32.xlu0 %v6573_v53, %s13305_s25 }
 0xf2a   :  { %v6581_v44 = vpop.permute.xlu1 %6580  ;;  %v6575_v24 = vpop.permute.xlu0 %6574 }
 0xf2b   :  { %6586 = vrot.lane.b32.xlu1 %v14759_v3, %s13305_s25  ;;  %6596 = vrot.lane.b32.xlu0 %v6581_v44, %s13305_s25 }
 0xf2e   :  { %v6579_v15 = vpop.permute.xlu1 %6578  ;;  %v6583_v22 = vpop.permute.xlu0 %6582 }
 0xf2f   :  { %6594 = vrot.lane.b32.xlu1 %v6579_v15, %s13305_s25  ;;  %6590 = vrot.lane.b32.xlu0 %v6575_v24, %s13305_s25 }
 0xf32   :  { %v7209_v5 = vpop.permute.xlu1 %7208  ;;  %v7211_v62 = vpop.permute.xlu0 %7210 }
 0xf33   :  { %6598 = vrot.lane.b32.xlu0 %v6583_v22, %s13305_s25 }
 0xf36   :  { %v7215_v33 = vpop.permute.xlu1 %7214  ;;  %v7217_v42 = vpop.permute.xlu0 %7216 }
 0xf37   :  { %6139 = vrot.lane.b32.xlu0 %v12016_v16, %s13296_s28  ;;  %v7226_v57 = vcombine.low %v14765_v29, %v7215_v33  ;;  %v7227_v38 = vcombine.high %v14765_v29, %v7215_v33  ;;  %v7294_v8 = vcombine.low %v14771_v30, %v7217_v42  ;;  %v7295_v9 = vcombine.high %v14771_v30, %v7217_v42 }
 0xf39   :  { %v7234_v47 = vrot.slane %v7226_v57, %v13589_v21  ;;  %v7241_v40 = vrot.slane %v7227_v38, %v13589_v21  ;;  %v7302_v17 = vrot.slane %v7294_v8, %v13589_v21  ;;  %v7309_v29 = vrot.slane %v7295_v9, %v13589_v21 }
 0xf3a   :  { %v7221_v51 = vpop.permute.xlu1 %7220  ;;  %v7223_v50 = vpop.permute.xlu0 %7222 }
 0xf3b   :  { %v7242_v43 = vcombine.low %v7209_v5, %v7221_v51  ;;  %v7243_v18 = vcombine.high %v7209_v5, %v7221_v51  ;;  %v7310_v27 = vcombine.low %v7211_v62, %v7223_v50  ;;  %v7311_v1 = vcombine.high %v7211_v62, %v7223_v50 }
 0xf3d   :  { %v7250_v60 = vrot.slane %v7242_v43, %v13589_v21  ;;  %v7257_v46 = vrot.slane %v7243_v18, %v13589_v21  ;;  %v7318_v14 = vrot.slane %v7310_v27, %v13589_v21  ;;  %v7325_v35 = vrot.slane %v7311_v1, %v13589_v21 }
 0xf3e   :  { %v6273_v48 = vpop.permute.xlu1 %6272  ;;  %v6279_v13 = vpop.permute.xlu0 %6278 }
 0xf3f   :  { %v7258_v36 = vcombine.low %v7234_v47, %v7250_v60  ;;  %v7259_v30 = vcombine.high %v7234_v47, %v7250_v60  ;;  %v6290_v55 = vcombine.low %v14790_v4, %v6279_v13  ;;  %v6291_v53 = vcombine.high %v14790_v4, %v6279_v13 }
 0xf40   :  { %v7274_v15 = vcombine.low %v7241_v40, %v7257_v46  ;;  %v7275_v22 = vcombine.high %v7241_v40, %v7257_v46  ;;  %v7326_v5 = vcombine.low %v7302_v17, %v7318_v14  ;;  %v7327_v62 = vcombine.high %v7302_v17, %v7318_v14 }
 0xf41   :  { %v6298_v16 = vrot.slane %v6290_v55, %v13589_v21  ;;  %v6305_v33 = vrot.slane %v6291_v53, %v13589_v21  ;;  %v7266_v50 = vrot.slane %v7258_v36, %v13594_v28  ;;  %v7273_v43 = vrot.slane %v7259_v30, %v13594_v28 }
 0xf42   :  { %v6285_v11 = vpop.permute.xlu1 %6284  ;;  %v14849_v52 = vpop.permute.xlu0 %6274  ;;  %v7342_v57 = vcombine.low %v7309_v29, %v7325_v35  ;;  %v7343_v4 = vcombine.high %v7309_v29, %v7325_v35  ;;  %v7282_v9 = vrot.slane %v7274_v15, %v13594_v28  ;;  %v7289_v60 = vrot.slane %v7275_v22, %v13594_v28 }
 0xf43   :  { %v6306_v44 = vcombine.low %v6273_v48, %v6285_v11  ;;  %v6307_v24 = vcombine.high %v6273_v48, %v6285_v11  ;;  %v7334_v11 = vrot.slane %v7326_v5, %v13594_v28  ;;  %v7341_v40 = vrot.slane %v7327_v62, %v13594_v28 }
 0xf44   :  { %v7350_v17 = vrot.slane %v7342_v57, %v13594_v28  ;;  %v7357_v29 = vrot.slane %v7343_v4, %v13594_v28  ;;  %v7362_v36 = vcombine.low %v7266_v50, %v7273_v43  ;;  %v12041_v30 = vcombine.high %v7266_v50, %v7273_v43 }
 0xf45   :  { %v6314_v42 = vrot.slane %v6306_v44, %v13589_v21  ;;  %v6321_v51 = vrot.slane %v6307_v24, %v13589_v21  ;;  %v7378_v53 = vcombine.low %v7282_v9, %v7289_v60  ;;  %v12042_v44 = vcombine.high %v7282_v9, %v7289_v60 }
 0xf46   :  { %v6281_v13 = vpop.permute.xlu1 %6280  ;;  %v6287_v8 = vpop.permute.xlu0 %6286  ;;  %v12043_v50 = vcombine.high %v7334_v11, %v7341_v40  ;;  %v7446_v43 = vcombine.low %v7350_v17, %v7357_v29  ;;  %v12044_v57 = vcombine.high %v7350_v17, %v7357_v29  ;;  %v14880_v4 = vrot.slane %v7362_v36, %v13589_v21 }
 0xf47   :  { %v6322_v48 = vcombine.low %v6298_v16, %v6314_v42  ;;  %v6323_v18 = vcombine.high %v6298_v16, %v6314_v42  ;;  %v6338_v27 = vcombine.low %v6305_v33, %v6321_v51  ;;  %v6339_v38 = vcombine.high %v6305_v33, %v6321_v51 }
 0xf48   :  { %v6358_v35 = vcombine.low %v14799_v41, %v6281_v13  ;;  %v6374_v55 = vcombine.low %v14849_v52, %v6287_v8  ;;  %v6359_v24 = vcombine.high %v14799_v41, %v6281_v13  ;;  %v6375_v15 = vcombine.high %v14849_v52, %v6287_v8 }
 0xf49   :  { %v6330_v1 = vrot.slane %v6322_v48, %v13594_v28  ;;  %v6337_v47 = vrot.slane %v6323_v18, %v13594_v28  ;;  %v6346_v46 = vrot.slane %v6338_v27, %v13594_v28  ;;  %v6353_v14 = vrot.slane %v6339_v38, %v13594_v28 }
 0xf4a   :  { %v14875_v22 = vpop.permute.xlu1 %7504  ;;  %v14877_v42 = vpop.permute.xlu0 %7506  ;;  %v7430_v51 = vcombine.low %v7334_v11, %v7341_v40  ;;  %v14883_v48 = vrot.slane %v12041_v30, %v13589_v21  ;;  %v6366_v41 = vrot.slane %v6358_v35, %v13589_v21  ;;  %v6382_v52 = vrot.slane %v6374_v55, %v13589_v21 }
 0xf4b   :  { %v6426_v5 = vcombine.low %v6330_v1, %v6337_v47  ;;  %v12029_v62 = vcombine.high %v6330_v1, %v6337_v47  ;;  %v6442_v16 = vcombine.low %v6346_v46, %v6353_v14  ;;  %v12030_v33 = vcombine.high %v6346_v46, %v6353_v14 }
 0xf4c   :  { %v14888_v13 = vrot.slane %v7378_v53, %v13589_v21  ;;  %v14891_v18 = vrot.slane %v12042_v44, %v13589_v21  ;;  %v6373_v27 = vrot.slane %v6359_v24, %v13589_v21  ;;  %v6389_v38 = vrot.slane %v6375_v15, %v13589_v21 }
 0xf4d   :  { %v14896_v8 = vrot.slane %v6426_v5, %v13589_v21  ;;  %v14899_v9 = vrot.slane %v12029_v62, %v13589_v21  ;;  %v14902_v60 = vrot.slane %v6442_v16, %v13589_v21  ;;  %v14905_v1 = vrot.slane %v12030_v33, %v13589_v21 }
 0xf4e   :  { %v14908_v47 = vrot.slane %v7430_v51, %v13589_v21  ;;  %v14911_v46 = vrot.slane %v12043_v50, %v13589_v21  ;;  %v14914_v14 = vrot.slane %v7446_v43, %v13589_v21  ;;  %v14917_v11 = vrot.slane %v12044_v57, %v13589_v21  ;;  %v7511_v40 = vpop.permute.xlu1 %7510  ;;  %v7513_v36 = vpop.permute.xlu0 %7512 }
 0xf4f   :  { %v6390_v17 = vcombine.low %v6366_v41, %v6382_v52  ;;  %v6391_v29 = vcombine.high %v6366_v41, %v6382_v52  ;;  %v6458_v30 = vcombine.low %v14896_v8, %v14899_v9  ;;  %v6474_v35 = vcombine.low %v14902_v60, %v14905_v1 }
 0xf50   :  { %v6406_v55 = vcombine.low %v6373_v27, %v6389_v38  ;;  %v7394_v53 = vcombine.low %v14880_v4, %v14883_v48  ;;  %v7410_v44 = vcombine.low %v14888_v13, %v14891_v18  ;;  %v7462_v24 = vcombine.low %v14908_v47, %v14911_v46 }
 0xf51   :  { %v7478_v15 = vcombine.low %v14914_v14, %v14917_v11  ;;  %v6398_v5 = vrot.slane %v6390_v17, %v13594_v28  ;;  %v6405_v62 = vrot.slane %v6391_v29, %v13594_v28  ;;  %v6407_v16 = vcombine.high %v6373_v27, %v6389_v38 }
 0xf52   :  { %v7402_v33 = vrot.slane %v7394_v53, %v13594_v28  ;;  %v7418_v51 = vrot.slane %v7410_v44, %v13594_v28  ;;  %v7470_v50 = vrot.slane %v7462_v24, %v13594_v28  ;;  %v7517_v57 = vpop.permute.xlu1 %7516  ;;  %v6466_v41 = vrot.slane %v6458_v30, %v13594_v28  ;;  %v7519_v17 = vpop.permute.xlu0 %7518 }
 0xf53   :  { %v7486_v43 = vrot.slane %v7478_v15, %v13594_v28  ;;  %v6482_v52 = vrot.slane %v6474_v35, %v13594_v28  ;;  %v14940_v19 = vrot.slane %v6406_v55, %v13594_v28  ;;  %v14943_v53 = vrot.slane %v6407_v16, %v13594_v28 }
 0xf54   :  { %v7426_v54 = vcombine.low %v7402_v33, %v7418_v51  ;;  %v7427_v27 = vcombine.high %v7402_v33, %v7418_v51  ;;  %v6494_v44 = vcombine.low %v6398_v5, %v6405_v62  ;;  %v12031_v24 = vcombine.high %v6398_v5, %v6405_v62 }
 0xf55   :  { %v7494_v29 = vcombine.low %v7470_v50, %v7486_v43  ;;  %v7495_v38 = vcombine.high %v7470_v50, %v7486_v43  ;;  %v7538_v15 = vcombine.low %v14875_v22, %v7517_v57  ;;  %v7539_v30 = vcombine.high %v14875_v22, %v7517_v57 }
 0xf56   :  { %v7606_v35 = vcombine.low %v14877_v42, %v7519_v17  ;;  %v6490_v55 = vcombine.low %v6466_v41, %v6482_v52  ;;  %v6491_v37 = vcombine.high %v6466_v41, %v6482_v52  ;;  %v7522_v23 = vcombine.low %v14805_v39, %v7511_v40 }
 0xf57   :  { %v7498_v31 = vpack.c.bf16 %v7494_v29, %v7426_v54  ;;  %v7499_v26 = vpack.c.bf16 %v7495_v38, %v7427_v27  ;;  %v7607_v33 = vcombine.high %v14877_v42, %v7519_v17  ;;  %v7523_v51 = vcombine.high %v14805_v39, %v7511_v40 }
 0xf58   :  { %v7590_v16 = vcombine.low %v14807_v49, %v7513_v36  ;;  %v6510_v22 = vcombine.low %v14940_v19, %v14943_v53  ;;  %v7591_v62 = vcombine.high %v14807_v49, %v7513_v36  ;;  %v7546_v42 = vrot.slane %v7538_v15, %v13589_v21 }
 0xf59   :  { %v14953_v5 = vsel %vm1947_vm2, %v7498_v31, 0  ;;  %v14956_v54 = vsel %vm1947_vm2, %v7499_v26, 0  ;;  %v14965_v39 = vrot.slane %v6494_v44, %v13589_v21  ;;  %v12032_v31 = vcombine.high %v14940_v19, %v14943_v53 }
 0xf5a   :  { %12743 = vmatpush3.bf16.xpose.msra.mxu0 %v14953_v5  ;;  %12749 = vmatpush3.bf16.xpose.msra.mxu1 %v14956_v54  ;;  %v7553_v26 = vrot.slane %v7539_v30, %v13589_v21  ;;  %v7614_v40 = vrot.slane %v7606_v35, %v13589_v21  ;;  %v15910_v50 = vmov 0.0   ;;  %v14973_v49 = vrot.slane %v12031_v24, %v13589_v21 }
 0xf5b   :  { %12754 = vmatprep.subr.bf16.mxu0 %v15910_v50  ;;  %v7530_v36 = vrot.slane %v7522_v23, %v13589_v21  ;;  %v7621_v43 = vrot.slane %v7607_v33, %v13589_v21  ;;  %12760 = vmatprep.subr.bf16.mxu1 %v15910_v50  ;;  %v7395_v57 = vcombine.high %v14880_v4, %v14883_v48 }
 0xf5c   :  { %v7537_v19 = vrot.slane %v7523_v51, %v13589_v21  ;;  %v7598_v41 = vrot.slane %v7590_v16, %v13589_v21  ;;  %v14982_v52 = vpack.c.bf16 %v6490_v55, %v6490_v55  ;;  %v14984_v17 = vpack.c.bf16 %v6491_v37, %v6491_v37 }
 0xf5d   :  { %v6459_v29 = vcombine.high %v14896_v8, %v14899_v9  ;;  %v7605_v23 = vrot.slane %v7591_v62, %v13589_v21  ;;  %v7554_v27 = vcombine.low %v7530_v36, %v7546_v42  ;;  %v7555_v38 = vcombine.high %v7530_v36, %v7546_v42 }
 0xf5e   :  { %v6475_v53 = vcombine.high %v14902_v60, %v14905_v1  ;;  %v7570_v44 = vcombine.low %v7537_v19, %v7553_v26  ;;  %v7571_v4 = vcombine.high %v7537_v19, %v7553_v26  ;;  %v7622_v48 = vcombine.low %v7598_v41, %v7614_v40 }
 0xf5f   :  { %v7623_v24 = vcombine.high %v7598_v41, %v7614_v40  ;;  %v7638_v15 = vcombine.low %v7605_v23, %v7621_v43  ;;  %v7409_v30 = vrot.slane %v7395_v57, %v13594_v28  ;;  %v7411_v37 = vcombine.high %v14888_v13, %v14891_v18 }
 0xf60   :  { %v7639_v35 = vcombine.high %v7605_v23, %v7621_v43  ;;  %v7463_v8 = vcombine.high %v14908_v47, %v14911_v46  ;;  %v7479_v9 = vcombine.high %v14914_v14, %v14917_v11  ;;  %v7562_v60 = vrot.slane %v7554_v27, %v13594_v28 }
 0xf61   :  { %12745 = vmatmul.mubr.msk.bf16.vlgmr.msra.gmra.mxu0 %vm1947_vm2, %v14982_v52  ;;  %12751 = vmatmul.mubr.msk.bf16.vlgmr.msra.gmra.mxu1 %vm1947_vm2, %v14984_v17  ;;  %v7569_v1 = vrot.slane %v7555_v38, %v13594_v28  ;;  %v7425_v55 = vrot.slane %v7411_v37, %v13594_v28  ;;  %v7578_v13 = vrot.slane %v7570_v44, %v13594_v28 }
 0xf62   :  { %12756 = vmatprep.mubr.msk.bf16.mxu0 %vm13301_vm1, %v15910_v50  ;;  %12762 = vmatprep.mubr.msk.bf16.mxu1 %vm13301_vm1, %v15910_v50  ;;  %v7585_v18 = vrot.slane %v7571_v4, %v13594_v28  ;;  %v7477_v47 = vrot.slane %v7463_v8, %v13594_v28  ;;  %v7493_v46 = vrot.slane %v7479_v9, %v13594_v28 }
 0xf63   :  { %v7630_v14 = vrot.slane %v7622_v48, %v13594_v28  ;;  %v7637_v11 = vrot.slane %v7623_v24, %v13594_v28  ;;  %v7428_v33 = vcombine.low %v7409_v30, %v7425_v55  ;;  %v7429_v51 = vcombine.high %v7409_v30, %v7425_v55 }
 0xf64   :  { %v7646_v16 = vrot.slane %v7638_v15, %v13594_v28  ;;  %v7653_v62 = vrot.slane %v7639_v35, %v13594_v28  ;;  %v7496_v42 = vcombine.low %v7477_v47, %v7493_v46  ;;  %v7497_v26 = vcombine.high %v7477_v47, %v7493_v46 }
 0xf65   :  { %v6473_v40 = vrot.slane %v6459_v29, %v13594_v28  ;;  %v6489_v36 = vrot.slane %v6475_v53, %v13594_v28  ;;  %v6517_v43 = vrot.slane %v6510_v22, %v13589_v21  ;;  %v6525_v57 = vrot.slane %v12032_v31, %v13589_v21 }
 0xf66   :  { %v7658_v19 = vcombine.low %v7562_v60, %v7569_v1  ;;  %v12045_v41 = vcombine.high %v7562_v60, %v7569_v1  ;;  %v7500_v23 = vpack.c.bf16 %v7496_v42, %v7428_v33  ;;  %v7501_v27 = vpack.c.bf16 %v7497_v26, %v7429_v51 }
 0xf67   :  { %v7674_v38 = vcombine.low %v7578_v13, %v7585_v18  ;;  %v12046_v44 = vcombine.high %v7578_v13, %v7585_v18  ;;  %v7726_v4 = vcombine.low %v7630_v14, %v7637_v11  ;;  %v12047_v48 = vcombine.high %v7630_v14, %v7637_v11 }
 0xf68   :  { %v7742_v24 = vcombine.low %v7646_v16, %v7653_v62  ;;  %v12048_v15 = vcombine.high %v7646_v16, %v7653_v62  ;;  %v7894_v30 = vsel %vm1947_vm2, %v7500_v23, 0  ;;  %v7940_v29 = vsel %vm1947_vm2, %v7501_v27, 0 }
 0xf69   :  { %v6526_v53 = vcombine.low %v14965_v39, %v14973_v49  ;;  %12755 = vmatpush3.bf16.xpose.msra.mxu0 %v7894_v30  ;;  %12761 = vmatpush3.bf16.xpose.msra.mxu1 %v7940_v29  ;;  %v6492_v22 = vcombine.low %v6473_v40, %v6489_v36  ;;  %v6493_v31 = vcombine.high %v6473_v40, %v6489_v36 }
 0xf6a   :  { %v6542_v37 = vcombine.low %v6517_v43, %v6525_v57  ;;  %12766 = vmatprep.subr.bf16.mxu0 %v15910_v50  ;;  %12772 = vmatprep.subr.bf16.mxu1 %v15910_v50  ;;  %v15028_v35 = vrot.slane %v7658_v19, %v13589_v21  ;;  %v15031_v8 = vrot.slane %v12045_v41, %v13589_v21 }
 0xf6b   :  { %v15034_v9 = vrot.slane %v7674_v38, %v13589_v21  ;;  %v15037_v60 = vrot.slane %v12046_v44, %v13589_v21  ;;  %v15040_v1 = vrot.slane %v7726_v4, %v13589_v21  ;;  %v15043_v55 = vrot.slane %v12047_v48, %v13589_v21 }
 0xf6c   :  { %v15046_v13 = vrot.slane %v7742_v24, %v13589_v21  ;;  %v15049_v18 = vrot.slane %v12048_v15, %v13589_v21  ;;  %v6534_v47 = vrot.slane %v6526_v53, %v13594_v28  ;;  %v6550_v46 = vrot.slane %v6542_v37, %v13594_v28 }
 0xf6d   :  { %v15053_v14 = vpack.c.bf16 %v6492_v22, %v6492_v22  ;;  %v15055_v11 = vpack.c.bf16 %v6493_v31, %v6493_v31  ;;  %v7690_v33 = vcombine.low %v15028_v35, %v15031_v8  ;;  %v7706_v51 = vcombine.low %v15034_v9, %v15037_v60  ;;  %v6585_v31 = vpop.permute.xlu1 %6584 }
 0xf6e   :  { %v7758_v16 = vcombine.low %v15040_v1, %v15043_v55  ;;  %v7774_v62 = vcombine.low %v15046_v13, %v15049_v18  ;;  %v6527_v42 = vcombine.high %v14965_v39, %v14973_v49  ;;  %v6543_v26 = vcombine.high %v6517_v43, %v6525_v57 }
 0xf6f   :  { %v6558_v40 = vcombine.low %v6534_v47, %v6550_v46  ;;  %v6559_v36 = vcombine.high %v6534_v47, %v6550_v46  ;;  %v7698_v19 = vrot.slane %v7690_v33, %v13594_v28  ;;  %v7714_v39 = vrot.slane %v7706_v51, %v13594_v28 }
 0xf70   :  { %12757 = vmatmul.mubr.msk.bf16.vlgmr.msra.gmra.mxu0 %vm1947_vm2, %v15053_v14  ;;  %12763 = vmatmul.mubr.msk.bf16.vlgmr.msra.gmra.mxu1 %vm1947_vm2, %v15055_v11  ;;  %v6541_v49 = vrot.slane %v6527_v42, %v13594_v28  ;;  %v6557_v43 = vrot.slane %v6543_v26, %v13594_v28  ;;  %v7707_v42 = vcombine.high %v15034_v9, %v15037_v60 }
 0xf71   :  { %12767 = vmatpush3.bf16.xpose.msra.mxu0 %v14953_v5  ;;  %12773 = vmatpush3.bf16.xpose.msra.mxu1 %v14956_v54  ;;  %v7766_v5 = vrot.slane %v7758_v16, %v13594_v28  ;;  %v7782_v54 = vrot.slane %v7774_v62, %v13594_v28  ;;  %v15085_v57 = vpack.c.bf16 %v6558_v40, %v6558_v40 }
 0xf72   :  { %12768 = vmatprep.mubr.msk.bf16.mxu0 %vm13301_vm1, %v15910_v50  ;;  %12774 = vmatprep.mubr.msk.bf16.mxu1 %vm13301_vm1, %v15910_v50  ;;  %v15087_v41 = vpack.c.bf16 %v6559_v36, %v6559_v36  ;;  %v7722_v23 = vcombine.low %v7698_v19, %v7714_v39  ;;  %v7723_v38 = vcombine.high %v7698_v19, %v7714_v39 }
 0xf73   :  { %12778 = vmatprep.subr.bf16.mxu0 %v15910_v50  ;;  %12784 = vmatprep.subr.bf16.mxu1 %v15910_v50  ;;  %v7790_v27 = vcombine.low %v7766_v5, %v7782_v54  ;;  %v7791_v44 = vcombine.high %v7766_v5, %v7782_v54  ;;  %v6560_v4 = vcombine.low %v6541_v49, %v6557_v43 }
 0xf74   :  { %v6561_v48 = vcombine.high %v6541_v49, %v6557_v43  ;;  %v7691_v62 = vcombine.high %v15028_v35, %v15031_v8  ;;  %v7759_v36 = vcombine.high %v15040_v1, %v15043_v55  ;;  %v7775_v19 = vcombine.high %v15046_v13, %v15049_v18 }
 0xf75   :  { %v7794_v24 = vpack.c.bf16 %v7790_v27, %v7722_v23  ;;  %v7795_v15 = vpack.c.bf16 %v7791_v44, %v7723_v38  ;;  %v15099_v53 = vpack.c.bf16 %v6560_v4, %v6560_v4  ;;  %v7721_v9 = vrot.slane %v7707_v42, %v13594_v28 }
 0xf76   :  { %v15101_v22 = vpack.c.bf16 %v6561_v48, %v6561_v48  ;;  %v7705_v8 = vrot.slane %v7691_v62, %v13594_v28  ;;  %v7773_v13 = vrot.slane %v7759_v36, %v13594_v28  ;;  %v7789_v18 = vrot.slane %v7775_v19, %v13594_v28 }
 0xf78   :  { %12769 = vmatmul.mubr.msk.bf16.vlgmr.msra.gmra.mxu0 %vm1947_vm2, %v15085_v57  ;;  %12775 = vmatmul.mubr.msk.bf16.vlgmr.msra.gmra.mxu1 %vm1947_vm2, %v15087_v41  ;;  %v7792_v42 = vcombine.low %v7773_v13, %v7789_v18 }
 0xf79   :  { %12779 = vmatpush3.bf16.xpose.msra.mxu0 %v7894_v30  ;;  %12785 = vmatpush3.bf16.xpose.msra.mxu1 %v7940_v29  ;;  %v15108_v30 = vsel %vm1947_vm2, %v7794_v24, 0  ;;  %v15111_v29 = vsel %vm1947_vm2, %v7795_v15, 0 }
 0xf7a   :  { %12780 = vmatprep.mubr.msk.bf16.mxu0 %vm13301_vm1, %v15910_v50  ;;  %12786 = vmatprep.mubr.msk.bf16.mxu1 %vm13301_vm1, %v15910_v50 }
 0xf7b   :  { %12790 = vmatprep.subr.bf16.mxu0 %v15910_v50  ;;  %12796 = vmatprep.subr.bf16.mxu1 %v15910_v50 }
 0xf80   :  { %12781 = vmatmul.mubr.msk.bf16.vlgmr.msra.gmra.mxu0 %vm1947_vm2, %v15099_v53  ;;  %12787 = vmatmul.mubr.msk.bf16.vlgmr.msra.gmra.mxu1 %vm1947_vm2, %v15101_v22 }
 0xf81   :  { %12791 = vmatpush3.bf16.xpose.msra.mxu0 %v15108_v30  ;;  %12797 = vmatpush3.bf16.xpose.msra.mxu1 %v15111_v29 }
 0xf82   :  { %12792 = vmatprep.mubr.msk.bf16.mxu0 %vm13301_vm1, %v15910_v50  ;;  %12798 = vmatprep.mubr.msk.bf16.mxu1 %vm13301_vm1, %v15910_v50 }
 0xf83   :  { %12802 = vmatprep.subr.bf16.mxu0 %v15910_v50  ;;  %12808 = vmatprep.subr.bf16.mxu1 %v15910_v50 }
 0xf99   :  { %v6593_v37 = vpop.permute.xlu1 %6592  ;;  %v6589_v47 = vpop.permute.xlu0 %6588 }
 0xf9a   :  { %v6608_v46 = vcombine.low %v6585_v31, %v6593_v37  ;;  %v6609_v33 = vcombine.high %v6585_v31, %v6593_v37  ;;  %v7724_v31 = vcombine.low %v7705_v8, %v7721_v9 }
 0xf9c   :  { %v6616_v39 = vrot.slane %v6608_v46, %v13589_v21  ;;  %v6623_v5 = vrot.slane %v6609_v33, %v13589_v21 }
 0xf9d   :  { %v6587_v51 = vpop.permute.xlu1 %6586  ;;  %v6597_v16 = vpop.permute.xlu0 %6596 }
 0xf9e   :  { %v6624_v26 = vcombine.low %v6589_v47, %v6597_v16  ;;  %v6625_v40 = vcombine.high %v6589_v47, %v6597_v16 }
 0xfa0   :  { %v6632_v54 = vrot.slane %v6624_v26, %v13589_v21  ;;  %v6639_v49 = vrot.slane %v6625_v40, %v13589_v21  ;;  %v7725_v26 = vcombine.high %v7705_v8, %v7721_v9  ;;  %v7793_v8 = vcombine.high %v7773_v13, %v7789_v18 }
 0xfa1   :  { %v6591_v35 = vpop.permute.xlu0 %6590  ;;  %v6595_v55 = vpop.permute.xlu1 %6594 }
 0xfa2   :  { %v6640_v60 = vcombine.low %v6616_v39, %v6632_v54  ;;  %v6641_v43 = vcombine.high %v6616_v39, %v6632_v54  ;;  %v6656_v23 = vcombine.low %v6623_v5, %v6639_v49  ;;  %v6657_v1 = vcombine.high %v6623_v5, %v6639_v49 }
 0xfa3   :  { %v6676_v48 = vcombine.low %v6587_v51, %v6595_v55  ;;  %v6677_v24 = vcombine.high %v6587_v51, %v6595_v55 }
 0xfa4   :  { %v6648_v27 = vrot.slane %v6640_v60, %v13594_v28  ;;  %v6655_v38 = vrot.slane %v6641_v43, %v13594_v28  ;;  %v6664_v44 = vrot.slane %v6656_v23, %v13594_v28  ;;  %v6671_v4 = vrot.slane %v6657_v1, %v13594_v28 }
 0xfa5   :  { %v6599_v15 = vpop.permute.xlu0 %6598  ;;  %v6684_v51 = vrot.slane %v6676_v48, %v13589_v21  ;;  %v6691_v5 = vrot.slane %v6677_v24, %v13589_v21 }
 0xfa6   :  { %v6744_v37 = vcombine.low %v6648_v27, %v6655_v38  ;;  %v12033_v47 = vcombine.high %v6648_v27, %v6655_v38  ;;  %v6760_v46 = vcombine.low %v6664_v44, %v6671_v4  ;;  %v12034_v33 = vcombine.high %v6664_v44, %v6671_v4 }
 0xfa7   :  { %v6692_v16 = vcombine.low %v6591_v35, %v6599_v15  ;;  %v6693_v62 = vcombine.high %v6591_v35, %v6599_v15  ;;  %v7796_v4 = vpack.c.bf16 %v7792_v42, %v7724_v31 }
 0xfa8   :  { %v6751_v40 = vrot.slane %v6744_v37, %v13589_v21  ;;  %v6759_v36 = vrot.slane %v12033_v47, %v13589_v21  ;;  %v6767_v19 = vrot.slane %v6760_v46, %v13589_v21  ;;  %v6775_v39 = vrot.slane %v12034_v33, %v13589_v21 }
 0xfa9   :  { %v6700_v54 = vrot.slane %v6692_v16, %v13589_v21  ;;  %v6707_v49 = vrot.slane %v6693_v62, %v13589_v21  ;;  %v6140_v47 = vpop.permute.xlu0 %6139  ;;  %v7797_v33 = vpack.c.bf16 %v7793_v8, %v7725_v26 }
 0xfaa   :  { %v6776_v60 = vcombine.low %v6751_v40, %v6759_v36  ;;  %v6777_v35 = vcombine.high %v6751_v40, %v6759_v36  ;;  %v6792_v43 = vcombine.low %v6767_v19, %v6775_v39  ;;  %v6793_v38 = vcombine.high %v6767_v19, %v6775_v39 }
 0xfab   :  { %v6708_v9 = vcombine.low %v6684_v51, %v6700_v54  ;;  %v6709_v23 = vcombine.high %v6684_v51, %v6700_v54  ;;  %v6724_v1 = vcombine.low %v6691_v5, %v6707_v49  ;;  %v6725_v55 = vcombine.high %v6691_v5, %v6707_v49 }
 0xfac   :  { %v6784_v27 = vrot.slane %v6776_v60, %v13594_v28  ;;  %v6800_v44 = vrot.slane %v6792_v43, %v13594_v28  ;;  %v6791_v13 = vrot.slane %v6777_v35, %v13594_v28  ;;  %v6807_v31 = vrot.slane %v6793_v38, %v13594_v28 }
 0xfad   :  { %v6716_v48 = vrot.slane %v6708_v9, %v13594_v28  ;;  %v6723_v24 = vrot.slane %v6709_v23, %v13594_v28  ;;  %v6732_v15 = vrot.slane %v6724_v1, %v13594_v28  ;;  %v6739_v37 = vrot.slane %v6725_v55, %v13594_v28 }
 0xfae   :  { %v6808_v18 = vcombine.low %v6784_v27, %v6800_v44  ;;  %v6809_v46 = vcombine.high %v6784_v27, %v6800_v44  ;;  %v15158_v42 = vadd.f32 %v6140_v47, %v14753_v12  ;;  %v8250_v12 = vsel %vm1947_vm2, %v7796_v4, 0 }
 0xfaf   :  { %v6812_v16 = vcombine.low %v6716_v48, %v6723_v24  ;;  %v12035_v62 = vcombine.high %v6716_v48, %v6723_v24  ;;  %v6828_v40 = vcombine.low %v6732_v15, %v6739_v37  ;;  %v12036_v36 = vcombine.high %v6732_v15, %v6739_v37 }
 0xfb0   :  { %v15160_v19 = vpack.c.bf16 %v6808_v18, %v6808_v18  ;;  %v15162_v39 = vpack.c.bf16 %v6809_v46, %v6809_v46  ;;  %6894 = vrot.lane.b32.xlu0 %v15158_v42, %s13303_s2  ;;  %6890 = vrot.lane.b32.xlu1 %v15158_v42, %s13302_s6  ;;  %v8296_v49 = vsel %vm1947_vm2, %v7797_v33, 0  ;;  %v6810_v60 = vcombine.low %v6791_v13, %v6807_v31 }
 0xfb1   :  { %v6819_v51 = vrot.slane %v6812_v16, %v13589_v21  ;;  %v6827_v5 = vrot.slane %v12035_v62, %v13589_v21  ;;  %v6835_v54 = vrot.slane %v6828_v40, %v13589_v21  ;;  %v6843_v26 = vrot.slane %v12036_v36, %v13589_v21 }
 0xfb2   :  { %12793 = vmatmul.mubr.msk.bf16.vlgmr.msra.gmra.mxu0 %vm1947_vm2, %v15160_v19  ;;  %12799 = vmatmul.mubr.msk.bf16.vlgmr.msra.gmra.mxu1 %vm1947_vm2, %v15162_v39  ;;  %v6811_v8 = vcombine.high %v6791_v13, %v6807_v31  ;;  %v15185_v9 = vadd.f32 %v6140_v47, %v14759_v3  ;;  %v15191_v55 = vpack.c.bf16 %v6810_v60, %v6810_v60 }
 0xfb3   :  { %12803 = vmatpush3.bf16.xpose.msra.mxu0 %v8250_v12  ;;  %v6844_v35 = vcombine.low %v6819_v51, %v6827_v5  ;;  %v6860_v43 = vcombine.low %v6835_v54, %v6843_v26  ;;  %12809 = vmatpush3.bf16.xpose.msra.mxu1 %v8296_v49  ;;  %v6845_v3 = vcombine.high %v6819_v51, %v6827_v5 }
 0xfb4   :  { %6898 = vrot.lane.b32.xlu1 %v15158_v42, %s13304_s29  ;;  %12804 = vmatprep.mubr.msk.bf16.mxu0 %vm13301_vm1, %v15910_v50  ;;  %v15195_v27 = vpack.c.bf16 %v6811_v8, %v6811_v8  ;;  %v6861_v38 = vcombine.high %v6835_v54, %v6843_v26 }
 0xfb5   :  { %12810 = vmatprep.mubr.msk.bf16.mxu1 %vm13301_vm1, %v15910_v50  ;;  %12814 = vmatprep.subr.bf16.mxu0 %v15910_v50  ;;  %v6852_v23 = vrot.slane %v6844_v35, %v13594_v28  ;;  %v6868_v1 = vrot.slane %v6860_v43, %v13594_v28 }
 0xfb6   :  { %12820 = vmatprep.subr.bf16.mxu1 %v15910_v50  ;;  %v6875_v48 = vrot.slane %v6861_v38, %v13594_v28 }
 0xfb7   :  { %v6876_v44 = vcombine.low %v6852_v23, %v6868_v1  ;;  %v6877_v4 = vcombine.high %v6852_v23, %v6868_v1 }
 0xfb8   :  { %6892 = vrot.lane.b32.xlu1 %v15185_v9, %s13302_s6 }
 0xfb9   :  { %v15213_v24 = vpack.c.bf16 %v6876_v44, %v6876_v44 }
 0xfba   :  { %12805 = vmatmul.mubr.msk.bf16.vlgmr.msra.gmra.mxu0 %vm1947_vm2, %v15191_v55  ;;  %12811 = vmatmul.mubr.msk.bf16.vlgmr.msra.gmra.mxu1 %vm1947_vm2, %v15195_v27 }
 0xfbb   :  { %12815 = vmatpush3.bf16.xpose.msra.mxu0 %v15108_v30  ;;  %12821 = vmatpush3.bf16.xpose.msra.mxu1 %v15111_v29  ;;  %v6859_v30 = vrot.slane %v6845_v3, %v13594_v28  ;;  %v15217_v29 = vpack.c.bf16 %v6877_v4, %v6877_v4 }
 0xfbc   :  { %12816 = vmatprep.mubr.msk.bf16.mxu0 %vm13301_vm1, %v15910_v50  ;;  %6896 = vrot.lane.b32.xlu1 %v15185_v9, %s13303_s2 }
 0xfbd   :  { %12822 = vmatprep.mubr.msk.bf16.mxu1 %vm13301_vm1, %v15910_v50  ;;  %12826 = vmatprep.subr.bf16.mxu0 %v15910_v50  ;;  %v6878_v15 = vcombine.low %v6859_v30, %v6875_v48  ;;  %v6879_v37 = vcombine.high %v6859_v30, %v6875_v48 }
 0xfbe   :  { %12832 = vmatprep.subr.bf16.mxu1 %v15910_v50 }
 0xfbf   :  { %v15229_v47 = vpack.c.bf16 %v6878_v15, %v6878_v15  ;;  %v15231_v13 = vpack.c.bf16 %v6879_v37, %v6879_v37 }
 0xfc0   :  { %6900 = vrot.lane.b32.xlu1 %v15185_v9, %s13304_s29  ;;  %s15914_s29 = smov 24  }
 0xfc2   :  { %12817 = vmatmul.mubr.msk.bf16.vlgmr.msra.gmra.mxu0 %vm1947_vm2, %v15213_v24  ;;  %12823 = vmatmul.mubr.msk.bf16.vlgmr.msra.gmra.mxu1 %vm1947_vm2, %v15217_v29 }
 0xfc3   :  { %12827 = vmatpush3.bf16.xpose.msra.mxu0 %v8250_v12  ;;  %12833 = vmatpush3.bf16.xpose.msra.mxu1 %v8296_v49 }
 0xfc4   :  { %12828 = vmatprep.mubr.msk.bf16.mxu0 %vm13301_vm1, %v15910_v50  ;;  %12834 = vmatprep.mubr.msk.bf16.mxu1 %vm13301_vm1, %v15910_v50 }
 0xfc5   :  { %12838 = vmatprep.subr.bf16.mxu0 %v15910_v50  ;;  %12844 = vmatprep.subr.bf16.mxu1 %v15910_v50 }
 0xfca   :  { %12829 = vmatmul.mubr.msk.bf16.vlgmr.msra.gmra.mxu0 %vm1947_vm2, %v15229_v47  ;;  %12835 = vmatmul.mubr.msk.bf16.vlgmr.msra.gmra.mxu1 %vm1947_vm2, %v15231_v13 }
 0xfcb   :  { %12839 = vmatpush3.bf16.xpose.msra.mxu0 %v14007_v34  ;;  %12845 = vmatpush3.bf16.xpose.msra.mxu1 %v14010_v45 }
 0xfcc   :  { %12840 = vmatprep.mubr.msk.bf16.mxu0 %vm13301_vm1, %v15910_v50  ;;  %12846 = vmatprep.mubr.msk.bf16.mxu1 %vm13301_vm1, %v15910_v50 }
 0xfcd   :  { %12850 = vmatprep.subr.bf16.mxu0 %v15910_v50  ;;  %12856 = vmatprep.subr.bf16.mxu1 %v15910_v50 }
0x1021   :  { %v7838_v18 = vpop.f32.mrf.mxu0  ;;  %v7884_v46 = vpop.f32.mrf.mxu1 }
0x1023   :  { %v12746_v33 = vpop.f32.mrf.mxu0  ;;  %v12752_v16 = vpop.f32.mrf.mxu1 }
0x1025   :  { %v7841_v62 = vpop.f32.mrf.mxu0  ;;  %v7887_v40 = vpop.f32.mrf.mxu1 }
0x1027   :  { %v12747_v36 = vpop.f32.mrf.mxu0  ;;  %v12753_v34 = vpop.f32.mrf.mxu1 }
0x1030   :  { %v7930_v31 = vpop.f32.mrf.mxu0  ;;  %v7976_v45 = vpop.f32.mrf.mxu1 }
0x1031   :  { %v8510_v23 = vcombine.low %v7838_v18, %v7930_v31  ;;  %v8526_v1 = vcombine.low %v7884_v46, %v7976_v45 }
0x1032   :  { %v12758_v51 = vpop.f32.mrf.mxu0  ;;  %v12764_v5 = vpop.f32.mrf.mxu1 }
0x1033   :  { %v8518_v30 = vrot.slane %v8510_v23, %v13589_v21  ;;  %v8534_v48 = vrot.slane %v8526_v1, %v13589_v21 }
0x1034   :  { %v7933_v54 = vpop.f32.mrf.mxu0  ;;  %v7979_v26 = vpop.f32.mrf.mxu1 }
0x1035   :  { %v8574_v36 = vcombine.low %v8518_v30, %v8534_v48 }
0x1036   :  { %v12759_v12 = vpop.f32.mrf.mxu0  ;;  %v12765_v49 = vpop.f32.mrf.mxu1 }
0x1038   :  { %v8019_v60 = vpop.f32.mrf.mxu0  ;;  %v8062_v35 = vpop.f32.mrf.mxu1 }
0x103a   :  { %v12770_v43 = vpop.f32.mrf.mxu0  ;;  %v12776_v8 = vpop.f32.mrf.mxu1 }
0x103b   :  { %v8582_v8 = vrot.slane %v8574_v36, %v13594_v28 }
0x103c   :  { %v8022_v3 = vpop.f32.mrf.mxu0  ;;  %v8065_v38 = vpop.f32.mrf.mxu1 }
0x103d   :  { %v8511_v38 = vcombine.high %v7838_v18, %v7930_v31 }
0x103e   :  { %v12771_v44 = vpop.f32.mrf.mxu0  ;;  %v12777_v4 = vpop.f32.mrf.mxu1 }
0x103f   :  { %v8527_v44 = vcombine.high %v7884_v46, %v7976_v45  ;;  %v8575_v4 = vcombine.high %v8518_v30, %v8534_v48 }
0x1040   :  { %v8105_v15 = vpop.f32.mrf.mxu0  ;;  %v8148_v37 = vpop.f32.mrf.mxu1 }
0x1041   :  { %v8542_v33 = vcombine.low %v8019_v60, %v8105_v15  ;;  %v8558_v16 = vcombine.low %v8062_v35, %v8148_v37  ;;  %v8543_v12 = vcombine.high %v8019_v60, %v8105_v15  ;;  %v8559_v23 = vcombine.high %v8062_v35, %v8148_v37 }
0x1042   :  { %v12782_v62 = vpop.f32.mrf.mxu0  ;;  %v12788_v40 = vpop.f32.mrf.mxu1  ;;  %v8541_v35 = vrot.slane %v8527_v44, %v13589_v21  ;;  %v8589_v37 = vrot.slane %v8575_v4, %v13594_v28 }
0x1043   :  { %v8550_v34 = vrot.slane %v8542_v33, %v13589_v21  ;;  %v8566_v51 = vrot.slane %v8558_v16, %v13589_v21  ;;  %v8557_v33 = vrot.slane %v8543_v12, %v13589_v21  ;;  %v8573_v16 = vrot.slane %v8559_v23, %v13589_v21 }
0x1044   :  { %v8108_v5 = vpop.f32.mrf.mxu0  ;;  %v8151_v54 = vpop.f32.mrf.mxu1 }
0x1045   :  { %v8606_v26 = vcombine.low %v8550_v34, %v8566_v51  ;;  %v8607_v1 = vcombine.high %v8550_v34, %v8566_v51  ;;  %v8525_v54 = vrot.slane %v8511_v38, %v13589_v21  ;;  %v8622_v18 = vcombine.low %v8557_v33, %v8573_v16 }
0x1046   :  { %v12783_v49 = vpop.f32.mrf.mxu0  ;;  %v12789_v43 = vpop.f32.mrf.mxu1  ;;  %v8623_v36 = vcombine.high %v8557_v33, %v8573_v16 }
0x1047   :  { %v8614_v3 = vrot.slane %v8606_v26, %v13594_v28  ;;  %v8621_v5 = vrot.slane %v8607_v1, %v13594_v28  ;;  %v8590_v45 = vcombine.low %v8525_v54, %v8541_v35  ;;  %v8630_v30 = vrot.slane %v8622_v18, %v13594_v28 }
0x1048   :  { %v8591_v26 = vcombine.high %v8525_v54, %v8541_v35  ;;  %v8637_v12 = vrot.slane %v8623_v36, %v13594_v28 }
0x1049   :  { %v8638_v62 = vcombine.low %v8582_v8, %v8614_v3  ;;  %v8639_v40 = vcombine.high %v8582_v8, %v8614_v3  ;;  %v8640_v46 = vcombine.low %v8589_v37, %v8621_v5  ;;  %v8641_v31 = vcombine.high %v8589_v37, %v8621_v5 }
0x104b   :  { %v8646_v60 = vpack.c.bf16 %v8638_v62, %v8638_v62  ;;  %v8647_v15 = vpack.c.bf16 %v8639_v40, %v8639_v40  ;;  %v8648_v48 = vpack.c.bf16 %v8640_v46, %v8640_v46 }
0x104d   :  { %12841 = vmatmul.mubr.msk.bf16.vlgmr.msra.gmra.mxu0 %vm2804_vm3, %v8646_v60  ;;  %12847 = vmatmul.mubr.msk.bf16.vlgmr.msra.gmra.mxu1 %vm2804_vm3, %v8647_v15 }
0x104e   :  { %12851 = vmatpush3.bf16.xpose.msra.mxu0 %v14031_v56  ;;  %12857 = vmatpush3.bf16.xpose.msra.mxu1 %v14034_v0  ;;  %v8649_v56 = vpack.c.bf16 %v8641_v31, %v8641_v31  ;;  %v8598_v0 = vrot.slane %v8590_v45, %v13594_v28 }
0x104f   :  { %12852 = vmatprep.mubr.msk.bf16.mxu0 %vm13301_vm1, %v15910_v50  ;;  %12858 = vmatprep.mubr.msk.bf16.mxu1 %vm13301_vm1, %v15910_v50 }
0x1050   :  { %12862 = vmatprep.subr.bf16.mxu0 %v15910_v50  ;;  %12868 = vmatprep.subr.bf16.mxu1 %v15910_v50  ;;  %v8642_v34 = vcombine.low %v8598_v0, %v8630_v30  ;;  %v8643_v51 = vcombine.high %v8598_v0, %v8630_v30 }
0x1052   :  { %v8650_v49 = vpack.c.bf16 %v8642_v34, %v8642_v34 }
0x1055   :  { %12853 = vmatmul.mubr.msk.bf16.vlgmr.msra.gmra.mxu0 %vm2804_vm3, %v8648_v48  ;;  %12859 = vmatmul.mubr.msk.bf16.vlgmr.msra.gmra.mxu1 %vm2804_vm3, %v8649_v56 }
0x1056   :  { %12863 = vmatpush3.bf16.xpose.msra.mxu0 %v14058_v20  ;;  %12869 = vmatpush3.bf16.xpose.msra.mxu1 %v14062_v25  ;;  %v8651_v20 = vpack.c.bf16 %v8643_v51, %v8643_v51  ;;  %v8605_v25 = vrot.slane %v8591_v26, %v13594_v28 }
0x1057   :  { %12864 = vmatprep.mubr.msk.bf16.mxu0 %vm13301_vm1, %v15910_v50  ;;  %12870 = vmatprep.mubr.msk.bf16.mxu1 %vm13301_vm1, %v15910_v50 }
0x1058   :  { %12874 = vmatprep.subr.bf16.mxu0 %v15910_v50  ;;  %12880 = vmatprep.subr.bf16.mxu1 %v15910_v50  ;;  %v8644_v43 = vcombine.low %v8605_v25, %v8637_v12  ;;  %v8645_v8 = vcombine.high %v8605_v25, %v8637_v12 }
0x105a   :  { %v8652_v23 = vpack.c.bf16 %v8644_v43, %v8644_v43  ;;  %v8653_v1 = vpack.c.bf16 %v8645_v8, %v8645_v8 }
0x105d   :  { %12865 = vmatmul.mubr.msk.bf16.vlgmr.msra.gmra.mxu0 %vm2804_vm3, %v8650_v49  ;;  %12871 = vmatmul.mubr.msk.bf16.vlgmr.msra.gmra.mxu1 %vm2804_vm3, %v8651_v20 }
0x105e   :  { %12875 = vmatpush3.bf16.xpose.msra.mxu0 %v14082_v10  ;;  %12881 = vmatpush3.bf16.xpose.msra.mxu1 %v14086_v58 }
0x105f   :  { %12876 = vmatprep.mubr.msk.bf16.mxu0 %vm13301_vm1, %v15910_v50  ;;  %12882 = vmatprep.mubr.msk.bf16.mxu1 %vm13301_vm1, %v15910_v50 }
0x1060   :  { %12886 = vmatprep.subr.bf16.mxu0 %v15910_v50  ;;  %12892 = vmatprep.subr.bf16.mxu1 %v15910_v50 }
0x1065   :  { %12877 = vmatmul.mubr.msk.bf16.vlgmr.msra.gmra.mxu0 %vm2804_vm3, %v8652_v23  ;;  %12883 = vmatmul.mubr.msk.bf16.vlgmr.msra.gmra.mxu1 %vm2804_vm3, %v8653_v1 }
0x1066   :  { %12887 = vmatpush3.bf16.xpose.msra.mxu0 %v14106_v61  ;;  %12893 = vmatpush3.bf16.xpose.msra.mxu1 %v14109_v63 }
0x1067   :  { %12888 = vmatprep.mubr.msk.bf16.mxu0 %vm13301_vm1, %v15910_v50  ;;  %12894 = vmatprep.mubr.msk.bf16.mxu1 %vm13301_vm1, %v15910_v50 }
0x1068   :  { %12898 = vmatprep.subr.bf16.mxu0 %v15910_v50  ;;  %12904 = vmatprep.subr.bf16.mxu1 %v15910_v50 }
0x1072   :  { %v8194_v10 = vpop.f32.mrf.mxu0  ;;  %v8240_v58 = vpop.f32.mrf.mxu1 }
0x1074   :  { %v12794_v3 = vpop.f32.mrf.mxu0  ;;  %v12800_v38 = vpop.f32.mrf.mxu1 }
0x1076   :  { %v8197_v44 = vpop.f32.mrf.mxu0  ;;  %v8243_v4 = vpop.f32.mrf.mxu1 }
0x1078   :  { %v12795_v62 = vpop.f32.mrf.mxu0  ;;  %v12801_v61 = vpop.f32.mrf.mxu1 }
0x107a   :  { %v8286_v40 = vpop.f32.mrf.mxu0  ;;  %v8332_v63 = vpop.f32.mrf.mxu1 }
0x107b   :  { %v9134_v31 = vcombine.low %v8194_v10, %v8286_v40  ;;  %v9150_v45 = vcombine.low %v8240_v58, %v8332_v63 }
0x107c   :  { %v12806_v33 = vpop.f32.mrf.mxu0  ;;  %v12812_v16 = vpop.f32.mrf.mxu1 }
0x107d   :  { %v9142_v36 = vrot.slane %v9134_v31, %v13589_v21  ;;  %v9158_v34 = vrot.slane %v9150_v45, %v13589_v21 }
0x107e   :  { %v8289_v5 = vpop.f32.mrf.mxu0  ;;  %v8335_v60 = vpop.f32.mrf.mxu1 }
0x107f   :  { %v9198_v8 = vcombine.low %v9142_v36, %v9158_v34  ;;  %v9135_v60 = vcombine.high %v8194_v10, %v8286_v40 }
0x1080   :  { %v12807_v15 = vpop.f32.mrf.mxu0  ;;  %v12813_v54 = vpop.f32.mrf.mxu1 }
0x1081   :  { %v9206_v61 = vrot.slane %v9198_v8, %v13594_v28  ;;  %v9151_v15 = vcombine.high %v8240_v58, %v8332_v63  ;;  %v9199_v54 = vcombine.high %v9142_v36, %v9158_v34 }
0x1082   :  { %v8375_v35 = vpop.f32.mrf.mxu0  ;;  %v8418_v37 = vpop.f32.mrf.mxu1 }
0x1084   :  { %v12818_v18 = vpop.f32.mrf.mxu0  ;;  %v12824_v46 = vpop.f32.mrf.mxu1 }
0x1086   :  { %v8378_v30 = vpop.f32.mrf.mxu0  ;;  %v8421_v48 = vpop.f32.mrf.mxu1 }
0x1088   :  { %v12819_v56 = vpop.f32.mrf.mxu0  ;;  %v12825_v0 = vpop.f32.mrf.mxu1 }
0x1089   :  { %v9149_v56 = vrot.slane %v9135_v60, %v13589_v21  ;;  %v9213_v0 = vrot.slane %v9199_v54, %v13594_v28 }
0x108a   :  { %v8461_v51 = vpop.f32.mrf.mxu0  ;;  %v8504_v12 = vpop.f32.mrf.mxu1 }
0x108b   :  { %v9166_v26 = vcombine.low %v8375_v35, %v8461_v51  ;;  %v9182_v49 = vcombine.low %v8418_v37, %v8504_v12  ;;  %v9167_v4 = vcombine.high %v8375_v35, %v8461_v51  ;;  %v9183_v33 = vcombine.high %v8418_v37, %v8504_v12 }
0x108c   :  { %v12830_v20 = vpop.f32.mrf.mxu0  ;;  %v12836_v43 = vpop.f32.mrf.mxu1  ;;  %v9165_v37 = vrot.slane %v9151_v15, %v13589_v21 }
0x108d   :  { %v9174_v25 = vrot.slane %v9166_v26, %v13589_v21  ;;  %v9190_v23 = vrot.slane %v9182_v49, %v13589_v21  ;;  %v9181_v31 = vrot.slane %v9167_v4, %v13589_v21  ;;  %v9197_v45 = vrot.slane %v9183_v33, %v13589_v21  ;;  %v15911_v43 = vld [vmem:[#allocation11_spill] sm:$0xff] }
0x108e   :  { %v8464_v1 = vpop.f32.mrf.mxu0  ;;  %v8507_v3 = vpop.f32.mrf.mxu1  ;;  %v9214_v63 = vcombine.low %v9149_v56, %v9165_v37  ;;  %v9215_v49 = vcombine.high %v9149_v56, %v9165_v37 }
0x108f   :  { %v9230_v38 = vcombine.low %v9174_v25, %v9190_v23  ;;  %v9231_v16 = vcombine.high %v9174_v25, %v9190_v23  ;;  %v9246_v10 = vcombine.low %v9181_v31, %v9197_v45  ;;  %v9247_v51 = vcombine.high %v9181_v31, %v9197_v45 }
0x1090   :  { %v12831_v44 = vpop.f32.mrf.mxu0  ;;  %v12837_v62 = vpop.f32.mrf.mxu1 }
0x1091   :  { %v9238_v5 = vrot.slane %v9230_v38, %v13594_v28  ;;  %v9245_v30 = vrot.slane %v9231_v16, %v13594_v28  ;;  %v9254_v36 = vrot.slane %v9246_v10, %v13594_v28  ;;  %v9261_v20 = vrot.slane %v9247_v51, %v13594_v28 }
0x1092   :  { %v8201_v38 = vsel %vm1947_vm2, %v15162_v39, 0  ;;  %v8293_v39 = vsel %vm1947_vm2, %v15195_v27, 0 }
0x1093   :  { %v9262_v18 = vcombine.low %v9206_v61, %v9238_v5  ;;  %v9263_v46 = vcombine.high %v9206_v61, %v9238_v5  ;;  %v9264_v58 = vcombine.low %v9213_v0, %v9245_v30  ;;  %v9265_v40 = vcombine.high %v9213_v0, %v9245_v30 }
0x1095   :  { %v9270_v48 = vpack.c.bf16 %v9262_v18, %v9262_v18  ;;  %v9271_v35 = vpack.c.bf16 %v9263_v46, %v9263_v46  ;;  %v9272_v34 = vpack.c.bf16 %v9264_v58, %v9264_v58 }
0x1097   :  { %12889 = vmatmul.mubr.msk.bf16.vlgmr.msra.gmra.mxu0 %vm2804_vm3, %v9270_v48  ;;  %12895 = vmatmul.mubr.msk.bf16.vlgmr.msra.gmra.mxu1 %vm2804_vm3, %v9271_v35 }
0x1098   :  { %12899 = vmatpush3.bf16.xpose.msra.mxu0 %v14135_v6  ;;  %12905 = vmatpush3.bf16.xpose.msra.mxu1 %v14138_v2  ;;  %v9273_v6 = vpack.c.bf16 %v9265_v40, %v9265_v40  ;;  %v9222_v2 = vrot.slane %v9214_v63, %v13594_v28 }
0x1099   :  { %12900 = vmatprep.mubr.msk.bf16.mxu0 %vm13301_vm1, %v15910_v50  ;;  %12906 = vmatprep.mubr.msk.bf16.mxu1 %vm13301_vm1, %v15910_v50 }
0x109a   :  { %12910 = vmatprep.subr.bf16.mxu0 %v15910_v50  ;;  %12916 = vmatprep.subr.bf16.mxu1 %v15910_v50  ;;  %v9266_v26 = vcombine.low %v9222_v2, %v9254_v36  ;;  %v9267_v12 = vcombine.high %v9222_v2, %v9254_v36 }
0x109c   :  { %v9274_v25 = vpack.c.bf16 %v9266_v26, %v9266_v26 }
0x109f   :  { %12901 = vmatmul.mubr.msk.bf16.vlgmr.msra.gmra.mxu0 %vm2804_vm3, %v9272_v34  ;;  %12907 = vmatmul.mubr.msk.bf16.vlgmr.msra.gmra.mxu1 %vm2804_vm3, %v9273_v6 }
0x10a0   :  { %12911 = vmatpush3.bf16.xpose.msra.mxu0 %v14162_v7  ;;  %12917 = vmatpush3.bf16.xpose.msra.mxu1 %v14166_v59  ;;  %v9275_v7 = vpack.c.bf16 %v9267_v12, %v9267_v12  ;;  %v9229_v59 = vrot.slane %v9215_v49, %v13594_v28 }
0x10a1   :  { %12912 = vmatprep.mubr.msk.bf16.mxu0 %vm13301_vm1, %v15910_v50  ;;  %12918 = vmatprep.mubr.msk.bf16.mxu1 %vm13301_vm1, %v15910_v50 }
0x10a2   :  { %12922 = vmatprep.subr.bf16.mxu0 %v15910_v50  ;;  %12928 = vmatprep.subr.bf16.mxu1 %v15910_v50  ;;  %v9268_v8 = vcombine.low %v9229_v59, %v9261_v20  ;;  %v9269_v23 = vcombine.high %v9229_v59, %v9261_v20 }
0x10a4   :  { %v9276_v1 = vpack.c.bf16 %v9268_v8, %v9268_v8  ;;  %v9277_v3 = vpack.c.bf16 %v9269_v23, %v9269_v23 }
0x10a7   :  { %12913 = vmatmul.mubr.msk.bf16.vlgmr.msra.gmra.mxu0 %vm2804_vm3, %v9274_v25  ;;  %12919 = vmatmul.mubr.msk.bf16.vlgmr.msra.gmra.mxu1 %vm2804_vm3, %v9275_v7 }
0x10a8   :  { %12923 = vmatpush3.bf16.xpose.msra.mxu0 %v14186_v32  ;;  %12929 = vmatpush3.bf16.xpose.msra.mxu1 %v15911_v43  ;;  %v8155_v32 = vsel %vm1947_vm2, %v15160_v19, 0  ;;  %v8247_v19 = vsel %vm1947_vm2, %v15191_v55, 0 }
0x10a9   :  { %12924 = vmatprep.mubr.msk.bf16.mxu0 %vm13301_vm1, %v15910_v50  ;;  %12930 = vmatprep.mubr.msk.bf16.mxu1 %vm13301_vm1, %v15910_v50 }
0x10aa   :  { %12934 = vmatprep.subr.bf16.mxu0 %v15910_v50  ;;  %12940 = vmatprep.subr.bf16.mxu1 %v15910_v50 }
0x10af   :  { %12925 = vmatmul.mubr.msk.bf16.vlgmr.msra.gmra.mxu0 %vm2804_vm3, %v9276_v1  ;;  %12931 = vmatmul.mubr.msk.bf16.vlgmr.msra.gmra.mxu1 %vm2804_vm3, %v9277_v3 }
0x10b0   :  { %12935 = vmatpush3.bf16.xpose.msra.mxu0 %v8155_v32  ;;  %12941 = vmatpush3.bf16.xpose.msra.mxu1 %v8201_v38 }
0x10b1   :  { %12936 = vmatprep.mubr.msk.bf16.mxu0 %vm13301_vm1, %v15910_v50  ;;  %12942 = vmatprep.mubr.msk.bf16.mxu1 %vm13301_vm1, %v15910_v50 }
0x10b2   :  { %12946 = vmatprep.subr.bf16.mxu0 %v15910_v50  ;;  %12952 = vmatprep.subr.bf16.mxu1 %v15910_v50 }
0x10b7   :  { %12937 = vmatmul.mubr.msk.bf16.vlgmr.msra.gmra.mxu0 %vm1947_vm2, %v14982_v52  ;;  %12943 = vmatmul.mubr.msk.bf16.vlgmr.msra.gmra.mxu1 %vm1947_vm2, %v14984_v17  ;;  %v8339_v52 = vsel %vm1947_vm2, %v15213_v24, 0  ;;  %v8382_v17 = vsel %vm1947_vm2, %v15217_v29, 0 }
0x10b8   :  { %12947 = vmatpush3.bf16.xpose.msra.mxu0 %v8247_v19  ;;  %12953 = vmatpush3.bf16.xpose.msra.mxu1 %v8293_v39 }
0x10b9   :  { %12948 = vmatprep.mubr.msk.bf16.mxu0 %vm13301_vm1, %v15910_v50  ;;  %12954 = vmatprep.mubr.msk.bf16.mxu1 %vm13301_vm1, %v15910_v50 }
0x10ba   :  { %12958 = vmatprep.subr.bf16.mxu0 %v15910_v50  ;;  %12964 = vmatprep.subr.bf16.mxu1 %v15910_v50 }
0x10bf   :  { %12949 = vmatmul.mubr.msk.bf16.vlgmr.msra.gmra.mxu0 %vm1947_vm2, %v15053_v14  ;;  %12955 = vmatmul.mubr.msk.bf16.vlgmr.msra.gmra.mxu1 %vm1947_vm2, %v15055_v11  ;;  %v8425_v14 = vsel %vm1947_vm2, %v15229_v47, 0  ;;  %v8468_v11 = vsel %vm1947_vm2, %v15231_v13, 0 }
0x10c0   :  { %12959 = vmatpush3.bf16.xpose.msra.mxu0 %v8339_v52  ;;  %12965 = vmatpush3.bf16.xpose.msra.mxu1 %v8382_v17 }
0x10c1   :  { %12960 = vmatprep.mubr.msk.bf16.mxu0 %vm13301_vm1, %v15910_v50  ;;  %12966 = vmatprep.mubr.msk.bf16.mxu1 %vm13301_vm1, %v15910_v50 }
0x10c2   :  { %12970 = vmatprep.subr.bf16.mxu0 %v15910_v50  ;;  %12976 = vmatprep.subr.bf16.mxu1 %v15910_v50 }
0x10c7   :  { %12961 = vmatmul.mubr.msk.bf16.vlgmr.msra.gmra.mxu0 %vm1947_vm2, %v15085_v57  ;;  %12967 = vmatmul.mubr.msk.bf16.vlgmr.msra.gmra.mxu1 %vm1947_vm2, %v15087_v41 }
0x10c8   :  { %12971 = vmatpush3.bf16.xpose.msra.mxu0 %v8425_v14  ;;  %12977 = vmatpush3.bf16.xpose.msra.mxu1 %v8468_v11 }
0x10c9   :  { %12972 = vmatprep.mubr.msk.bf16.mxu0 %vm13301_vm1, %v15910_v50  ;;  %12978 = vmatprep.mubr.msk.bf16.mxu1 %vm13301_vm1, %v15910_v50 }
0x10ca   :  { %12982 = vmatprep.subr.bf16.mxu0 %v15910_v50  ;;  %12988 = vmatprep.subr.bf16.mxu1 %v15910_v50 }
0x10cf   :  { %12973 = vmatmul.mubr.msk.bf16.vlgmr.msra.gmra.mxu0 %vm1947_vm2, %v15099_v53  ;;  %12979 = vmatmul.mubr.msk.bf16.vlgmr.msra.gmra.mxu1 %vm1947_vm2, %v15101_v22 }
0x10d0   :  { %12984 = vmatprep.mubr.msk.bf16.mxu0 %vm13301_vm1, %v15910_v50  ;;  %12990 = vmatprep.mubr.msk.bf16.mxu1 %vm13301_vm1, %v15910_v50 }
0x110d   :  { %v8691_v57 = vpop.f32.mrf.mxu0  ;;  %v8734_v41 = vpop.f32.mrf.mxu1 }
0x110f   :  { %v12842_v55 = vpop.f32.mrf.mxu0  ;;  %v12848_v27 = vpop.f32.mrf.mxu1 }
0x1111   :  { %v8694_v24 = vpop.f32.mrf.mxu0  ;;  %v8737_v29 = vpop.f32.mrf.mxu1 }
0x1113   :  { %v12843_v47 = vpop.f32.mrf.mxu0  ;;  %v12849_v13 = vpop.f32.mrf.mxu1 }
0x1115   :  { %v8777_v44 = vpop.f32.mrf.mxu0  ;;  %v8820_v4 = vpop.f32.mrf.mxu1 }
0x1116   :  { %v8998_v53 = vcombine.low %v8691_v57, %v8777_v44  ;;  %v8999_v62 = vcombine.high %v8691_v57, %v8777_v44  ;;  %v9014_v61 = vcombine.low %v8734_v41, %v8820_v4  ;;  %v9015_v22 = vcombine.high %v8734_v41, %v8820_v4 }
0x1117   :  { %v12854_v33 = vpop.f32.mrf.mxu0  ;;  %v12860_v16 = vpop.f32.mrf.mxu1 }
0x1118   :  { %v9006_v5 = vrot.slane %v8998_v53, %v13589_v21  ;;  %v9013_v60 = vrot.slane %v8999_v62, %v13589_v21  ;;  %v9022_v15 = vrot.slane %v9014_v61, %v13589_v21  ;;  %v9029_v54 = vrot.slane %v9015_v22, %v13589_v21 }
0x1119   :  { %v8780_v18 = vpop.f32.mrf.mxu0  ;;  %v8823_v46 = vpop.f32.mrf.mxu1 }
0x111a   :  { %v9062_v31 = vcombine.low %v9006_v5, %v9022_v15  ;;  %v9063_v45 = vcombine.high %v9006_v5, %v9022_v15  ;;  %v9078_v30 = vcombine.low %v9013_v60, %v9029_v54  ;;  %v9079_v48 = vcombine.high %v9013_v60, %v9029_v54 }
0x111b   :  { %v12855_v35 = vpop.f32.mrf.mxu0  ;;  %v12861_v56 = vpop.f32.mrf.mxu1 }
0x111c   :  { %v9070_v17 = vrot.slane %v9062_v31, %v13594_v28  ;;  %v15419_v14 = vrot.slane %v9063_v45, %v13594_v28  ;;  %v15432_v27 = vrot.slane %v9078_v30, %v13594_v28  ;;  %v15435_v24 = vrot.slane %v9079_v48, %v13594_v28 }
0x111d   :  { %v8863_v37 = vpop.f32.mrf.mxu0  ;;  %v8906_v0 = vpop.f32.mrf.mxu1 }
0x111f   :  { %v12866_v10 = vpop.f32.mrf.mxu0  ;;  %v12872_v58 = vpop.f32.mrf.mxu1 }
0x1121   :  { %v8866_v40 = vpop.f32.mrf.mxu0  ;;  %v8909_v63 = vpop.f32.mrf.mxu1 }
0x1123   :  { %v12867_v36 = vpop.f32.mrf.mxu0  ;;  %v12873_v34 = vpop.f32.mrf.mxu1 }
0x1125   :  { %v8949_v6 = vpop.f32.mrf.mxu0  ;;  %v8992_v2 = vpop.f32.mrf.mxu1 }
0x1126   :  { %v9030_v51 = vcombine.low %v8863_v37, %v8949_v6  ;;  %v9031_v26 = vcombine.high %v8863_v37, %v8949_v6  ;;  %v9046_v12 = vcombine.low %v8906_v0, %v8992_v2  ;;  %v9047_v49 = vcombine.high %v8906_v0, %v8992_v2 }
0x1127   :  { %v12878_v20 = vpop.f32.mrf.mxu0  ;;  %v12884_v25 = vpop.f32.mrf.mxu1 }
0x1128   :  { %v9038_v7 = vrot.slane %v9030_v51, %v13589_v21  ;;  %v9045_v59 = vrot.slane %v9031_v26, %v13589_v21  ;;  %v9054_v43 = vrot.slane %v9046_v12, %v13589_v21  ;;  %v9061_v8 = vrot.slane %v9047_v49, %v13589_v21 }
0x1129   :  { %v8952_v23 = vpop.f32.mrf.mxu0  ;;  %v8995_v1 = vpop.f32.mrf.mxu1 }
0x112a   :  { %v9094_v3 = vcombine.low %v9038_v7, %v9054_v43  ;;  %v9095_v32 = vcombine.high %v9038_v7, %v9054_v43  ;;  %v9110_v38 = vcombine.low %v9045_v59, %v9061_v8  ;;  %v9111_v19 = vcombine.high %v9045_v59, %v9061_v8 }
0x112b   :  { %v12879_v39 = vpop.f32.mrf.mxu0  ;;  %v12885_v52 = vpop.f32.mrf.mxu1 }
0x112c   :  { %v9102_v11 = vrot.slane %v9094_v3, %v13594_v28  ;;  %v15423_v57 = vrot.slane %v9095_v32, %v13594_v28  ;;  %v15426_v41 = vrot.slane %v9110_v38, %v13594_v28  ;;  %v15429_v55 = vrot.slane %v9111_v19, %v13594_v28 }
0x112e   :  { %v9126_v29 = vcombine.low %v9070_v17, %v9102_v11  ;;  %v9127_v47 = vcombine.high %v9070_v17, %v9102_v11  ;;  %v9128_v13 = vcombine.low %v15419_v14, %v15423_v57  ;;  %v9129_v44 = vcombine.high %v15419_v14, %v15423_v57 }
0x112f   :  { %v9130_v4 = vcombine.low %v15432_v27, %v15426_v41  ;;  %v9131_v53 = vcombine.high %v15432_v27, %v15426_v41  ;;  %v9132_v62 = vcombine.low %v15435_v24, %v15429_v55  ;;  %v9133_v61 = vcombine.high %v15435_v24, %v15429_v55 }
0x1157   :  { %v9315_v22 = vpop.f32.mrf.mxu0  ;;  %v9358_v33 = vpop.f32.mrf.mxu1 }
0x1158   :  { %9622 = vxpose.xlu1.b32.start.end [1/1] (short) (narrow) %v9315_v22, 8  ;;  %9654 = vxpose.xlu0.b32.start.end [1/1] (short) (narrow) %v9358_v33, 8 }
0x1159   :  { %v12890_v16 = vpop.f32.mrf.mxu0  ;;  %v12896_v5 = vpop.f32.mrf.mxu1 }
0x115b   :  { %v9318_v60 = vpop.f32.mrf.mxu0  ;;  %v9361_v15 = vpop.f32.mrf.mxu1 }
0x115d   :  { %v12891_v54 = vpop.f32.mrf.mxu0  ;;  %v12897_v18 = vpop.f32.mrf.mxu1 }
0x115f   :  { %v9401_v46 = vpop.f32.mrf.mxu0  ;;  %v9444_v31 = vpop.f32.mrf.mxu1 }
0x1160   :  { %9686 = vxpose.xlu0.b32.start.end [1/1] (short) (narrow) %v9401_v46, 8 }
0x1161   :  { %v12902_v45 = vpop.f32.mrf.mxu0  ;;  %v12908_v30 = vpop.f32.mrf.mxu1 }
0x1163   :  { %v9404_v48 = vpop.f32.mrf.mxu0  ;;  %v9447_v35 = vpop.f32.mrf.mxu1 }
0x1164   :  { %9718 = vxpose.xlu0.b32.start.end [1/1] (short) (narrow) %v9444_v31, 8  ;;  %v6891_v31 = vpop.permute.xlu1 %6890 }
0x1165   :  { %v12903_v56 = vpop.f32.mrf.mxu0  ;;  %v12909_v37 = vpop.f32.mrf.mxu1 }
0x1167   :  { %v9487_v0 = vpop.f32.mrf.mxu0  ;;  %v9530_v10 = vpop.f32.mrf.mxu1 }
0x1168   :  { %9750 = vxpose.xlu0.b32.start.end [1/1] (short) (narrow) %v9487_v0, 8  ;;  %9782 = vxpose.xlu1.b32.start.end [1/1] (short) (narrow) %v9530_v10, 8 }
0x1169   :  { %v12914_v58 = vpop.f32.mrf.mxu0  ;;  %v12920_v40 = vpop.f32.mrf.mxu1 }
0x116a   :  { %v15480_v58 = vpop.permute.xlu1 %6898  ;;  %v15482_v40 = vpop.permute.xlu0 %6894 }
0x116b   :  { %v9490_v63 = vpop.f32.mrf.mxu0  ;;  %v9533_v36 = vpop.f32.mrf.mxu1 }
0x116d   :  { %v12915_v34 = vpop.f32.mrf.mxu0  ;;  %v12921_v6 = vpop.f32.mrf.mxu1 }
0x116f   :  { %v9573_v2 = vpop.f32.mrf.mxu0  ;;  %v9616_v51 = vpop.f32.mrf.mxu1 }
0x1170   :  { %9814 = vxpose.xlu0.b32.start.end [1/1] (short) (narrow) %v9573_v2, 8  ;;  %9846 = vxpose.xlu1.b32.start.end [1/1] (short) (narrow) %v9616_v51, 8 }
0x1171   :  { %v12926_v26 = vpop.f32.mrf.mxu0  ;;  %v12932_v12 = vpop.f32.mrf.mxu1 }
0x1173   :  { %v9576_v49 = vpop.f32.mrf.mxu0  ;;  %v9619_v20 = vpop.f32.mrf.mxu1 }
0x1175   :  { %v12927_v25 = vpop.f32.mrf.mxu0  ;;  %v12933_v7 = vpop.f32.mrf.mxu1 }
0x1177   :  { %v10440_v59 = vpop.f32.mrf.mxu0  ;;  %v10480_v43 = vpop.f32.mrf.mxu1 }
0x1178   :  { %v15449_v8 = vadd.f32 %v10440_v59, %v9126_v29  ;;  %v15451_v23 = vadd.f32 %v10480_v43, %v9127_v47 }
0x1179   :  { %v12938_v1 = vpop.f32.mrf.mxu0  ;;  %v12944_v3 = vpop.f32.mrf.mxu1 }
0x117b   :  { %v10443_v32 = vpop.f32.mrf.mxu0  ;;  %v10483_v38 = vpop.f32.mrf.mxu1 }
0x117d   :  { %v12939_v19 = vpop.f32.mrf.mxu0  ;;  %v12945_v39 = vpop.f32.mrf.mxu1 }
0x117f   :  { %v10520_v52 = vpop.f32.mrf.mxu0  ;;  %v10560_v17 = vpop.f32.mrf.mxu1 }
0x1180   :  { %v15453_v14 = vadd.f32 %v10520_v52, %v9128_v13  ;;  %v15455_v11 = vadd.f32 %v10560_v17, %v9129_v44 }
0x1181   :  { %v12950_v57 = vpop.f32.mrf.mxu0  ;;  %v12956_v22 = vpop.f32.mrf.mxu1 }
0x1183   :  { %v10523_v33 = vpop.f32.mrf.mxu0  ;;  %v10563_v16 = vpop.f32.mrf.mxu1 }
0x1185   :  { %v12951_v29 = vpop.f32.mrf.mxu0  ;;  %v12957_v5 = vpop.f32.mrf.mxu1 }
0x1187   :  { %v10600_v47 = vpop.f32.mrf.mxu0  ;;  %v10640_v60 = vpop.f32.mrf.mxu1 }
0x1188   :  { %v15460_v15 = vadd.f32 %v10600_v47, %v9130_v4  ;;  %v15465_v13 = vadd.f32 %v10640_v60, %v9131_v53 }
0x1189   :  { %v12962_v44 = vpop.f32.mrf.mxu0  ;;  %v12968_v54 = vpop.f32.mrf.mxu1 }
0x118b   :  { %v10603_v18 = vpop.f32.mrf.mxu0  ;;  %v10643_v46 = vpop.f32.mrf.mxu1 }
0x118d   :  { %v12963_v45 = vpop.f32.mrf.mxu0  ;;  %v12969_v30 = vpop.f32.mrf.mxu1 }
0x118e   :  { %6906 = vrot.lane.b32.xlu1 %v6891_v31, %s13296_s28 }
0x118f   :  { %v10680_v48 = vpop.f32.mrf.mxu0  ;;  %v10720_v35 = vpop.f32.mrf.mxu1 }
0x1190   :  { %v15471_v4 = vadd.f32 %v10680_v48, %v9132_v62  ;;  %v15476_v41 = vadd.f32 %v10720_v35, %v9133_v61  ;;  %v15484_v62 = vpop.permute.xlu1 %6892 }
0x1191   :  { %v12974_v27 = vpop.f32.mrf.mxu0  ;;  %v12980_v53 = vpop.f32.mrf.mxu1 }
0x1193   :  { %v10683_v56 = vpop.f32.mrf.mxu0  ;;  %v10723_v37 = vpop.f32.mrf.mxu1 }
0x1194   :  { %v15486_v36 = vpop.permute.xlu1 %6896 }
0x1195   :  { %v12975_v0 = vpop.f32.mrf.mxu0  ;;  %v12981_v10 = vpop.f32.mrf.mxu1 }
0x1198   :  { %v15488_v24 = vpop.permute.xlu1 %6900 }
0x1199   :  { %6902 = vrot.lane.b32.xlu0 %v15158_v42, %s13296_s28 }
0x11d4   :  { %v9670_v63 = vpop.trf.xlu0  ;;  %v9638_v61 = vpop.trf.xlu1 }
0x11dc   :  { %v9702_v55 = vpop.trf.xlu0 }
0x11dd   :  { %v9878_v51 = vcombine.low %v9638_v61, %v9702_v55  ;;  %v9879_v1 = vcombine.high %v9638_v61, %v9702_v55 }
0x11df   :  { %v9886_v42 = vrot.slane %v9878_v51, %v13589_v21  ;;  %v9893_v22 = vrot.slane %v9879_v1, %v13589_v21 }
0x11e0   :  { %v9734_v34 = vpop.trf.xlu0 }
0x11e1   :  { %v9894_v26 = vcombine.low %v9670_v63, %v9734_v34  ;;  %v9895_v3 = vcombine.high %v9670_v63, %v9734_v34 }
0x11e3   :  { %v9902_v12 = vrot.slane %v9894_v26, %v13589_v21  ;;  %v9909_v33 = vrot.slane %v9895_v3, %v13589_v21 }
0x11e4   :  { %v9766_v6 = vpop.trf.xlu0  ;;  %v9798_v2 = vpop.trf.xlu1 }
0x11e5   :  { %v9942_v32 = vcombine.low %v9886_v42, %v9902_v12  ;;  %v9943_v16 = vcombine.high %v9886_v42, %v9902_v12  ;;  %v9958_v46 = vcombine.low %v9893_v22, %v9909_v33  ;;  %v9959_v35 = vcombine.high %v9893_v22, %v9909_v33 }
0x11e7   :  { %v9950_v29 = vrot.slane %v9942_v32, %v13594_v28  ;;  %v9957_v18 = vrot.slane %v9943_v16, %v13594_v28  ;;  %v9966_v27 = vrot.slane %v9958_v46, %v13594_v28  ;;  %v9973_v0 = vrot.slane %v9959_v35, %v13594_v28 }
0x11ec   :  { %v9830_v49 = vpop.trf.xlu0  ;;  %v9862_v20 = vpop.trf.xlu1 }
0x11ed   :  { %v9910_v25 = vcombine.low %v9766_v6, %v9830_v49  ;;  %v9911_v7 = vcombine.high %v9766_v6, %v9830_v49  ;;  %v9926_v59 = vcombine.low %v9798_v2, %v9862_v20  ;;  %v9927_v43 = vcombine.high %v9798_v2, %v9862_v20 }
0x11ef   :  { %v9918_v38 = vrot.slane %v9910_v25, %v13589_v21  ;;  %v9934_v19 = vrot.slane %v9926_v59, %v13589_v21  ;;  %v9925_v39 = vrot.slane %v9911_v7, %v13589_v21  ;;  %v9941_v52 = vrot.slane %v9927_v43, %v13589_v21 }
0x11f1   :  { %v9974_v17 = vcombine.low %v9918_v38, %v9934_v19  ;;  %v9975_v57 = vcombine.high %v9918_v38, %v9934_v19  ;;  %v9990_v60 = vcombine.low %v9925_v39, %v9941_v52  ;;  %v9991_v31 = vcombine.high %v9925_v39, %v9941_v52 }
0x11f3   :  { %v9982_v5 = vrot.slane %v9974_v17, %v13594_v28  ;;  %v9989_v47 = vrot.slane %v9975_v57, %v13594_v28  ;;  %v9998_v45 = vrot.slane %v9990_v60, %v13594_v28  ;;  %v10005_v53 = vrot.slane %v9991_v31, %v13594_v28 }
0x11f5   :  { %v10006_v44 = vcombine.low %v9950_v29, %v9982_v5  ;;  %v10007_v54 = vcombine.high %v9950_v29, %v9982_v5  ;;  %v10009_v30 = vcombine.high %v9957_v18, %v9989_v47  ;;  %v10008_v48 = vcombine.low %v9957_v18, %v9989_v47 }
0x11f6   :  { %v10011_v56 = vcombine.high %v9966_v27, %v9998_v45  ;;  %v10010_v37 = vcombine.low %v9966_v27, %v9998_v45  ;;  %v10013_v10 = vcombine.high %v9973_v0, %v10005_v53  ;;  %v10012_v63 = vcombine.low %v9973_v0, %v10005_v53 }
0x11f7   :  { %10046 = vxpose.xlu1.b32.start.end [1/1] (short) (narrow) %v10007_v54, 8  ;;  %10014 = vxpose.xlu0.b32.start.end [1/1] (short) (narrow) %v10006_v44, 8 }
0x11fb   :  { %10110 = vxpose.xlu1.b32.start.end [1/1] (short) (narrow) %v10009_v30, 8  ;;  %10078 = vxpose.xlu0.b32.start.end [1/1] (short) (narrow) %v10008_v48, 8 }
0x11ff   :  { %10174 = vxpose.xlu1.b32.start.end [1/1] (short) (narrow) %v10011_v56, 8  ;;  %10142 = vxpose.xlu0.b32.start.end [1/1] (short) (narrow) %v10010_v37, 8 }
0x1200   :  { %v15506_v55 = vpop.permute.xlu1 %6906 }
0x1203   :  { %10238 = vxpose.xlu1.b32.start.end [1/1] (short) (narrow) %v10013_v10, 8  ;;  %10206 = vxpose.xlu0.b32.start.end [1/1] (short) (narrow) %v10012_v63, 8  ;;  %v15912_v10 = vld [vmem:[#allocation12_spill] sm:$0xff] }
0x120b   :  { %v15508_v61 = vpop.permute.xlu0 %6902 }
0x1273   :  { %v10030_v34 = vpop.trf.xlu0  ;;  %v10062_v6 = vpop.trf.xlu1 }
0x1277   :  { %v10094_v2 = vpop.trf.xlu0  ;;  %v10126_v51 = vpop.trf.xlu1 }
0x1278   :  { %v10270_v26 = vcombine.low %v10030_v34, %v10094_v2  ;;  %v10286_v42 = vcombine.low %v10062_v6, %v10126_v51  ;;  %v10271_v7 = vcombine.high %v10030_v34, %v10094_v2  ;;  %v10287_v59 = vcombine.high %v10062_v6, %v10126_v51 }
0x127a   :  { %v10278_v20 = vrot.slane %v10270_v26, %v13589_v21  ;;  %v10294_v25 = vrot.slane %v10286_v42, %v13589_v21  ;;  %v10285_v16 = vrot.slane %v10271_v7, %v13589_v21  ;;  %v10301_v29 = vrot.slane %v10287_v59, %v13589_v21 }
0x127b   :  { %v10158_v12 = vpop.trf.xlu0  ;;  %v10190_v49 = vpop.trf.xlu1 }
0x127c   :  { %v10334_v39 = vcombine.low %v10278_v20, %v10294_v25  ;;  %v10335_v52 = vcombine.high %v10278_v20, %v10294_v25  ;;  %v10350_v31 = vcombine.low %v10285_v16, %v10301_v29  ;;  %v10351_v26 = vcombine.high %v10285_v16, %v10301_v29 }
0x127e   :  { %v10342_v44 = vrot.slane %v10334_v39, %v13594_v28  ;;  %v10349_v54 = vrot.slane %v10335_v52, %v13594_v28  ;;  %v10358_v0 = vrot.slane %v10350_v31, %v13594_v28  ;;  %v10365_v7 = vrot.slane %v10351_v26, %v13594_v28 }
0x127f   :  { %v10222_v43 = vpop.trf.xlu0  ;;  %v10254_v1 = vpop.trf.xlu1 }
0x1280   :  { %v10302_v3 = vcombine.low %v10158_v12, %v10222_v43  ;;  %v10303_v32 = vcombine.high %v10158_v12, %v10222_v43  ;;  %v10318_v38 = vcombine.low %v10190_v49, %v10254_v1  ;;  %v10319_v19 = vcombine.high %v10190_v49, %v10254_v1  ;;  %v15913_v43 = vld [vmem:[#allocation13_spill] sm:$0xff] }
0x1282   :  { %v10310_v17 = vrot.slane %v10302_v3, %v13589_v21  ;;  %v10317_v57 = vrot.slane %v10303_v32, %v13589_v21  ;;  %v10326_v22 = vrot.slane %v10318_v38, %v13589_v21  ;;  %v10333_v33 = vrot.slane %v10319_v19, %v13589_v21 }
0x1284   :  { %v10366_v5 = vcombine.low %v10310_v17, %v10326_v22  ;;  %v10367_v47 = vcombine.high %v10310_v17, %v10326_v22  ;;  %v10382_v60 = vcombine.low %v10317_v57, %v10333_v33  ;;  %v10383_v51 = vcombine.high %v10317_v57, %v10333_v33 }
0x1286   :  { %v10374_v18 = vrot.slane %v10366_v5, %v13594_v28  ;;  %v10381_v46 = vrot.slane %v10367_v47, %v13594_v28  ;;  %v10390_v35 = vrot.slane %v10382_v60, %v13594_v28  ;;  %v10397_v12 = vrot.slane %v10383_v51, %v13594_v28 }
0x1288   :  { %v10400_v45 = vcombine.low %v10349_v54, %v10381_v46  ;;  %v10398_v30 = vcombine.low %v10342_v44, %v10374_v18  ;;  %v10399_v48 = vcombine.high %v10342_v44, %v10374_v18  ;;  %v10401_v37 = vcombine.high %v10349_v54, %v10381_v46 }
0x1289   :  { %v10403_v25 = vcombine.high %v10358_v0, %v10390_v35  ;;  %v10404_v3 = vcombine.low %v10365_v7, %v10397_v12  ;;  %v10405_v19 = vcombine.high %v10365_v7, %v10397_v12 }
0x128a   :  { %v10728_v27 = vadd.f32 %v15453_v14, %v10400_v45  ;;  %v10726_v53 = vadd.f32 %v15449_v8, %v10398_v30  ;;  %v10727_v56 = vadd.f32 %v15451_v23, %v10399_v48  ;;  %v10729_v23 = vadd.f32 %v15455_v11, %v10401_v37 }
0x128b   :  { %v10402_v14 = vcombine.low %v10358_v0, %v10390_v35  ;;  %v10731_v1 = vadd.f32 %v15465_v13, %v10403_v25  ;;  %v10733_v17 = vadd.f32 %v15476_v41, %v10405_v19 }
0x128c   :  { %v10736_v63 = vsel %vm4933_vm4, %v10728_v27, -1e+09  ;;  %v10734_v34 = vsel %vm4933_vm4, %v10726_v53, -1e+09  ;;  %v10735_v8 = vsel %vm4933_vm4, %v10727_v56, -1e+09 }
0x128d   :  { %v10748_v6 = vsel %vm1947_vm2, %v10736_v63, -inf  ;;  %v10742_v2 = vsel %vm1947_vm2, %v10734_v34, -inf  ;;  %v10745_v42 = vsel %vm1947_vm2, %v10735_v8, -inf  ;;  %v10737_v49 = vsel %vm4933_vm4, %v10729_v23, -1e+09 }
0x128e   :  { %10749 = vmax.xlane.f32.xlu0 %v10748_v6  ;;  %10743 = vmax.xlane.f32.xlu1 %v10742_v2  ;;  %v10730_v20 = vadd.f32 %v15460_v15, %v10402_v14  ;;  %v10751_v59 = vsel %vm1947_vm2, %v10737_v49, -inf  ;;  %v10739_v38 = vsel %vm4934_vm5, %v10731_v1, -1e+09  ;;  %v10732_v15 = vadd.f32 %v15471_v4, %v10404_v3 }
0x128f   :  { %v10757_v39 = vsel %vm1947_vm2, %v10739_v38, -inf  ;;  %v15560_v57 = vsel %vm4934_vm5, %v10733_v17, -1e+09 }
0x1290   :  { %v10738_v11 = vsel %vm4934_vm5, %v10730_v20, -1e+09  ;;  %v15553_v52 = vsel %vm4934_vm5, %v10732_v15, -1e+09  ;;  %v10763_v4 = vsel %vm1947_vm2, %v15560_v57, -inf }
0x1291   :  { %v10754_v32 = vsel %vm1947_vm2, %v10738_v11, -inf  ;;  %v10760_v13 = vsel %vm1947_vm2, %v15553_v52, -inf }
0x1292   :  { %10746 = vmax.xlane.f32.xlu1 %v10745_v42 }
0x1296   :  { %10752 = vmax.xlane.f32.xlu1 %v10751_v59 }
0x129a   :  { %10755 = vmax.xlane.f32.xlu1 %v10754_v32 }
0x129e   :  { %10758 = vmax.xlane.f32.xlu1 %v10757_v39 }
0x12a2   :  { %10761 = vmax.xlane.f32.xlu1 %v10760_v13 }
0x12a4   :  { %6910 = vrot.lane.b32.xlu0 %v15482_v40, %s13296_s28 }
0x12a6   :  { %10764 = vmax.xlane.f32.xlu1 %v10763_v4 }
0x12b7   :  { %6914 = vrot.lane.b32.xlu1 %v15480_v58, %s13296_s28 }
0x1317   :  { %v10750_v22 = vpop.xlane.xlu0 %10749  ;;  %v10744_v41 = vpop.xlane.xlu1 %10743 }
0x1318   :  { %v10768_v33 = vsub.f32 %v10736_v63, %v10750_v22  ;;  %v10766_v16 = vsub.f32 %v10734_v34, %v10744_v41 }
0x131a   :  { %v10778_v29 = vmul.f32 1.442695, %v10768_v33  ;;  %v10774_v5 = vmul.f32 1.442695, %v10766_v16 }
0x131b   :  { %v10747_v47 = vpop.xlane.xlu1 %10746  ;;  %v6911_v34 = vpop.permute.xlu0 %6910 }
0x131c   :  { %13184 = vpow2.f32 %v10778_v29  ;;  %v10767_v60 = vsub.f32 %v10735_v8, %v10747_v47  ;;  %v6926_v23 = vcombine.low %v15508_v61, %v6911_v34  ;;  %v6927_v26 = vcombine.high %v15508_v61, %v6911_v34 }
0x131d   :  { %13186 = vpow2.f32 %v10774_v5 }
0x131e   :  { %v10776_v44 = vmul.f32 1.442695, %v10767_v60  ;;  %v6934_v59 = vrot.slane %v6926_v23, %v13589_v21 }
0x131f   :  { %v10753_v54 = vpop.xlane.xlu1 %10752 }
0x1320   :  { %13188 = vpow2.f32 %v10776_v44  ;;  %v10769_v40 = vsub.f32 %v10737_v49, %v10753_v54 }
0x1322   :  { %v10780_v18 = vmul.f32 1.442695, %v10769_v40 }
0x1323   :  { %v10756_v46 = vpop.xlane.xlu1 %10755 }
0x1324   :  { %13190 = vpow2.f32 %v10780_v18  ;;  %v10770_v31 = vsub.f32 %v10738_v11, %v10756_v46  ;;  %v6941_v11 = vrot.slane %v6927_v26, %v13589_v21 }
0x1326   :  { %v10782_v45 = vmul.f32 1.442695, %v10770_v31 }
0x1327   :  { %v10759_v58 = vpop.xlane.xlu1 %10758 }
0x1328   :  { %13192 = vpow2.f32 %v10782_v45  ;;  %v10771_v30 = vsub.f32 %v10739_v38, %v10759_v58 }
0x1329   :  { %v13185_v48 = vpop.eup %13184 }
0x132a   :  { %v13187_v35 = vpop.eup %13186  ;;  %v10784_v27 = vmul.f32 1.442695, %v10771_v30  ;;  %v15576_v63 = vmul.f32 %v13185_v48, %v15912_v10 }
0x132b   :  { %v15568_v53 = vpop.xlane.xlu1 %10761  ;;  %v15571_v56 = vmul.f32 %v13187_v35, %v15912_v10 }
0x132c   :  { %13194 = vpow2.f32 %v10784_v27  ;;  %v10804_v14 = vsel %vm1947_vm2, %v15576_v63, 0.0 }
0x132d   :  { %v13189_v37 = vpop.eup %13188  ;;  %v10798_v0 = vsel %vm1947_vm2, %v15571_v56, 0.0 }
0x132e   :  { %10799 = vadd.xlane.f32.xlu0 %v10798_v0  ;;  %v15579_v6 = vmul.f32 %v13189_v37, %v15912_v10 }
0x132f   :  { %v15581_v2 = vpop.xlane.xlu1 %10764 }
0x1330   :  { %v10801_v51 = vsel %vm1947_vm2, %v15579_v6, 0.0 }
0x1331   :  { %v13191_v8 = vpop.eup %13190  ;;  %10802 = vadd.xlane.f32.xlu1 %v10801_v51 }
0x1332   :  { %10805 = vadd.xlane.f32.xlu0 %v10804_v14  ;;  %v15590_v42 = vmul.f32 %v13191_v8, %v15912_v10  ;;  %v10772_v14 = vsub.f32 %v15553_v52, %v15568_v53 }
0x1333   :  { %v6915_v12 = vpop.permute.xlu1 %6914 }
0x1334   :  { %v6942_v49 = vcombine.low %v15506_v55, %v6915_v12  ;;  %v6943_v20 = vcombine.high %v15506_v55, %v6915_v12  ;;  %v10807_v25 = vsel %vm1947_vm2, %v15590_v42, 0.0  ;;  %v10786_v12 = vmul.f32 1.442695, %v10772_v14 }
0x1335   :  { %v13193_v7 = vpop.eup %13192  ;;  %10808 = vadd.xlane.f32.xlu1 %v10807_v25 }
0x1336   :  { %v6950_v61 = vrot.slane %v6942_v49, %v13589_v21  ;;  %v6957_v1 = vrot.slane %v6943_v20, %v13589_v21  ;;  %v15601_v10 = vmul.f32 %v13193_v7, %v15913_v43 }
0x1338   :  { %v6958_v3 = vcombine.low %v6934_v59, %v6950_v61  ;;  %v6959_v32 = vcombine.high %v6934_v59, %v6950_v61  ;;  %v6974_v38 = vcombine.low %v6941_v11, %v6957_v1  ;;  %v6975_v55 = vcombine.high %v6941_v11, %v6957_v1 }
0x1339   :  { %v13195_v15 = vpop.eup %13194  ;;  %v10810_v19 = vsel %vm1947_vm2, %v15601_v10, 0.0 }
0x133a   :  { %v6966_v39 = vrot.slane %v6958_v3, %v13594_v28  ;;  %v6973_v17 = vrot.slane %v6959_v32, %v13594_v28  ;;  %v6982_v13 = vrot.slane %v6974_v38, %v13594_v28  ;;  %v6989_v4 = vrot.slane %v6975_v55, %v13594_v28  ;;  %10811 = vadd.xlane.f32.xlu0 %v10810_v19 }
0x133b   :  { %v15610_v22 = vmul.f32 %v13195_v15, %v15913_v43 }
0x133c   :  { %v7062_v41 = vcombine.low %v6966_v39, %v6973_v17  ;;  %v12037_v33 = vcombine.high %v6966_v39, %v6973_v17  ;;  %v7078_v16 = vcombine.low %v6982_v13, %v6989_v4  ;;  %v12038_v29 = vcombine.high %v6982_v13, %v6989_v4 }
0x133d   :  { %v10813_v5 = vsel %vm1947_vm2, %v15610_v22, 0.0 }
0x133e   :  { %v7069_v47 = vrot.slane %v7062_v41, %v13589_v21  ;;  %v7077_v60 = vrot.slane %v12037_v33, %v13589_v21  ;;  %v7085_v44 = vrot.slane %v7078_v16, %v13589_v21  ;;  %v7093_v54 = vrot.slane %v12038_v29, %v13589_v21  ;;  %10814 = vadd.xlane.f32.xlu0 %v10813_v5 }
0x1340   :  { %v7094_v40 = vcombine.low %v7069_v47, %v7077_v60  ;;  %v7110_v18 = vcombine.low %v7085_v44, %v7093_v54  ;;  %v7095_v46 = vcombine.high %v7069_v47, %v7077_v60  ;;  %v7111_v31 = vcombine.high %v7085_v44, %v7093_v54 }
0x1342   :  { %v7102_v45 = vrot.slane %v7094_v40, %v13594_v28  ;;  %v7118_v58 = vrot.slane %v7110_v18, %v13594_v28  ;;  %v7109_v30 = vrot.slane %v7095_v46, %v13594_v28  ;;  %v7125_v48 = vrot.slane %v7111_v31, %v13594_v28 }
0x1344   :  { %v7126_v35 = vcombine.low %v7102_v45, %v7118_v58  ;;  %v7127_v27 = vcombine.high %v7102_v45, %v7118_v58  ;;  %v15622_v37 = vcombine.low %v7109_v30, %v7125_v48  ;;  %v15624_v0 = vcombine.high %v7109_v30, %v7125_v48 }
0x1346   :  { %6908 = vrot.lane.b32.xlu1 %v15484_v62, %s13296_s28  ;;  %v7198_v34 = vpack.c.bf16 %v7126_v35, %v7126_v35  ;;  %v7199_v51 = vpack.c.bf16 %v7127_v27, %v7127_v27  ;;  %v10773_v62 = vsub.f32 %v15560_v57, %v15581_v2  ;;  %v7200_v15 = vpack.c.bf16 %v15622_v37, %v15622_v37 }
0x1347   :  { %v7201_v4 = vpack.c.bf16 %v15624_v0, %v15624_v0 }
0x1348   :  { %v10858_v8 = vsel %vm5058_vm6, %v7198_v34, 0  ;;  %v10904_v23 = vsel %vm5058_vm6, %v7199_v51, 0  ;;  %v10788_v26 = vmul.f32 1.442695, %v10773_v62  ;;  %v10950_v54 = vsel %vm5058_vm6, %v7200_v15, 0 }
0x1349   :  { %12983 = vmatpush3.bf16.msra.mxu0 %v10858_v8  ;;  %12989 = vmatpush3.bf16.msra.mxu1 %v10904_v23  ;;  %v10996_v45 = vsel %vm5058_vm6, %v7201_v4, 0 }
0x134a   :  { %6912 = vrot.lane.b32.xlu1 %v15486_v36, %s13296_s28  ;;  %12994 = vmatprep.subr.bf16.mxu0 %v15910_v50  ;;  %13196 = vpow2.f32 %v10788_v26 }
0x134b   :  { %13000 = vmatprep.subr.bf16.mxu1 %v15910_v50  ;;  %13198 = vpow2.f32 %v10786_v12 }
0x134e   :  { %6916 = vrot.lane.b32.xlu1 %v15488_v24, %s13296_s28 }
0x1354   :  { %6904 = vrot.lane.b32.xlu0 %v15185_v9, %s13296_s28 }
0x1357   :  { %v13197_v36 = vpop.eup %13196 }
0x1358   :  { %v13199_v49 = vpop.eup %13198  ;;  %v15643_v20 = vmul.f32 %v13197_v36, %v15913_v43 }
0x1359   :  { %v15646_v24 = vmul.f32 %v13199_v49, %v15913_v43 }
0x135a   :  { %v10819_v9 = vsel %vm1947_vm2, %v15643_v20, 0.0 }
0x135b   :  { %v10816_v57 = vsel %vm1947_vm2, %v15646_v24, 0.0 }
0x1372   :  { %10820 = vadd.xlane.f32.xlu1 %v10819_v9 }
0x1373   :  { %10817 = vadd.xlane.f32.xlu0 %v10816_v57 }
0x13b7   :  { %v10800_v52 = vpop.xlane.xlu0 %10799 }
0x13b8   :  { %v10822_v53 = vadd.f32 1e-20, %v10800_v52 }
0x13ba   :  { %13200 = vrcp.f32 %v10822_v53  ;;  %v10803_v2 = vpop.xlane.xlu1 %10802 }
0x13bb   :  { %v10806_v25 = vpop.xlane.xlu0 %10805  ;;  %v10823_v7 = vadd.f32 1e-20, %v10803_v2 }
0x13bc   :  { %v10824_v59 = vadd.f32 1e-20, %v10806_v25 }
0x13bd   :  { %13202 = vrcp.f32 %v10823_v7 }
0x13be   :  { %13204 = vrcp.f32 %v10824_v59  ;;  %v10809_v11 = vpop.xlane.xlu1 %10808 }
0x13bf   :  { %v10825_v43 = vadd.f32 1e-20, %v10809_v11 }
0x13c1   :  { %13206 = vrcp.f32 %v10825_v43 }
0x13c2   :  { %v6909_v61 = vpop.permute.xlu1 %6908 }
0x13c3   :  { %v10812_v1 = vpop.xlane.xlu0 %10811 }
0x13c4   :  { %v10826_v17 = vadd.f32 1e-20, %v10812_v1 }
0x13c6   :  { %v6913_v3 = vpop.permute.xlu1 %6912  ;;  %13208 = vrcp.f32 %v10826_v17 }
0x13c7   :  { %v13201_v32 = vpop.eup %13200  ;;  %v10815_v38 = vpop.xlane.xlu0 %10814 }
0x13c8   :  { %v10838_v55 = vmul.f32 %v13201_v32, %v15571_v56  ;;  %v10827_v16 = vadd.f32 1e-20, %v10815_v38 }
0x13ca   :  { %v13203_v19 = vpop.eup %13202  ;;  %v10846_v39 = vpack.c.bf16 %v10838_v55, %v10838_v55  ;;  %v6917_v13 = vpop.permute.xlu1 %6916  ;;  %13210 = vrcp.f32 %v10827_v16 }
0x13cb   :  { %v13205_v41 = vpop.eup %13204  ;;  %v10839_v33 = vmul.f32 %v13203_v19, %v15579_v6  ;;  %v6905_v29 = vpop.permute.xlu0 %6904  ;;  %v7010_v5 = vcombine.low %v6909_v61, %v6917_v13  ;;  %v7011_v47 = vcombine.high %v6909_v61, %v6917_v13 }
0x13cc   :  { %v10840_v60 = vmul.f32 %v13205_v41, %v15576_v63  ;;  %v6994_v56 = vcombine.low %v6905_v29, %v6913_v3  ;;  %v6995_v44 = vcombine.high %v6905_v29, %v6913_v3  ;;  %12985 = vmatmul.mubr.msk.bf16.vlgmr.msra.gmra.mxu0 %vm1947_vm2, %v10846_v39 }
0x13cd   :  { %v10847_v40 = vpack.c.bf16 %v10839_v33, %v10839_v33  ;;  %v7018_v18 = vrot.slane %v7010_v5, %v13589_v21  ;;  %v7025_v46 = vrot.slane %v7011_v47, %v13589_v21  ;;  %12995 = vmatpush3.bf16.msra.mxu0 %v10950_v54  ;;  %12996 = vmatprep.mubr.msk.bf16.mxu0 %vm13301_vm1, %v15910_v50 }
0x13ce   :  { %v13207_v6 = vpop.eup %13206  ;;  %v7002_v31 = vrot.slane %v6994_v56, %v13589_v21  ;;  %v7009_v63 = vrot.slane %v6995_v44, %v13589_v21  ;;  %13006 = vmatprep.subr.bf16.mxu0 %v15910_v50  ;;  %v10848_v27 = vpack.c.bf16 %v10840_v60, %v10840_v60 }
0x13cf   :  { %12991 = vmatmul.mubr.msk.bf16.vlgmr.msra.gmra.mxu1 %vm1947_vm2, %v10847_v40  ;;  %v10841_v37 = vmul.f32 %v13207_v6, %v15590_v42 }
0x13d0   :  { %v7026_v58 = vcombine.low %v7002_v31, %v7018_v18  ;;  %v7027_v30 = vcombine.high %v7002_v31, %v7018_v18  ;;  %v7042_v48 = vcombine.low %v7009_v63, %v7025_v46  ;;  %v7043_v35 = vcombine.high %v7009_v63, %v7025_v46  ;;  %13001 = vmatpush3.bf16.msra.mxu1 %v10996_v45 }
0x13d1   :  { %13002 = vmatprep.mubr.msk.bf16.mxu1 %vm13301_vm1, %v15910_v50  ;;  %13012 = vmatprep.subr.bf16.mxu1 %v15910_v50  ;;  %v10849_v26 = vpack.c.bf16 %v10841_v37, %v10841_v37 }
0x13d2   :  { %v7034_v0 = vrot.slane %v7026_v58, %v13594_v28  ;;  %v7041_v34 = vrot.slane %v7027_v30, %v13594_v28  ;;  %v7050_v51 = vrot.slane %v7042_v48, %v13594_v28  ;;  %v7057_v8 = vrot.slane %v7043_v35, %v13594_v28 }
0x13d3   :  { %v13209_v59 = vpop.eup %13208 }
0x13d4   :  { %v7130_v23 = vcombine.low %v7034_v0, %v7041_v34  ;;  %v12039_v62 = vcombine.high %v7034_v0, %v7041_v34  ;;  %v7146_v14 = vcombine.low %v7050_v51, %v7057_v8  ;;  %12997 = vmatmul.mubr.msk.bf16.vlgmr.msra.gmra.mxu0 %vm1947_vm2, %v10848_v27  ;;  %v12040_v42 = vcombine.high %v7050_v51, %v7057_v8 }
0x13d5   :  { %13008 = vmatprep.mubr.msk.bf16.mxu0 %vm13301_vm1, %v15910_v50  ;;  %v10842_v55 = vmul.f32 %v13209_v59, %v15601_v10 }
0x13d6   :  { %v7137_v12 = vrot.slane %v7130_v23, %v13589_v21  ;;  %v7145_v36 = vrot.slane %v12039_v62, %v13589_v21  ;;  %v7153_v49 = vrot.slane %v7146_v14, %v13589_v21  ;;  %v7161_v9 = vrot.slane %v12040_v42, %v13589_v21 }
0x13d7   :  { %13003 = vmatmul.mubr.msk.bf16.vlgmr.msra.gmra.mxu1 %vm1947_vm2, %v10849_v26  ;;  %v13211_v61 = vpop.eup %13210  ;;  %v10850_v33 = vpack.c.bf16 %v10842_v55, %v10842_v55 }
0x13d8   :  { %v7162_v57 = vcombine.low %v7137_v12, %v7145_v36  ;;  %13014 = vmatprep.mubr.msk.bf16.mxu1 %vm13301_vm1, %v15910_v50  ;;  %v7163_v52 = vcombine.high %v7137_v12, %v7145_v36  ;;  %v7178_v53 = vcombine.low %v7153_v49, %v7161_v9  ;;  %v7179_v2 = vcombine.high %v7153_v49, %v7161_v9 }
0x13d9   :  { %v10843_v15 = vmul.f32 %v13211_v61, %v15610_v22 }
0x13da   :  { %v7170_v25 = vrot.slane %v7162_v57, %v13594_v28  ;;  %v7177_v7 = vrot.slane %v7163_v52, %v13594_v28  ;;  %v7186_v11 = vrot.slane %v7178_v53, %v13594_v28  ;;  %v7193_v43 = vrot.slane %v7179_v2, %v13594_v28 }
0x13db   :  { %v10851_v16 = vpack.c.bf16 %v10843_v15, %v10843_v15 }
0x13dc   :  { %v7194_v1 = vcombine.low %v7170_v25, %v7186_v11  ;;  %v7195_v3 = vcombine.high %v7170_v25, %v7186_v11  ;;  %v7196_v32 = vcombine.low %v7177_v7, %v7193_v43  ;;  %v7197_v38 = vcombine.high %v7177_v7, %v7193_v43 }
0x13de   :  { %v7202_v19 = vpack.c.bf16 %v7194_v1, %v7194_v1  ;;  %v7203_v39 = vpack.c.bf16 %v7195_v3, %v7195_v3  ;;  %v7204_v4 = vpack.c.bf16 %v7196_v32, %v7196_v32  ;;  %v7205_v41 = vpack.c.bf16 %v7197_v38, %v7197_v38 }
0x13e0   :  { %v11042_v17 = vsel %vm5058_vm6, %v7202_v19, 0  ;;  %v11088_v13 = vsel %vm5058_vm6, %v7203_v39, 0  ;;  %v11134_v10 = vsel %vm5058_vm6, %v7204_v4, 0  ;;  %v11180_v22 = vsel %vm5058_vm6, %v7205_v41, 0 }
0x13e1   :  { %13007 = vmatpush3.bf16.msra.mxu0 %v11042_v17  ;;  %13013 = vmatpush3.bf16.msra.mxu1 %v11088_v13 }
0x13e2   :  { %13018 = vmatprep.subr.bf16.mxu0 %v15910_v50  ;;  %13024 = vmatprep.subr.bf16.mxu1 %v15910_v50 }
0x13e4   :  { %13009 = vmatmul.mubr.msk.bf16.vlgmr.msra.gmra.mxu0 %vm1947_vm2, %v10850_v33  ;;  %13015 = vmatmul.mubr.msk.bf16.vlgmr.msra.gmra.mxu1 %vm1947_vm2, %v10851_v16 }
0x13e5   :  { %13019 = vmatpush3.bf16.msra.mxu0 %v11134_v10  ;;  %13025 = vmatpush3.bf16.msra.mxu1 %v11180_v22 }
0x13e6   :  { %13020 = vmatprep.mubr.msk.bf16.mxu0 %vm13301_vm1, %v15910_v50  ;;  %13026 = vmatprep.mubr.msk.bf16.mxu1 %vm13301_vm1, %v15910_v50 }
0x13e7   :  { %13030 = vmatprep.subr.bf16.mxu0 %v15910_v50  ;;  %13038 = vmatprep.subr.bf16.mxu1 %v15910_v50 }
0x13fb   :  { %v10821_v29 = vpop.xlane.xlu1 %10820 }
0x13fc   :  { %v10818_v5 = vpop.xlane.xlu0 %10817  ;;  %v10829_v47 = vadd.f32 1e-20, %v10821_v29 }
0x13fd   :  { %v10828_v60 = vadd.f32 1e-20, %v10818_v5 }
0x13fe   :  { %13212 = vrcp.f32 %v10829_v47 }
0x13ff   :  { %13214 = vrcp.f32 %v10828_v60 }
0x140b   :  { %v13213_v56 = vpop.eup %13212 }
0x140c   :  { %v13215_v44 = vpop.eup %13214  ;;  %v10845_v54 = vmul.f32 %v13213_v56, %v15643_v20 }
0x140d   :  { %v10844_v40 = vmul.f32 %v13215_v44, %v15646_v24 }
0x140e   :  { %v10853_v18 = vpack.c.bf16 %v10845_v54, %v10845_v54 }
0x140f   :  { %v10852_v46 = vpack.c.bf16 %v10844_v40, %v10844_v40 }
0x1410   :  { %13027 = vmatmul.mubr.msk.bf16.vlgmr.msra.gmra.mxu1 %vm1947_vm2, %v10853_v18 }
0x1411   :  { %13021 = vmatmul.mubr.msk.bf16.vlgmr.msra.gmra.mxu0 %vm1947_vm2, %v10852_v46  ;;  %13042 = vmatprep.mubr.msk.bf16.mxu1 %vm13301_vm1, %v15910_v50 }
0x1412   :  { %13034 = vmatprep.mubr.msk.bf16.mxu0 %vm13301_vm1, %v15910_v50 }
0x148c   :  { %v10894_v6 = vpop.f32.mrf.mxu0 }
0x148e   :  { %v12986_v31 = vpop.f32.mrf.mxu0 }
0x148f   :  { %v10940_v63 = vpop.f32.mrf.mxu1 }
0x1490   :  { %v10897_v45 = vpop.f32.mrf.mxu0 }
0x1491   :  { %v12992_v58 = vpop.f32.mrf.mxu1 }
0x1492   :  { %v12987_v20 = vpop.f32.mrf.mxu0 }
0x1493   :  { %v10943_v30 = vpop.f32.mrf.mxu1 }
0x1494   :  { %v10986_v24 = vpop.f32.mrf.mxu0 }
0x1495   :  { %v12993_v48 = vpop.f32.mrf.mxu1  ;;  %v11222_v35 = vcombine.low %v10894_v6, %v10986_v24  ;;  %v11223_v27 = vcombine.high %v10894_v6, %v10986_v24 }
0x1496   :  { %v12998_v37 = vpop.f32.mrf.mxu0 }
0x1497   :  { %v11032_v0 = vpop.f32.mrf.mxu1  ;;  %v11230_v62 = vrot.slane %v11222_v35, %v13589_v21  ;;  %v11237_v14 = vrot.slane %v11223_v27, %v13589_v21 }
0x1498   :  { %v10989_v34 = vpop.f32.mrf.mxu0  ;;  %v11238_v51 = vcombine.low %v10940_v63, %v11032_v0  ;;  %v11239_v8 = vcombine.high %v10940_v63, %v11032_v0 }
0x1499   :  { %v13004_v23 = vpop.f32.mrf.mxu1 }
0x149a   :  { %v11246_v26 = vrot.slane %v11238_v51, %v13589_v21  ;;  %v11253_v42 = vrot.slane %v11239_v8, %v13589_v21  ;;  %v12999_v12 = vpop.f32.mrf.mxu0 }
0x149b   :  { %v11035_v36 = vpop.f32.mrf.mxu1 }
0x149c   :  { %v11254_v49 = vcombine.low %v11230_v62, %v11246_v26  ;;  %v11255_v9 = vcombine.high %v11230_v62, %v11246_v26  ;;  %v11270_v57 = vcombine.low %v11237_v14, %v11253_v42  ;;  %v11271_v52 = vcombine.high %v11237_v14, %v11253_v42 }
0x149d   :  { %v13005_v53 = vpop.f32.mrf.mxu1 }
0x149e   :  { %v11262_v2 = vrot.slane %v11254_v49, %v13594_v28  ;;  %v11269_v25 = vrot.slane %v11255_v9, %v13594_v28  ;;  %v11278_v7 = vrot.slane %v11270_v57, %v13594_v28  ;;  %v11285_v59 = vrot.slane %v11271_v52, %v13594_v28  ;;  %v13128_v53 = vld [vmem:[%s15861_s14 + $0x18] sm:$0xff]  }
0x149f   :  { %13031 = vmatpush3.bf16.msra.mxu0 %v13128_v53 }
0x14a0   :  { %v11358_v11 = vcombine.low %v11262_v2, %v11269_v25  ;;  %v12097_v43 = vcombine.high %v11262_v2, %v11269_v25  ;;  %v11374_v61 = vcombine.low %v11278_v7, %v11285_v59  ;;  %v12098_v1 = vcombine.high %v11278_v7, %v11285_v59  ;;  %13032 = vmatprep.subr.bf16.mxu0 %v15910_v50 }
0x14a2   :  { %v11365_v3 = vrot.slane %v11358_v11, %v13589_v21  ;;  %v11373_v32 = vrot.slane %v12097_v43, %v13589_v21  ;;  %v11381_v38 = vrot.slane %v11374_v61, %v13589_v21  ;;  %v11389_v55 = vrot.slane %v12098_v1, %v13589_v21 }
0x14a4   :  { %v11391_v15 = vcombine.high %v11365_v3, %v11373_v32  ;;  %v11407_v19 = vcombine.high %v11381_v38, %v11389_v55  ;;  %v11390_v39 = vcombine.low %v11365_v3, %v11373_v32  ;;  %v11406_v17 = vcombine.low %v11381_v38, %v11389_v55  ;;  %v11078_v13 = vpop.f32.mrf.mxu0  ;;  %v11124_v4 = vpop.f32.mrf.mxu1 }
0x14a6   :  { %v15729_v41 = vrot.slane %v11391_v15, %v13594_v28  ;;  %v15732_v33 = vrot.slane %v11407_v19, %v13594_v28  ;;  %v15735_v16 = vrot.slane %v11390_v39, %v13594_v28  ;;  %v15738_v10 = vrot.slane %v11406_v17, %v13594_v28  ;;  %v13010_v22 = vpop.f32.mrf.mxu0  ;;  %v13016_v29 = vpop.f32.mrf.mxu1  ;;  %v13129_v15 = vld [vmem:[%s15861_s14 + $0x10] sm:$0xff]  }
0x14a7   :  { %13033 = vmatpush3.bf16.msra.mxu0 %v13129_v15 }
0x14a8   :  { %v11424_v5 = vcombine.low %v15729_v41, %v15732_v33  ;;  %v11423_v47 = vcombine.high %v15735_v16, %v15738_v10  ;;  %v11425_v60 = vcombine.high %v15729_v41, %v15732_v33  ;;  %v11422_v56 = vcombine.low %v15735_v16, %v15738_v10  ;;  %v11081_v44 = vpop.f32.mrf.mxu0  ;;  %v11127_v54 = vpop.f32.mrf.mxu1  ;;  %13046 = vmatprep.subr.bf16.mxu0 %v15910_v50  ;;  %v12106_v16 = vld [vmem:[%s15862_s15 + $0x1] ss:$0 sm:$0xff] }
0x14aa   :  { %v13011_v40 = vpop.f32.mrf.mxu0  ;;  %v13017_v18 = vpop.f32.mrf.mxu1 }
0x14d0   :  { %v11216_v46 = vpop.f32.mrf.mxu1 }
0x14d1   :  { %v11170_v6 = vpop.f32.mrf.mxu0  ;;  %v11306_v31 = vcombine.low %v11124_v4, %v11216_v46  ;;  %v11307_v63 = vcombine.high %v11124_v4, %v11216_v46 }
0x14d2   :  { %v11290_v45 = vcombine.low %v11078_v13, %v11170_v6  ;;  %v11291_v58 = vcombine.high %v11078_v13, %v11170_v6  ;;  %v13028_v20 = vpop.f32.mrf.mxu1 }
0x14d3   :  { %v11314_v30 = vrot.slane %v11306_v31, %v13589_v21  ;;  %v11321_v24 = vrot.slane %v11307_v63, %v13589_v21  ;;  %v13022_v48 = vpop.f32.mrf.mxu0  ;;  %v15915_v20 = vld [vmem:[#allocation14_spill] sm:$0xff] }
0x14d4   :  { %v11298_v35 = vrot.slane %v11290_v45, %v13589_v21  ;;  %v11305_v27 = vrot.slane %v11291_v58, %v13589_v21  ;;  %v11219_v37 = vpop.f32.mrf.mxu1 }
0x14d5   :  { %v11173_v0 = vpop.f32.mrf.mxu0  ;;  %v15916_v37 = vld [vmem:[#allocation15_spill] sm:$0xff] }
0x14d6   :  { %v11322_v34 = vcombine.low %v11298_v35, %v11314_v30  ;;  %v11323_v51 = vcombine.high %v11298_v35, %v11314_v30  ;;  %v11338_v8 = vcombine.low %v11305_v27, %v11321_v24  ;;  %v11339_v23 = vcombine.high %v11305_v27, %v11321_v24  ;;  %v13029_v62 = vpop.f32.mrf.mxu1 }
0x14d7   :  { %v13023_v14 = vpop.f32.mrf.mxu0 }
0x14d8   :  { %v11330_v26 = vrot.slane %v11322_v34, %v13594_v28  ;;  %v11337_v42 = vrot.slane %v11323_v51, %v13594_v28  ;;  %v11346_v12 = vrot.slane %v11338_v8, %v13594_v28  ;;  %v11353_v36 = vrot.slane %v11339_v23, %v13594_v28 }
0x14da   :  { %v11426_v49 = vcombine.low %v11330_v26, %v11337_v42  ;;  %v12099_v9 = vcombine.high %v11330_v26, %v11337_v42  ;;  %v11442_v57 = vcombine.low %v11346_v12, %v11353_v36  ;;  %v12100_v52 = vcombine.high %v11346_v12, %v11353_v36 }
0x14dc   :  { %v11433_v2 = vrot.slane %v11426_v49, %v13589_v21  ;;  %v11441_v25 = vrot.slane %v12099_v9, %v13589_v21  ;;  %v11449_v7 = vrot.slane %v11442_v57, %v13589_v21  ;;  %v11457_v59 = vrot.slane %v12100_v52, %v13589_v21  ;;  %v13130_v9 = vld [vmem:[%s15865_s18 + $0x18] sm:$0xff]   ;;  %v13131_v57 = vld [vmem:[%s15865_s18 + $0x10] sm:$0xff]  }
0x14dd   :  { %13039 = vmatpush3.bf16.msra.mxu1 %v13130_v9 }
0x14de   :  { %v11459_v11 = vcombine.high %v11433_v2, %v11441_v25  ;;  %v11475_v43 = vcombine.high %v11449_v7, %v11457_v59  ;;  %v11458_v61 = vcombine.low %v11433_v2, %v11441_v25  ;;  %v11474_v1 = vcombine.low %v11449_v7, %v11457_v59  ;;  %13040 = vmatprep.subr.bf16.mxu1 %v15910_v50 }
0x14e0   :  { %v11473_v3 = vrot.slane %v11459_v11, %v13594_v28  ;;  %v11489_v32 = vrot.slane %v11475_v43, %v13594_v28  ;;  %v11466_v38 = vrot.slane %v11458_v61, %v13594_v28  ;;  %v11482_v55 = vrot.slane %v11474_v1, %v13594_v28  ;;  %v12112_v61 = vld [vmem:[%s15863_s16 + $0x1] ss:$0 sm:$0xff] }
0x14e1   :  { %13041 = vmatpush3.bf16.msra.mxu1 %v13131_v57 }
0x14e2   :  { %v11492_v21 = vcombine.low %v11473_v3, %v11489_v32  ;;  %v11491_v19 = vcombine.high %v11466_v38, %v11482_v55  ;;  %v11490_v39 = vcombine.low %v11466_v38, %v11482_v55  ;;  %v11493_v4 = vcombine.high %v11473_v3, %v11489_v32  ;;  %v12113_v38 = vld [vmem:[%s15864_s17 + $0x1] ss:$0 sm:$0xff] }
0x14e4   :  { %v13097_v17 = vpack.i.bf16 %v11492_v21, %v11424_v5  ;;  %v13092_v13 = vpack.i.bf16 %v11491_v19, %v11423_v47  ;;  %v13102_v41 = vpack.i.bf16 %v11493_v4, %v11425_v60  ;;  %v13135_v4 = vld [vmem:[%s15867_s20 + $0x20] sm:$0xff]  }
0x14e6   :  { %13098 = vrot.lane.b32.xlu1 %v13097_v17, %s13308_s7  ;;  %13093 = vrot.lane.b32.xlu0 %v13092_v13, %s13309_s1  ;;  %v13133_v17 = vld [vmem:[%s15867_s20 + $0x30] sm:$0xff]   ;;  %v13134_v13 = vld [vmem:[%s15867_s20 + $0x28] sm:$0xff]  }
0x14ea   :  { %13103 = vrot.lane.b32.xlu0 %v13102_v41, %s15914_s29  ;;  %v12119_v41 = vld [vmem:[%s15866_s19 + $0x1] ss:$0 sm:$0xff] }
0x1558   :  { %v13099_v28 = vpop.permute.xlu1 %13098  ;;  %v13094_v33 = vpop.permute.xlu0 %13093 }
0x1559   :  { %v13096_v22 = vunpack.i.h.bf16 %v13094_v33  ;;  %v13095_v29 = vunpack.i.l.bf16 %v13094_v33  ;;  %v13101_v44 = vunpack.i.h.bf16 %v13099_v28  ;;  %v13100_v54 = vunpack.i.l.bf16 %v13099_v28 }
0x155b   :  { %v11518_v5 = vsel %vm1947_vm2, %v11422_v56, %v13095_v29  ;;  %v11519_v47 = vsel %vm1947_vm2, %v11490_v39, %v13096_v22  ;;  %v13132_v39 = vld [vmem:[%s15867_s20 + $0x38] sm:$0xff]  }
0x155c   :  { %v13104_v40 = vpop.permute.xlu0 %13103  ;;  %v11520_v60 = vsel %vm2804_vm3, %v11518_v5, %v13100_v54  ;;  %v11521_v6 = vsel %vm2804_vm3, %v11519_v47, %v13101_v44 }
0x155d   :  { %v13106_v18 = vunpack.i.h.bf16 %v13104_v40  ;;  %v13105_v46 = vunpack.i.l.bf16 %v13104_v40 }
0x155f   :  { %v11522_v31 = vsel %vm5724_vm7, %v11520_v60, %v13105_v46  ;;  %v11523_v63 = vsel %vm5724_vm7, %v11521_v6, %v13106_v18 }
0x1560   :  { %v11524_v45 = vpack.c.bf16 %v11523_v63, %v11522_v31 }
0x1562   :  { %13035 = vmatmul.mubr.msk.bf16.vlgmr.msra.gmra.mxu0 %vm135_vm0, %v11524_v45 }
0x1563   :  { %13054 = vmatprep.mubr.msk.bf16.mxu0 %vm13301_vm1, %v15910_v50  ;;  %13047 = vmatpush3.bf16.msra.mxu0 %v13132_v39 }
0x1564   :  { %13048 = vmatprep.subr.bf16.mxu0 %v15910_v50 }
0x1567   :  { %13049 = vmatpush3.bf16.msra.mxu0 %v13133_v17 }
0x1568   :  { %13050 = vmatprep.subr.bf16.mxu0 %v15910_v50 }
0x156b   :  { %13051 = vmatpush3.bf16.msra.mxu0 %v13134_v13 }
0x156c   :  { %13052 = vmatprep.subr.bf16.mxu0 %v15910_v50 }
0x156f   :  { %13053 = vmatpush3.bf16.msra.mxu0 %v13135_v4 }
0x1622   :  { %v11587_v10 = vpop.f32.mrf.mxu0 }
0x1623   :  { %v11588_v56 = vadd.f32 %v12106_v16, %v11587_v10 }
0x1624   :  { %v13036_v58 = vpop.f32.mrf.mxu0 }
0x1625   :  { %v11594_v30 = vadd.f32 %v11588_v56, %v15915_v20 }
0x1626   :  { %v11590_v24 = vpop.f32.mrf.mxu0 }
0x1627   :  { %v11591_v48 = vadd.f32 %v12106_v16, %v11590_v24  ;;  %v11600_v35 = vsel %vm135_vm0, %v11594_v30, 0.0 }
0x1628   :  { %11601 = vadd.xlane.f32.xlu1 %v11600_v35  ;;  %v13037_v27 = vpop.f32.mrf.mxu0  ;;  %v12132_v35 = vld [vmem:[%s15868_s21 + $0x1] ss:$0 sm:$0xff] }
0x1629   :  { %v11595_v0 = vadd.f32 %v11591_v48, %v15916_v37 }
0x162b   :  { %v11603_v34 = vsel %vm135_vm0, %v11595_v0, 0.0 }
0x162c   :  { %11604 = vadd.xlane.f32.xlu0 %v11603_v34 }
0x16b1   :  { %v11602_v51 = vpop.xlane.xlu1 %11601 }
0x16b2   :  { %v11606_v8 = vmul.f32 0.03125, %v11602_v51 }
0x16b4   :  { %v11608_v23 = vsub.f32 %v11594_v30, %v11606_v8 }
0x16b5   :  { %v11605_v62 = vpop.xlane.xlu0 %11604 }
0x16b6   :  { %v11607_v14 = vmul.f32 0.03125, %v11605_v62  ;;  %v11610_v26 = vmul.f32 %v11608_v23, %v11608_v23 }
0x16b8   :  { %v11609_v42 = vsub.f32 %v11595_v0, %v11607_v14  ;;  %v11612_v12 = vsel %vm135_vm0, %v11610_v26, 0.0 }
0x16b9   :  { %11613 = vadd.xlane.f32.xlu0 %v11612_v12 }
0x16ba   :  { %v11611_v36 = vmul.f32 %v11609_v42, %v11609_v42 }
0x16bc   :  { %v11615_v49 = vsel %vm135_vm0, %v11611_v36, 0.0 }
0x16bd   :  { %11616 = vadd.xlane.f32.xlu0 %v11615_v49 }
0x1742   :  { %v11614_v52 = vpop.xlane.xlu0 %11613 }
0x1743   :  { %v11618_v53 = vmul.f32 0.03125, %v11614_v52 }
0x1745   :  { %v11620_v2 = vadd.f32 1e-07, %v11618_v53 }
0x1746   :  { %v11617_v25 = vpop.xlane.xlu0 %11616 }
0x1747   :  { %13216 = vrsqrt.f32 %v11620_v2  ;;  %v11619_v7 = vmul.f32 0.03125, %v11617_v25 }
0x1749   :  { %v11621_v59 = vadd.f32 1e-07, %v11619_v7 }
0x174b   :  { %13218 = vrsqrt.f32 %v11621_v59 }
0x1754   :  { %v13217_v11 = vpop.eup %13216 }
0x1755   :  { %v11624_v43 = vmul.f32 %v13217_v11, %v11608_v23 }
0x1757   :  { %v11632_v3 = vmul.f32 %v12112_v61, %v11624_v43 }
0x1758   :  { %v13219_v1 = vpop.eup %13218 }
0x1759   :  { %v11625_v32 = vmul.f32 %v13219_v1, %v11609_v42  ;;  %v11640_v15 = vadd.f32 %v12113_v38, %v11632_v3 }
0x175b   :  { %v11633_v55 = vmul.f32 %v12112_v61, %v11625_v32  ;;  %v12140_v32 = vld [vmem:[%s15869_s22 + $0x1] ss:$0 sm:$0xff]  ;;  %s13311_s22 = smov [#allocation7]  }
0x175d   :  { %v11641_v21 = vadd.f32 %v12113_v38, %v11633_v55  ;;  %v12141_v55 = vld [vmem:[%s15870_s23 + $0x1] ss:$0 sm:$0xff]  ;;  %s11893_s23 = sshll.u32 %s13311_s22, 4  ;;  %s11894_s23 = int_to_ptr.vmem [resolvable:$true] %s11893_s23 }
0x175e   :  { %s13269_s2 = scalar_lea.vmem %s11894_s23, 32  ;;  %p13274_p11 = scmp.lt.s32.totalorder %s11894_s23, %s11894_s23 }
0x175f   :  { %v11642_v19 = vpack.c.bf16 %v11641_v21, %v11640_v15  ;;  %p13270_p10 = scmp.ne.s32.totalorder %s11894_s23, %s13269_s2  ;;  %p13275_p12 = scmp.lt.s32.totalorder %s13269_s2, %s13269_s2 }
0x1761   :  { %13043 = vmatmul.mubr.msk.bf16.vlgmr.msra.gmra.mxu1 %vm135_vm0, %v11642_v19  ;;  %p13276_p13 = por %p13275_p12, %p13274_p11 }
0x1763   :  { %p13277_p0 = pnand %p13276_p13, %p13270_p10 }
0x1821   :  { %v11705_v28 = vpop.f32.mrf.mxu1 }
0x1822   :  { %v11706_v33 = vadd.f32 %v12119_v41, %v11705_v28 }
0x1823   :  { %v13044_v22 = vpop.f32.mrf.mxu1 }
0x1824   :  { %v11712_v29 = vmul.f32 %v11706_v33, %v11706_v33 }
0x1825   :  { %v11708_v44 = vpop.f32.mrf.mxu1 }
0x1826   :  { %v11714_v54 = vmul.f32 %v11712_v29, %v11706_v33  ;;  %v11709_v5 = vadd.f32 %v12119_v41, %v11708_v44 }
0x1827   :  { %v13045_v47 = vpop.f32.mrf.mxu1 }
0x1828   :  { %v11716_v40 = vmul.f32 0.044715, %v11714_v54  ;;  %v11713_v18 = vmul.f32 %v11709_v5, %v11709_v5 }
0x182a   :  { %v11718_v46 = vadd.f32 %v11716_v40, %v11706_v33  ;;  %v11715_v60 = vmul.f32 %v11713_v18, %v11709_v5 }
0x182c   :  { %v11720_v6 = vmul.f32 0.7978846, %v11718_v46  ;;  %v11717_v31 = vmul.f32 0.044715, %v11715_v60 }
0x182e   :  { %13220 = vtanh.f32 %v11720_v6  ;;  %v11719_v50 = vadd.f32 %v11717_v31, %v11709_v5 }
0x1830   :  { %v11721_v63 = vmul.f32 0.7978846, %v11719_v50 }
0x1832   :  { %13222 = vtanh.f32 %v11721_v63 }
0x183b   :  { %v13221_v45 = vpop.eup %13220 }
0x183c   :  { %v11724_v16 = vadd.f32 1.0, %v13221_v45 }
0x183e   :  { %v11726_v56 = vmul.f32 0.5, %v11724_v16 }
0x183f   :  { %v13223_v10 = vpop.eup %13222 }
0x1840   :  { %v11725_v58 = vadd.f32 1.0, %v13223_v10  ;;  %v11728_v30 = vmul.f32 %v11726_v56, %v11706_v33 }
0x1842   :  { %v11727_v20 = vmul.f32 0.5, %v11725_v58 }
0x1844   :  { %v11729_v24 = vmul.f32 %v11727_v20, %v11709_v5 }
0x1846   :  { %v11730_v48 = vpack.c.bf16 %v11729_v24, %v11728_v30 }
0x1848   :  { %13055 = vmatmul.mubr.msk.bf16.vlgmr.msra.gmra.mxu0 %vm5967_vm8, %v11730_v48 }
0x1908   :  { %v11809_v27 = vpop.f32.mrf.mxu0 }
0x1909   :  { %v11810_v37 = vadd.f32 %v12132_v35, %v11809_v27 }
0x190a   :  { %v13056_v0 = vpop.f32.mrf.mxu0 }
0x190b   :  { %v11816_v34 = vadd.f32 %v11810_v37, %v11640_v15 }
0x190c   :  { %v11812_v51 = vpop.f32.mrf.mxu0 }
0x190d   :  { %v11813_v8 = vadd.f32 %v12132_v35, %v11812_v51  ;;  %v11822_v23 = vsel %vm135_vm0, %v11816_v34, 0.0 }
0x190e   :  { %11823 = vadd.xlane.f32.xlu1 %v11822_v23  ;;  %v13057_v62 = vpop.f32.mrf.mxu0 }
0x190f   :  { %v11817_v14 = vadd.f32 %v11813_v8, %v11641_v21 }
0x1911   :  { %v11825_v26 = vsel %vm135_vm0, %v11817_v14, 0.0 }
0x1912   :  { %11826 = vadd.xlane.f32.xlu0 %v11825_v26 }
0x1997   :  { %v11824_v42 = vpop.xlane.xlu1 %11823 }
0x1998   :  { %v11828_v12 = vmul.f32 0.03125, %v11824_v42 }
0x199a   :  { %v11830_v36 = vsub.f32 %v11816_v34, %v11828_v12 }
0x199b   :  { %v11827_v49 = vpop.xlane.xlu0 %11826 }
0x199c   :  { %v11829_v9 = vmul.f32 0.03125, %v11827_v49  ;;  %v11832_v57 = vmul.f32 %v11830_v36, %v11830_v36 }
0x199e   :  { %v11831_v52 = vsub.f32 %v11817_v14, %v11829_v9  ;;  %v11834_v53 = vsel %vm135_vm0, %v11832_v57, 0.0 }
0x199f   :  { %11835 = vadd.xlane.f32.xlu1 %v11834_v53 }
0x19a0   :  { %v11833_v2 = vmul.f32 %v11831_v52, %v11831_v52 }
0x19a2   :  { %v11837_v25 = vsel %vm135_vm0, %v11833_v2, 0.0 }
0x19a3   :  { %11838 = vadd.xlane.f32.xlu0 %v11837_v25 }
0x1a28   :  { %v11836_v7 = vpop.xlane.xlu1 %11835 }
0x1a29   :  { %v11840_v59 = vmul.f32 0.03125, %v11836_v7 }
0x1a2b   :  { %v11842_v11 = vadd.f32 1e-07, %v11840_v59 }
0x1a2c   :  { %v11839_v43 = vpop.xlane.xlu0 %11838 }
0x1a2d   :  { %13224 = vrsqrt.f32 %v11842_v11  ;;  %v11841_v61 = vmul.f32 0.03125, %v11839_v43 }
0x1a2f   :  { %v11843_v1 = vadd.f32 1e-07, %v11841_v61 }
0x1a31   :  { %13226 = vrsqrt.f32 %v11843_v1 }
0x1a3a   :  { %v13225_v3 = vpop.eup %13224 }
0x1a3b   :  { %v11846_v38 = vmul.f32 %v13225_v3, %v11830_v36 }
0x1a3d   :  { %v11854_v15 = vmul.f32 %v12140_v32, %v11846_v38 }
0x1a3e   :  { %v13227_v21 = vpop.eup %13226 }
0x1a3f   :  { %v11847_v19 = vmul.f32 %v13227_v21, %v11831_v52  ;;  %v11862_v39 = vadd.f32 %v12141_v55, %v11854_v15 }
0x1a41   :  { %v11855_v17 = vmul.f32 %v12140_v32, %v11847_v19  ;;  %v11864_v13 = vsel %vm135_vm0, %v11862_v39, 0.0 }
0x1a42   :  { %v11865_v4 = vrot.slane %v11864_v13, 4 }
0x1a43   :  { %v11863_v41 = vadd.f32 %v12141_v55, %v11855_v17 }
0x1a44   :  { %v11866_v28 = vadd.f32 %v11865_v4, %v11864_v13 }
0x1a45   :  { %v11871_v33 = vsel %vm135_vm0, %v11863_v41, 0.0 }
0x1a46   :  { %v11867_v22 = vrot.slane %v11866_v28, 2  ;;  %v11872_v29 = vrot.slane %v11871_v33, 4 }
0x1a48   :  { %v11868_v44 = vadd.f32 %v11867_v22, %v11866_v28  ;;  %v11873_v54 = vadd.f32 %v11872_v29, %v11871_v33 }
0x1a4a   :  { %v11869_v5 = vrot.slane %v11868_v44, 1  ;;  %v11874_v47 = vrot.slane %v11873_v54, 2 }
0x1a4c   :  { %v11875_v40 = vadd.f32 %v11874_v47, %v11873_v54  ;;  %v11870_v18 = vadd.f32 %v11869_v5, %v11868_v44 }
0x1a4e   :  { %v11876_v46 = vrot.slane %v11875_v40, 1  ;;  %v11878_v6 = vmul.f32 0.125, %v11870_v18 }
0x1a50   :  { %v11877_v60 = vadd.f32 %v11876_v46, %v11875_v40 }
0x1a52   :  { %v11879_v31 = vmul.f32 0.125, %v11877_v60 }
0x1a54   :  { %v11883_v50 = vsel %vm11882_vm9, %v11879_v31, %v11878_v6 }
0x1a55   :  { %11886 = vst.msk [vmem:[#allocation7] sm:$0x3] %vm11885_vm10, %v11883_v50 }
0x1a56   :  { %13280 = shalt.err (!%p13277_p0)
}
0x1a57   :  { %11896 = dma.vmem_to_hbm [thread:$0]  %s11894_s23, 32, %s15871_s24, [#allocation4]  }
0x1a58   :  { %13293 = dma.done.wait [#allocation4], 32  }
0x1a59   :  { %13294 = vsyncadd [#allocation4], 4294967264 }
0x1a5a   :  { %11900 = vsyncpa [#allocation3], 1 }
0x1a5b   :  { %11901 = vsyncpa [#allocation6], 1 }
0x1a5c   :  { %11902 = vsyncpa [#allocation4], 1 }

</bundles_post_ra>
